<compile_context>
chip_gen: v5e
topology: v5e:2x2
jax: 0.10.0
libtpu: 0.0.40
codegen_flags: <defaults>
</compile_context>

<pallas_src>
import math
import functools

import numpy as np
import jax
import jax.numpy as jnp
from jax.experimental import pallas as pl
from jax.experimental.pallas import tpu as pltpu


# ----------------------------------------------------------------------------
# In-kernel helpers
# ----------------------------------------------------------------------------
def _gate_consts(N, H):
    """Static per-lane constants selecting sigmoid (lanes < 3H) vs tanh (last H)."""
    lane = jax.lax.broadcasted_iota(jnp.int32, (N, 4 * H), 1)
    is_sig = lane < 3 * H
    half = jnp.where(is_sig, jnp.float32(0.5), jnp.float32(1.0))
    off = jnp.where(is_sig, jnp.float32(0.5), jnp.float32(0.0))
    return half, off


def _lstm_step(g, c, half, off, H):
    """One LSTM cell update from pre-activations g: (N, 4H), gates (i,f,o,g)."""
    # One full-vreg tanh covers all four gate blocks:
    #   sigmoid(z) = 0.5 * tanh(z/2) + 0.5   (i, f, o blocks)
    #   tanh(z)    = 1.0 * tanh(z)   + 0.0   (g block)
    act = jnp.tanh(g * half) * half + off
    i_g = act[:, :H]                                  # lanes [0,H) already aligned
    f_g = pltpu.roll(act, 3 * H, axis=1)[:, :H]       # bring f block to lanes [0,H)
    o_g = pltpu.roll(act, 2 * H, axis=1)[:, :H]       # bring o block to lanes [0,H)
    g_g = pltpu.roll(act, H, axis=1)[:, :H]           # bring g block to lanes [0,H)
    c_new = f_g * c + i_g * g_g
    h_new = o_g * jnp.tanh(c_new)
    return h_new, c_new


def _lstm_seq(gx2d, w_hh, half, off, *, T, N, H):
    """Single-layer LSTM; gx2d: (T*N, 4H) pre-projected input gates, time-major."""
    h = jnp.zeros((N, H), jnp.float32)
    c = jnp.zeros((N, H), jnp.float32)
    hs = []
    for t in range(T):  # T small & static -> fully unrolled, all slices static
        g = gx2d[t * N:(t + 1) * N, :] + jnp.dot(
            h, w_hh, preferred_element_type=jnp.float32)
        h, c = _lstm_step(g, c, half, off, H)
        hs.append(h)
    return jnp.concatenate(hs, axis=0)                # (T*N, H), stays in regs


def _lstm2_seq(gx0_2d, w0_hh, w1_ih, w1_hh, b1, half, off, *, T, N, H):
    """Two stacked LSTM layers interleaved in one unrolled time loop.

    gx0_2d: (T*N, 4H) hoisted input projection of layer 0.  Layer 1's input is
    layer 0's output at the same timestep, so its projection runs per-step.
    """
    h0 = jnp.zeros((N, H), jnp.float32)
    c0 = jnp.zeros((N, H), jnp.float32)
    h1 = jnp.zeros((N, H), jnp.float32)
    c1 = jnp.zeros((N, H), jnp.float32)
    hs = []
    for t in range(T):
        # layer 0, step t
        g0 = gx0_2d[t * N:(t + 1) * N, :] + jnp.dot(
            h0, w0_hh, preferred_element_type=jnp.float32)
        h0, c0 = _lstm_step(g0, c0, half, off, H)
        # layer 1, step t (input = layer-0 output of this step); layer-0 step
        # t+1 is independent of this, so the unrolled schedule overlaps them.
        g1 = (jnp.dot(h0, w1_ih, preferred_element_type=jnp.float32)
              + jnp.dot(h1, w1_hh, preferred_element_type=jnp.float32) + b1)
        h1, c1 = _lstm_step(g1, c1, half, off, H)
        hs.append(h1)
    return jnp.concatenate(hs, axis=0)                # (T*N, H)


def fused_forward_kernel(x_ref, tmask_ref, kmask_ref, bias_ref,
                         w1_ih_ref, w1_hh_ref, b1_ref,
                         wqkv_ref, bqkv_ref, wo_ref, bo_ref,
                         w2a_ih_ref, w2a_hh_ref, b2a_ref,
                         w2b_ih_ref, w2b_hh_ref, b2b_ref,
                         wp_ref, bp_ref,
                         out_ref,
                         *, B, P, T, H, A, scale):
    N = B * P
    half, off = _gate_consts(N, H)                    # hoisted out of all loops

    # ---------------- LSTM1 (input projection hoisted, recurrence in regs) ----
    gx1 = (jnp.dot(x_ref[...], w1_ih_ref[...], preferred_element_type=jnp.float32)
           + b1_ref[...])                             # (T*N, 4H), time-major
    enc = _lstm_seq(gx1, w1_hh_ref[...], half, off, T=T, N=N, H=H)   # (T*N, H)
    # Padded timesteps are NOT zeroed here: the LSTMs are causal and attention
    # only mixes players of the same (b, t), so contaminated padded rows never
    # reach a valid output; the final mask restores pad_packed_sequence output.

    # ---------------- player attention (single block-diagonal matmul) ---------
    qkv = (jnp.dot(enc, wqkv_ref[...], preferred_element_type=jnp.float32)
           + bqkv_ref[...])                           # (T*N, 3A)
    q = qkv[:, :A]
    k = qkv[:, A:2 * A]
    v = qkv[:, 2 * A:]
    logits = (jnp.einsum('qd,kd->qk', q, k, preferred_element_type=jnp.float32) * scale
              + bias_ref[...]                         # block-diag: same (b, t) only
              - 1e24 * kmask_ref[...])                # additive key-padding mask
    attn = jax.nn.softmax(logits, axis=-1)
    # TODO(synk): attn_dropout / LSTM inter-layer dropout are eval-mode identity.
    comb = jnp.dot(attn, v, preferred_element_type=jnp.float32)       # (T*N, A)
    attn_out = (jnp.dot(comb, wo_ref[...], preferred_element_type=jnp.float32)
                + bo_ref[...])                        # (T*N, H)

    # ---------------- LSTM2: two layers interleaved per timestep --------------
    gx2 = (jnp.dot(attn_out, w2a_ih_ref[...], preferred_element_type=jnp.float32)
           + b2a_ref[...])                            # layer-0 gates, hoisted
    h2 = _lstm2_seq(gx2, w2a_hh_ref[...], w2b_ih_ref[...], w2b_hh_ref[...],
                    b2b_ref[...], half, off, T=T, N=N, H=H)           # (T*N, H)

    # ------- zero padded timesteps (pad_packed_sequence) + prediction head ----
    h2 = h2 * tmask_ref[...]
    out_ref[...] = (jnp.dot(h2, wp_ref[...], preferred_element_type=jnp.float32)
                    + bp_ref[...])


# ----------------------------------------------------------------------------
# Wrapper
# ----------------------------------------------------------------------------
def _full_spec(shape):
    nd = len(shape)
    return pl.BlockSpec(shape, lambda *_, nd=nd: (0,) * nd)


def model_forward(params, x, lens, attn_mask):
    B, P, T, Din = x.shape
    H = params["lstm1"]["w_hh"].shape[0]
    A = params["attn"]["wo"].shape[0]
    O = params["pred_w"].shape[1]
    TN = T * B * P

    # Tiny input-side layout / mask prep (a few KB, fused into surrounding XLA).
    # All tensors cross the pallas boundary as 2-D, time-major (t, b, p) rows.
    x_tm = jnp.transpose(x, (2, 0, 1, 3)).reshape(TN, Din)                 # (T*B*P, Din)
    tmask = (jnp.arange(T)[:, None] < lens[None, :]).astype(jnp.float32)   # (T, B)
    tmask = jnp.broadcast_to(tmask[:, :, None], (T, B, P)).reshape(TN, 1)  # (T*B*P, 1)
    kmask = jnp.transpose(attn_mask, (2, 0, 1)).reshape(1, TN)             # (1, T*B*P)

    # Static block-diagonal attention bias: queries attend only to players of
    # the same (batch item, timestep); off-block logits get -1e30 so their exp
    # underflows to exactly 0, reproducing the per-timestep softmax in f32.
    blk = np.arange(TN) // P                                               # encodes (t, b)
    block_bias = jnp.asarray(
        np.where(blk[:, None] == blk[None, :], 0.0, -1e30), dtype=jnp.float32)

    kernel = functools.partial(
        fused_forward_kernel, B=B, P=P, T=T, H=H, A=A,
        scale=1.0 / math.sqrt(H))  # PyTorch divides by sqrt(hidden_size)

    pa = params["attn"]
    args = (x_tm, tmask, kmask, block_bias,
            params["lstm1"]["w_ih"], params["lstm1"]["w_hh"], params["lstm1"]["b"],
            pa["wqkv"], pa["bqkv"], pa["wo"], pa["bo"],
            params["lstm2_l0"]["w_ih"], params["lstm2_l0"]["w_hh"], params["lstm2_l0"]["b"],
            params["lstm2_l1"]["w_ih"], params["lstm2_l1"]["w_hh"], params["lstm2_l1"]["b"],
            params["pred_w"], params["pred_b"])

    # Single grid point: the whole forward is one VMEM/vreg-resident program.
    out2d = pl.pallas_call(
        kernel,
        out_shape=jax.ShapeDtypeStruct((TN, O), jnp.float32),
        grid=(1,),
        in_specs=[_full_spec(a.shape) for a in args],
        out_specs=_full_spec((TN, O)),
        compiler_params=pltpu.CompilerParams(dimension_semantics=("arbitrary",)),
    )(*args)

    return jnp.transpose(out2d.reshape(T, B, P, O), (1, 2, 0, 3))  # (B, P, T, out_dim)


# ----------------------------------------------------------------------------
# Parameter initialization (deterministic; shapes match the PyTorch module)
# ----------------------------------------------------------------------------
def init_params(key, hidden_size, attn_dim, in_dim, out_dim):
    ks = iter(jax.random.split(key, 32))
    nrm = lambda shape: 0.1 * jax.random.normal(next(ks), shape, dtype=jnp.float32)

    def lstm_weights(din, h):
        # Stored pre-transposed for right-multiplication, gate columns ordered
        # (i, f, o, g); b = b_ih + b_hh combined.  Converting a real PyTorch
        # checkpoint requires a transpose + permutation of its (i, f, g, o) blocks.
        return dict(w_ih=nrm((din, 4 * h)), w_hh=nrm((h, 4 * h)),
                    b=nrm((1, 4 * h)) + nrm((1, 4 * h)))

    H, A = hidden_size, attn_dim
    return dict(
        lstm1=lstm_weights(in_dim, H),
        lstm2_l0=lstm_weights(H, H),
        lstm2_l1=lstm_weights(H, H),
        attn=dict(wqkv=nrm((H, 3 * A)), bqkv=nrm((1, 3 * A)),   # q|k|v concatenated
                  wo=nrm((A, H)), bo=nrm((1, H))),
        pred_w=nrm((H, out_dim)), pred_b=nrm((1, out_dim)),
        # `second_head` (hidden_size -> head2_dim) is unused by forward(); omitted.
    )


if __name__ == "__main__":
    B, P, T = 2, 4, 8
    in_dim, hidden_size, attn_dim, out_dim, head2_dim = 16, 32, 32, 8, 8

    key = jax.random.PRNGKey(0)
    k_param, k_x, k_m = jax.random.split(key, 3)

    params = init_params(k_param, hidden_size, attn_dim, in_dim, out_dim)
    x = jax.random.normal(k_x, (B, P, T, in_dim), dtype=jnp.float32)
    lens = jnp.array([T, T - 2], dtype=jnp.int32)   # max(lens) == T (required by the module)
    attn_mask = (jax.random.uniform(k_m, (B, P, T)) > 0.7).astype(jnp.float32)

    fwd = jax.jit(model_forward)
    out = fwd(params, x, lens, attn_mask)
    jax.block_until_ready(out)
    assert out.shape == (B, P, T, out_dim)
    print("KERNEL_OK")
</pallas_src>

<mosaic_0001>
module attributes {stable_mosaic.version = 11 : i64} {
  func.func @fused_forward_kernel(%arg0: i32, %arg1: memref<64x16xf32, #tpu.memory_space<vmem>>, %arg2: memref<64x1xf32, #tpu.memory_space<vmem>>, %arg3: memref<1x64xf32, #tpu.memory_space<vmem>>, %arg4: memref<64x64xf32, #tpu.memory_space<vmem>>, %arg5: memref<16x128xf32, #tpu.memory_space<vmem>>, %arg6: memref<32x128xf32, #tpu.memory_space<vmem>>, %arg7: memref<1x128xf32, #tpu.memory_space<vmem>>, %arg8: memref<32x96xf32, #tpu.memory_space<vmem>>, %arg9: memref<1x96xf32, #tpu.memory_space<vmem>>, %arg10: memref<32x32xf32, #tpu.memory_space<vmem>>, %arg11: memref<1x32xf32, #tpu.memory_space<vmem>>, %arg12: memref<32x128xf32, #tpu.memory_space<vmem>>, %arg13: memref<32x128xf32, #tpu.memory_space<vmem>>, %arg14: memref<1x128xf32, #tpu.memory_space<vmem>>, %arg15: memref<32x128xf32, #tpu.memory_space<vmem>>, %arg16: memref<32x128xf32, #tpu.memory_space<vmem>>, %arg17: memref<1x128xf32, #tpu.memory_space<vmem>>, %arg18: memref<32x8xf32, #tpu.memory_space<vmem>>, %arg19: memref<1x8xf32, #tpu.memory_space<vmem>>, %arg20: memref<64x8xf32, #tpu.memory_space<vmem>>) attributes {dimension_semantics = [#tpu.dimension_semantics<arbitrary>], iteration_bounds = array<i64: 1>, scalar_prefetch = 0 : i64, scratch_operands = 0 : i64, tpu.core_type = #tpu.core_type<tc>, window_params = [{pipeline_mode = #tpu.pipeline_mode<synchronous>, transform_indices = @transform_0, window_bounds = array<i64: 64, 16>}, {pipeline_mode = #tpu.pipeline_mode<synchronous>, transform_indices = @transform_1, window_bounds = array<i64: 64, 1>}, {pipeline_mode = #tpu.pipeline_mode<synchronous>, transform_indices = @transform_2, window_bounds = array<i64: 1, 64>}, {pipeline_mode = #tpu.pipeline_mode<synchronous>, transform_indices = @transform_3, window_bounds = array<i64: 64, 64>}, {pipeline_mode = #tpu.pipeline_mode<synchronous>, transform_indices = @transform_4, window_bounds = array<i64: 16, 128>}, {pipeline_mode = #tpu.pipeline_mode<synchronous>, transform_indices = @transform_5, window_bounds = array<i64: 32, 128>}, {pipeline_mode = #tpu.pipeline_mode<synchronous>, transform_indices = @transform_6, window_bounds = array<i64: 1, 128>}, {pipeline_mode = #tpu.pipeline_mode<synchronous>, transform_indices = @transform_7, window_bounds = array<i64: 32, 96>}, {pipeline_mode = #tpu.pipeline_mode<synchronous>, transform_indices = @transform_8, window_bounds = array<i64: 1, 96>}, {pipeline_mode = #tpu.pipeline_mode<synchronous>, transform_indices = @transform_9, window_bounds = array<i64: 32, 32>}, {pipeline_mode = #tpu.pipeline_mode<synchronous>, transform_indices = @transform_10, window_bounds = array<i64: 1, 32>}, {pipeline_mode = #tpu.pipeline_mode<synchronous>, transform_indices = @transform_11, window_bounds = array<i64: 32, 128>}, {pipeline_mode = #tpu.pipeline_mode<synchronous>, transform_indices = @transform_12, window_bounds = array<i64: 32, 128>}, {pipeline_mode = #tpu.pipeline_mode<synchronous>, transform_indices = @transform_13, window_bounds = array<i64: 1, 128>}, {pipeline_mode = #tpu.pipeline_mode<synchronous>, transform_indices = @transform_14, window_bounds = array<i64: 32, 128>}, {pipeline_mode = #tpu.pipeline_mode<synchronous>, transform_indices = @transform_15, window_bounds = array<i64: 32, 128>}, {pipeline_mode = #tpu.pipeline_mode<synchronous>, transform_indices = @transform_16, window_bounds = array<i64: 1, 128>}, {pipeline_mode = #tpu.pipeline_mode<synchronous>, transform_indices = @transform_17, window_bounds = array<i64: 32, 8>}, {pipeline_mode = #tpu.pipeline_mode<synchronous>, transform_indices = @transform_18, window_bounds = array<i64: 1, 8>}, {pipeline_mode = #tpu.pipeline_mode<synchronous>, transform_indices = @transform_19, window_bounds = array<i64: 64, 8>}]} {
    %0 = tpu.iota {dimensions = array<i32: 1>} : vector<8x128xi32>
    %c96_i32 = arith.constant 96 : i32
    %1 = vector.broadcast %c96_i32 : i32 to vector<8x128xi32>
    %2 = arith.cmpi slt, %0, %1 : vector<8x128xi32>
    %cst = arith.constant 5.000000e-01 : f32
    %cst_0 = arith.constant 1.000000e+00 : f32
    %3 = vector.broadcast %cst : f32 to vector<8x128xf32>
    %4 = vector.broadcast %cst_0 : f32 to vector<8x128xf32>
    %5 = arith.select %2, %3, %4 : vector<8x128xi1>, vector<8x128xf32>
    %cst_1 = arith.constant 5.000000e-01 : f32
    %cst_2 = arith.constant 0.000000e+00 : f32
    %6 = vector.broadcast %cst_1 : f32 to vector<8x128xf32>
    %7 = vector.broadcast %cst_2 : f32 to vector<8x128xf32>
    %8 = arith.select %2, %6, %7 : vector<8x128xi1>, vector<8x128xf32>
    %c0 = arith.constant 0 : index
    %c0_3 = arith.constant 0 : index
    %9 = vector.load %arg1[%c0, %c0_3] : memref<64x16xf32, #tpu.memory_space<vmem>>, vector<64x16xf32>
    %c0_4 = arith.constant 0 : index
    %c0_5 = arith.constant 0 : index
    %10 = vector.load %arg5[%c0_4, %c0_5] : memref<16x128xf32, #tpu.memory_space<vmem>>, vector<16x128xf32>
    %cst_6 = arith.constant dense<0.000000e+00> : vector<64x128xf32>
    %11 = tpu.matmul %9, %10, %cst_6 {dimension_numbers = #tpu.dot_dimension_numbers<[1], [0], [0], [1], [0, 0, 1, 1], [], []>} : vector<64x16xf32>, vector<16x128xf32>, vector<64x128xf32> -> vector<64x128xf32>
    %c0_7 = arith.constant 0 : index
    %c0_8 = arith.constant 0 : index
    %12 = vector.load %arg7[%c0_7, %c0_8] : memref<1x128xf32, #tpu.memory_space<vmem>>, vector<1x128xf32>
    %13 = vector.broadcast %12 : vector<1x128xf32> to vector<64x128xf32>
    %14 = arith.addf %11, %13 : vector<64x128xf32>
    %c0_9 = arith.constant 0 : index
    %c0_10 = arith.constant 0 : index
    %15 = vector.load %arg6[%c0_9, %c0_10] : memref<32x128xf32, #tpu.memory_space<vmem>>, vector<32x128xf32>
    %cst_11 = arith.constant 0.000000e+00 : f32
    %16 = vector.broadcast %cst_11 : f32 to vector<8x32xf32>
    %cst_12 = arith.constant 0.000000e+00 : f32
    %17 = vector.broadcast %cst_12 : f32 to vector<8x32xf32>
    %18 = vector.extract_strided_slice %14 {offsets = [0, 0], sizes = [8, 128], strides = [1, 1]} : vector<64x128xf32> to vector<8x128xf32>
    %cst_13 = arith.constant dense<0.000000e+00> : vector<8x128xf32>
    %19 = tpu.matmul %16, %15, %cst_13 {dimension_numbers = #tpu.dot_dimension_numbers<[1], [0], [0], [1], [0, 0, 1, 1], [], []>} : vector<8x32xf32>, vector<32x128xf32>, vector<8x128xf32> -> vector<8x128xf32>
    %20 = arith.addf %18, %19 : vector<8x128xf32>
    %21 = arith.mulf %20, %5 : vector<8x128xf32>
    %22 = math.tanh %21 : vector<8x128xf32>
    %23 = arith.mulf %22, %5 : vector<8x128xf32>
    %24 = arith.addf %23, %8 : vector<8x128xf32>
    %25 = vector.extract_strided_slice %24 {offsets = [0, 0], sizes = [8, 32], strides = [1, 1]} : vector<8x128xf32> to vector<8x32xf32>
    %c96_i32_14 = arith.constant 96 : i32
    %26 = tpu.dynamic_rotate %24 by %c96_i32_14 dim 1 : vector<8x128xf32>, i32 -> vector<8x128xf32>
    %27 = vector.extract_strided_slice %26 {offsets = [0, 0], sizes = [8, 32], strides = [1, 1]} : vector<8x128xf32> to vector<8x32xf32>
    %c64_i32 = arith.constant 64 : i32
    %28 = tpu.dynamic_rotate %24 by %c64_i32 dim 1 : vector<8x128xf32>, i32 -> vector<8x128xf32>
    %29 = vector.extract_strided_slice %28 {offsets = [0, 0], sizes = [8, 32], strides = [1, 1]} : vector<8x128xf32> to vector<8x32xf32>
    %c32_i32 = arith.constant 32 : i32
    %30 = tpu.dynamic_rotate %24 by %c32_i32 dim 1 : vector<8x128xf32>, i32 -> vector<8x128xf32>
    %31 = vector.extract_strided_slice %30 {offsets = [0, 0], sizes = [8, 32], strides = [1, 1]} : vector<8x128xf32> to vector<8x32xf32>
    %32 = arith.mulf %27, %17 : vector<8x32xf32>
    %33 = arith.mulf %25, %31 : vector<8x32xf32>
    %34 = arith.addf %32, %33 : vector<8x32xf32>
    %35 = math.tanh %34 : vector<8x32xf32>
    %36 = arith.mulf %29, %35 : vector<8x32xf32>
    %37 = vector.extract_strided_slice %14 {offsets = [8, 0], sizes = [8, 128], strides = [1, 1]} : vector<64x128xf32> to vector<8x128xf32>
    %cst_15 = arith.constant dense<0.000000e+00> : vector<8x128xf32>
    %38 = tpu.matmul %36, %15, %cst_15 {dimension_numbers = #tpu.dot_dimension_numbers<[1], [0], [0], [1], [0, 0, 1, 1], [], []>} : vector<8x32xf32>, vector<32x128xf32>, vector<8x128xf32> -> vector<8x128xf32>
    %39 = arith.addf %37, %38 : vector<8x128xf32>
    %40 = arith.mulf %39, %5 : vector<8x128xf32>
    %41 = math.tanh %40 : vector<8x128xf32>
    %42 = arith.mulf %41, %5 : vector<8x128xf32>
    %43 = arith.addf %42, %8 : vector<8x128xf32>
    %44 = vector.extract_strided_slice %43 {offsets = [0, 0], sizes = [8, 32], strides = [1, 1]} : vector<8x128xf32> to vector<8x32xf32>
    %c96_i32_16 = arith.constant 96 : i32
    %45 = tpu.dynamic_rotate %43 by %c96_i32_16 dim 1 : vector<8x128xf32>, i32 -> vector<8x128xf32>
    %46 = vector.extract_strided_slice %45 {offsets = [0, 0], sizes = [8, 32], strides = [1, 1]} : vector<8x128xf32> to vector<8x32xf32>
    %c64_i32_17 = arith.constant 64 : i32
    %47 = tpu.dynamic_rotate %43 by %c64_i32_17 dim 1 : vector<8x128xf32>, i32 -> vector<8x128xf32>
    %48 = vector.extract_strided_slice %47 {offsets = [0, 0], sizes = [8, 32], strides = [1, 1]} : vector<8x128xf32> to vector<8x32xf32>
    %c32_i32_18 = arith.constant 32 : i32
    %49 = tpu.dynamic_rotate %43 by %c32_i32_18 dim 1 : vector<8x128xf32>, i32 -> vector<8x128xf32>
    %50 = vector.extract_strided_slice %49 {offsets = [0, 0], sizes = [8, 32], strides = [1, 1]} : vector<8x128xf32> to vector<8x32xf32>
    %51 = arith.mulf %46, %34 : vector<8x32xf32>
    %52 = arith.mulf %44, %50 : vector<8x32xf32>
    %53 = arith.addf %51, %52 : vector<8x32xf32>
    %54 = math.tanh %53 : vector<8x32xf32>
    %55 = arith.mulf %48, %54 : vector<8x32xf32>
    %56 = vector.extract_strided_slice %14 {offsets = [16, 0], sizes = [8, 128], strides = [1, 1]} : vector<64x128xf32> to vector<8x128xf32>
    %cst_19 = arith.constant dense<0.000000e+00> : vector<8x128xf32>
    %57 = tpu.matmul %55, %15, %cst_19 {dimension_numbers = #tpu.dot_dimension_numbers<[1], [0], [0], [1], [0, 0, 1, 1], [], []>} : vector<8x32xf32>, vector<32x128xf32>, vector<8x128xf32> -> vector<8x128xf32>
    %58 = arith.addf %56, %57 : vector<8x128xf32>
    %59 = arith.mulf %58, %5 : vector<8x128xf32>
    %60 = math.tanh %59 : vector<8x128xf32>
    %61 = arith.mulf %60, %5 : vector<8x128xf32>
    %62 = arith.addf %61, %8 : vector<8x128xf32>
    %63 = vector.extract_strided_slice %62 {offsets = [0, 0], sizes = [8, 32], strides = [1, 1]} : vector<8x128xf32> to vector<8x32xf32>
    %c96_i32_20 = arith.constant 96 : i32
    %64 = tpu.dynamic_rotate %62 by %c96_i32_20 dim 1 : vector<8x128xf32>, i32 -> vector<8x128xf32>
    %65 = vector.extract_strided_slice %64 {offsets = [0, 0], sizes = [8, 32], strides = [1, 1]} : vector<8x128xf32> to vector<8x32xf32>
    %c64_i32_21 = arith.constant 64 : i32
    %66 = tpu.dynamic_rotate %62 by %c64_i32_21 dim 1 : vector<8x128xf32>, i32 -> vector<8x128xf32>
    %67 = vector.extract_strided_slice %66 {offsets = [0, 0], sizes = [8, 32], strides = [1, 1]} : vector<8x128xf32> to vector<8x32xf32>
    %c32_i32_22 = arith.constant 32 : i32
    %68 = tpu.dynamic_rotate %62 by %c32_i32_22 dim 1 : vector<8x128xf32>, i32 -> vector<8x128xf32>
    %69 = vector.extract_strided_slice %68 {offsets = [0, 0], sizes = [8, 32], strides = [1, 1]} : vector<8x128xf32> to vector<8x32xf32>
    %70 = arith.mulf %65, %53 : vector<8x32xf32>
    %71 = arith.mulf %63, %69 : vector<8x32xf32>
    %72 = arith.addf %70, %71 : vector<8x32xf32>
    %73 = math.tanh %72 : vector<8x32xf32>
    %74 = arith.mulf %67, %73 : vector<8x32xf32>
    %75 = vector.extract_strided_slice %14 {offsets = [24, 0], sizes = [8, 128], strides = [1, 1]} : vector<64x128xf32> to vector<8x128xf32>
    %cst_23 = arith.constant dense<0.000000e+00> : vector<8x128xf32>
    %76 = tpu.matmul %74, %15, %cst_23 {dimension_numbers = #tpu.dot_dimension_numbers<[1], [0], [0], [1], [0, 0, 1, 1], [], []>} : vector<8x32xf32>, vector<32x128xf32>, vector<8x128xf32> -> vector<8x128xf32>
    %77 = arith.addf %75, %76 : vector<8x128xf32>
    %78 = arith.mulf %77, %5 : vector<8x128xf32>
    %79 = math.tanh %78 : vector<8x128xf32>
    %80 = arith.mulf %79, %5 : vector<8x128xf32>
    %81 = arith.addf %80, %8 : vector<8x128xf32>
    %82 = vector.extract_strided_slice %81 {offsets = [0, 0], sizes = [8, 32], strides = [1, 1]} : vector<8x128xf32> to vector<8x32xf32>
    %c96_i32_24 = arith.constant 96 : i32
    %83 = tpu.dynamic_rotate %81 by %c96_i32_24 dim 1 : vector<8x128xf32>, i32 -> vector<8x128xf32>
    %84 = vector.extract_strided_slice %83 {offsets = [0, 0], sizes = [8, 32], strides = [1, 1]} : vector<8x128xf32> to vector<8x32xf32>
    %c64_i32_25 = arith.constant 64 : i32
    %85 = tpu.dynamic_rotate %81 by %c64_i32_25 dim 1 : vector<8x128xf32>, i32 -> vector<8x128xf32>
    %86 = vector.extract_strided_slice %85 {offsets = [0, 0], sizes = [8, 32], strides = [1, 1]} : vector<8x128xf32> to vector<8x32xf32>
    %c32_i32_26 = arith.constant 32 : i32
    %87 = tpu.dynamic_rotate %81 by %c32_i32_26 dim 1 : vector<8x128xf32>, i32 -> vector<8x128xf32>
    %88 = vector.extract_strided_slice %87 {offsets = [0, 0], sizes = [8, 32], strides = [1, 1]} : vector<8x128xf32> to vector<8x32xf32>
    %89 = arith.mulf %84, %72 : vector<8x32xf32>
    %90 = arith.mulf %82, %88 : vector<8x32xf32>
    %91 = arith.addf %89, %90 : vector<8x32xf32>
    %92 = math.tanh %91 : vector<8x32xf32>
    %93 = arith.mulf %86, %92 : vector<8x32xf32>
    %94 = vector.extract_strided_slice %14 {offsets = [32, 0], sizes = [8, 128], strides = [1, 1]} : vector<64x128xf32> to vector<8x128xf32>
    %cst_27 = arith.constant dense<0.000000e+00> : vector<8x128xf32>
    %95 = tpu.matmul %93, %15, %cst_27 {dimension_numbers = #tpu.dot_dimension_numbers<[1], [0], [0], [1], [0, 0, 1, 1], [], []>} : vector<8x32xf32>, vector<32x128xf32>, vector<8x128xf32> -> vector<8x128xf32>
    %96 = arith.addf %94, %95 : vector<8x128xf32>
    %97 = arith.mulf %96, %5 : vector<8x128xf32>
    %98 = math.tanh %97 : vector<8x128xf32>
    %99 = arith.mulf %98, %5 : vector<8x128xf32>
    %100 = arith.addf %99, %8 : vector<8x128xf32>
    %101 = vector.extract_strided_slice %100 {offsets = [0, 0], sizes = [8, 32], strides = [1, 1]} : vector<8x128xf32> to vector<8x32xf32>
    %c96_i32_28 = arith.constant 96 : i32
    %102 = tpu.dynamic_rotate %100 by %c96_i32_28 dim 1 : vector<8x128xf32>, i32 -> vector<8x128xf32>
    %103 = vector.extract_strided_slice %102 {offsets = [0, 0], sizes = [8, 32], strides = [1, 1]} : vector<8x128xf32> to vector<8x32xf32>
    %c64_i32_29 = arith.constant 64 : i32
    %104 = tpu.dynamic_rotate %100 by %c64_i32_29 dim 1 : vector<8x128xf32>, i32 -> vector<8x128xf32>
    %105 = vector.extract_strided_slice %104 {offsets = [0, 0], sizes = [8, 32], strides = [1, 1]} : vector<8x128xf32> to vector<8x32xf32>
    %c32_i32_30 = arith.constant 32 : i32
    %106 = tpu.dynamic_rotate %100 by %c32_i32_30 dim 1 : vector<8x128xf32>, i32 -> vector<8x128xf32>
    %107 = vector.extract_strided_slice %106 {offsets = [0, 0], sizes = [8, 32], strides = [1, 1]} : vector<8x128xf32> to vector<8x32xf32>
    %108 = arith.mulf %103, %91 : vector<8x32xf32>
    %109 = arith.mulf %101, %107 : vector<8x32xf32>
    %110 = arith.addf %108, %109 : vector<8x32xf32>
    %111 = math.tanh %110 : vector<8x32xf32>
    %112 = arith.mulf %105, %111 : vector<8x32xf32>
    %113 = vector.extract_strided_slice %14 {offsets = [40, 0], sizes = [8, 128], strides = [1, 1]} : vector<64x128xf32> to vector<8x128xf32>
    %cst_31 = arith.constant dense<0.000000e+00> : vector<8x128xf32>
    %114 = tpu.matmul %112, %15, %cst_31 {dimension_numbers = #tpu.dot_dimension_numbers<[1], [0], [0], [1], [0, 0, 1, 1], [], []>} : vector<8x32xf32>, vector<32x128xf32>, vector<8x128xf32> -> vector<8x128xf32>
    %115 = arith.addf %113, %114 : vector<8x128xf32>
    %116 = arith.mulf %115, %5 : vector<8x128xf32>
    %117 = math.tanh %116 : vector<8x128xf32>
    %118 = arith.mulf %117, %5 : vector<8x128xf32>
    %119 = arith.addf %118, %8 : vector<8x128xf32>
    %120 = vector.extract_strided_slice %119 {offsets = [0, 0], sizes = [8, 32], strides = [1, 1]} : vector<8x128xf32> to vector<8x32xf32>
    %c96_i32_32 = arith.constant 96 : i32
    %121 = tpu.dynamic_rotate %119 by %c96_i32_32 dim 1 : vector<8x128xf32>, i32 -> vector<8x128xf32>
    %122 = vector.extract_strided_slice %121 {offsets = [0, 0], sizes = [8, 32], strides = [1, 1]} : vector<8x128xf32> to vector<8x32xf32>
    %c64_i32_33 = arith.constant 64 : i32
    %123 = tpu.dynamic_rotate %119 by %c64_i32_33 dim 1 : vector<8x128xf32>, i32 -> vector<8x128xf32>
    %124 = vector.extract_strided_slice %123 {offsets = [0, 0], sizes = [8, 32], strides = [1, 1]} : vector<8x128xf32> to vector<8x32xf32>
    %c32_i32_34 = arith.constant 32 : i32
    %125 = tpu.dynamic_rotate %119 by %c32_i32_34 dim 1 : vector<8x128xf32>, i32 -> vector<8x128xf32>
    %126 = vector.extract_strided_slice %125 {offsets = [0, 0], sizes = [8, 32], strides = [1, 1]} : vector<8x128xf32> to vector<8x32xf32>
    %127 = arith.mulf %122, %110 : vector<8x32xf32>
    %128 = arith.mulf %120, %126 : vector<8x32xf32>
    %129 = arith.addf %127, %128 : vector<8x32xf32>
    %130 = math.tanh %129 : vector<8x32xf32>
    %131 = arith.mulf %124, %130 : vector<8x32xf32>
    %132 = vector.extract_strided_slice %14 {offsets = [48, 0], sizes = [8, 128], strides = [1, 1]} : vector<64x128xf32> to vector<8x128xf32>
    %cst_35 = arith.constant dense<0.000000e+00> : vector<8x128xf32>
    %133 = tpu.matmul %131, %15, %cst_35 {dimension_numbers = #tpu.dot_dimension_numbers<[1], [0], [0], [1], [0, 0, 1, 1], [], []>} : vector<8x32xf32>, vector<32x128xf32>, vector<8x128xf32> -> vector<8x128xf32>
    %134 = arith.addf %132, %133 : vector<8x128xf32>
    %135 = arith.mulf %134, %5 : vector<8x128xf32>
    %136 = math.tanh %135 : vector<8x128xf32>
    %137 = arith.mulf %136, %5 : vector<8x128xf32>
    %138 = arith.addf %137, %8 : vector<8x128xf32>
    %139 = vector.extract_strided_slice %138 {offsets = [0, 0], sizes = [8, 32], strides = [1, 1]} : vector<8x128xf32> to vector<8x32xf32>
    %c96_i32_36 = arith.constant 96 : i32
    %140 = tpu.dynamic_rotate %138 by %c96_i32_36 dim 1 : vector<8x128xf32>, i32 -> vector<8x128xf32>
    %141 = vector.extract_strided_slice %140 {offsets = [0, 0], sizes = [8, 32], strides = [1, 1]} : vector<8x128xf32> to vector<8x32xf32>
    %c64_i32_37 = arith.constant 64 : i32
    %142 = tpu.dynamic_rotate %138 by %c64_i32_37 dim 1 : vector<8x128xf32>, i32 -> vector<8x128xf32>
    %143 = vector.extract_strided_slice %142 {offsets = [0, 0], sizes = [8, 32], strides = [1, 1]} : vector<8x128xf32> to vector<8x32xf32>
    %c32_i32_38 = arith.constant 32 : i32
    %144 = tpu.dynamic_rotate %138 by %c32_i32_38 dim 1 : vector<8x128xf32>, i32 -> vector<8x128xf32>
    %145 = vector.extract_strided_slice %144 {offsets = [0, 0], sizes = [8, 32], strides = [1, 1]} : vector<8x128xf32> to vector<8x32xf32>
    %146 = arith.mulf %141, %129 : vector<8x32xf32>
    %147 = arith.mulf %139, %145 : vector<8x32xf32>
    %148 = arith.addf %146, %147 : vector<8x32xf32>
    %149 = math.tanh %148 : vector<8x32xf32>
    %150 = arith.mulf %143, %149 : vector<8x32xf32>
    %151 = vector.extract_strided_slice %14 {offsets = [56, 0], sizes = [8, 128], strides = [1, 1]} : vector<64x128xf32> to vector<8x128xf32>
    %cst_39 = arith.constant dense<0.000000e+00> : vector<8x128xf32>
    %152 = tpu.matmul %150, %15, %cst_39 {dimension_numbers = #tpu.dot_dimension_numbers<[1], [0], [0], [1], [0, 0, 1, 1], [], []>} : vector<8x32xf32>, vector<32x128xf32>, vector<8x128xf32> -> vector<8x128xf32>
    %153 = arith.addf %151, %152 : vector<8x128xf32>
    %154 = arith.mulf %153, %5 : vector<8x128xf32>
    %155 = math.tanh %154 : vector<8x128xf32>
    %156 = arith.mulf %155, %5 : vector<8x128xf32>
    %157 = arith.addf %156, %8 : vector<8x128xf32>
    %158 = vector.extract_strided_slice %157 {offsets = [0, 0], sizes = [8, 32], strides = [1, 1]} : vector<8x128xf32> to vector<8x32xf32>
    %c96_i32_40 = arith.constant 96 : i32
    %159 = tpu.dynamic_rotate %157 by %c96_i32_40 dim 1 : vector<8x128xf32>, i32 -> vector<8x128xf32>
    %160 = vector.extract_strided_slice %159 {offsets = [0, 0], sizes = [8, 32], strides = [1, 1]} : vector<8x128xf32> to vector<8x32xf32>
    %c64_i32_41 = arith.constant 64 : i32
    %161 = tpu.dynamic_rotate %157 by %c64_i32_41 dim 1 : vector<8x128xf32>, i32 -> vector<8x128xf32>
    %162 = vector.extract_strided_slice %161 {offsets = [0, 0], sizes = [8, 32], strides = [1, 1]} : vector<8x128xf32> to vector<8x32xf32>
    %c32_i32_42 = arith.constant 32 : i32
    %163 = tpu.dynamic_rotate %157 by %c32_i32_42 dim 1 : vector<8x128xf32>, i32 -> vector<8x128xf32>
    %164 = vector.extract_strided_slice %163 {offsets = [0, 0], sizes = [8, 32], strides = [1, 1]} : vector<8x128xf32> to vector<8x32xf32>
    %165 = arith.mulf %160, %148 : vector<8x32xf32>
    %166 = arith.mulf %158, %164 : vector<8x32xf32>
    %167 = arith.addf %165, %166 : vector<8x32xf32>
    %168 = math.tanh %167 : vector<8x32xf32>
    %169 = arith.mulf %162, %168 : vector<8x32xf32>
    %170 = tpu.concatenate %36, %55, %74, %93, %112, %131, %150, %169 in 0 : vector<8x32xf32>, vector<8x32xf32>, vector<8x32xf32>, vector<8x32xf32>, vector<8x32xf32>, vector<8x32xf32>, vector<8x32xf32>, vector<8x32xf32> -> vector<64x32xf32>
    %c0_43 = arith.constant 0 : index
    %c0_44 = arith.constant 0 : index
    %171 = vector.load %arg8[%c0_43, %c0_44] : memref<32x96xf32, #tpu.memory_space<vmem>>, vector<32x96xf32>
    %cst_45 = arith.constant dense<0.000000e+00> : vector<64x96xf32>
    %172 = tpu.matmul %170, %171, %cst_45 {dimension_numbers = #tpu.dot_dimension_numbers<[1], [0], [0], [1], [0, 0, 1, 1], [], []>} : vector<64x32xf32>, vector<32x96xf32>, vector<64x96xf32> -> vector<64x96xf32>
    %c0_46 = arith.constant 0 : index
    %c0_47 = arith.constant 0 : index
    %173 = vector.load %arg9[%c0_46, %c0_47] : memref<1x96xf32, #tpu.memory_space<vmem>>, vector<1x96xf32>
    %174 = vector.broadcast %173 : vector<1x96xf32> to vector<64x96xf32>
    %175 = arith.addf %172, %174 : vector<64x96xf32>
    %176 = vector.extract_strided_slice %175 {offsets = [0, 0], sizes = [64, 32], strides = [1, 1]} : vector<64x96xf32> to vector<64x32xf32>
    %177 = vector.extract_strided_slice %175 {offsets = [0, 32], sizes = [64, 32], strides = [1, 1]} : vector<64x96xf32> to vector<64x32xf32>
    %178 = vector.extract_strided_slice %175 {offsets = [0, 64], sizes = [64, 32], strides = [1, 1]} : vector<64x96xf32> to vector<64x32xf32>
    "tpu.trace_start"() <{level = 10 : i32, message = "qd,kd->qk"}> : () -> ()
    %cst_48 = arith.constant dense<0.000000e+00> : vector<64x64xf32>
    %179 = tpu.matmul %176, %177, %cst_48 {dimension_numbers = #tpu.dot_dimension_numbers<[1], [1], [0], [0], [0, 0, 1, 0], [], []>} : vector<64x32xf32>, vector<64x32xf32>, vector<64x64xf32> -> vector<64x64xf32>
    "tpu.trace_stop"() : () -> ()
    %cst_49 = arith.constant 0.176776692 : f32
    %180 = vector.broadcast %cst_49 : f32 to vector<64x64xf32>
    %181 = arith.mulf %179, %180 : vector<64x64xf32>
    %c0_50 = arith.constant 0 : index
    %c0_51 = arith.constant 0 : index
    %182 = vector.load %arg4[%c0_50, %c0_51] : memref<64x64xf32, #tpu.memory_space<vmem>>, vector<64x64xf32>
    %183 = arith.addf %181, %182 : vector<64x64xf32>
    %c0_52 = arith.constant 0 : index
    %c0_53 = arith.constant 0 : index
    %184 = vector.load %arg3[%c0_52, %c0_53] : memref<1x64xf32, #tpu.memory_space<vmem>>, vector<1x64xf32>
    %cst_54 = arith.constant 1.000000e+24 : f32
    %185 = vector.broadcast %cst_54 : f32 to vector<1x64xf32>
    %186 = arith.mulf %185, %184 : vector<1x64xf32>
    %187 = vector.broadcast %186 : vector<1x64xf32> to vector<64x64xf32>
    %188 = arith.subf %183, %187 : vector<64x64xf32>
    %cst_55 = arith.constant dense<0xFF800000> : vector<64xf32>
    %189 = vector.multi_reduction <maximumf>, %188, %cst_55 [1] : vector<64x64xf32> to vector<64xf32>
    %cst_56 = arith.constant 0xFF800000 : f32
    %190 = vector.broadcast %cst_56 : f32 to vector<64xf32>
    %191 = arith.maximumf %190, %189 : vector<64xf32>
    %192 = vector.shape_cast %191 : vector<64xf32> to vector<64x1xf32>
    %193 = vector.broadcast %192 : vector<64x1xf32> to vector<64x64xf32>
    %194 = arith.subf %188, %193 : vector<64x64xf32>
    %195 = math.exp %194 : vector<64x64xf32>
    %cst_57 = arith.constant dense<0.000000e+00> : vector<64xf32>
    %196 = vector.multi_reduction <add>, %195, %cst_57 [1] : vector<64x64xf32> to vector<64xf32>
    %197 = vector.shape_cast %196 : vector<64xf32> to vector<64x1xf32>
    %198 = vector.broadcast %197 : vector<64x1xf32> to vector<64x64xf32>
    %199 = arith.divf %195, %198 : vector<64x64xf32>
    %cst_58 = arith.constant dense<0.000000e+00> : vector<64x32xf32>
    %200 = tpu.matmul %199, %178, %cst_58 {dimension_numbers = #tpu.dot_dimension_numbers<[1], [0], [0], [1], [0, 0, 1, 1], [], []>} : vector<64x64xf32>, vector<64x32xf32>, vector<64x32xf32> -> vector<64x32xf32>
    %c0_59 = arith.constant 0 : index
    %c0_60 = arith.constant 0 : index
    %201 = vector.load %arg10[%c0_59, %c0_60] : memref<32x32xf32, #tpu.memory_space<vmem>>, vector<32x32xf32>
    %cst_61 = arith.constant dense<0.000000e+00> : vector<64x32xf32>
    %202 = tpu.matmul %200, %201, %cst_61 {dimension_numbers = #tpu.dot_dimension_numbers<[1], [0], [0], [1], [0, 0, 1, 1], [], []>} : vector<64x32xf32>, vector<32x32xf32>, vector<64x32xf32> -> vector<64x32xf32>
    %c0_62 = arith.constant 0 : index
    %c0_63 = arith.constant 0 : index
    %203 = vector.load %arg11[%c0_62, %c0_63] : memref<1x32xf32, #tpu.memory_space<vmem>>, vector<1x32xf32>
    %204 = vector.broadcast %203 : vector<1x32xf32> to vector<64x32xf32>
    %205 = arith.addf %202, %204 : vector<64x32xf32>
    %c0_64 = arith.constant 0 : index
    %c0_65 = arith.constant 0 : index
    %206 = vector.load %arg12[%c0_64, %c0_65] : memref<32x128xf32, #tpu.memory_space<vmem>>, vector<32x128xf32>
    %cst_66 = arith.constant dense<0.000000e+00> : vector<64x128xf32>
    %207 = tpu.matmul %205, %206, %cst_66 {dimension_numbers = #tpu.dot_dimension_numbers<[1], [0], [0], [1], [0, 0, 1, 1], [], []>} : vector<64x32xf32>, vector<32x128xf32>, vector<64x128xf32> -> vector<64x128xf32>
    %c0_67 = arith.constant 0 : index
    %c0_68 = arith.constant 0 : index
    %208 = vector.load %arg14[%c0_67, %c0_68] : memref<1x128xf32, #tpu.memory_space<vmem>>, vector<1x128xf32>
    %209 = vector.broadcast %208 : vector<1x128xf32> to vector<64x128xf32>
    %210 = arith.addf %207, %209 : vector<64x128xf32>
    %c0_69 = arith.constant 0 : index
    %c0_70 = arith.constant 0 : index
    %211 = vector.load %arg13[%c0_69, %c0_70] : memref<32x128xf32, #tpu.memory_space<vmem>>, vector<32x128xf32>
    %c0_71 = arith.constant 0 : index
    %c0_72 = arith.constant 0 : index
    %212 = vector.load %arg15[%c0_71, %c0_72] : memref<32x128xf32, #tpu.memory_space<vmem>>, vector<32x128xf32>
    %c0_73 = arith.constant 0 : index
    %c0_74 = arith.constant 0 : index
    %213 = vector.load %arg16[%c0_73, %c0_74] : memref<32x128xf32, #tpu.memory_space<vmem>>, vector<32x128xf32>
    %c0_75 = arith.constant 0 : index
    %c0_76 = arith.constant 0 : index
    %214 = vector.load %arg17[%c0_75, %c0_76] : memref<1x128xf32, #tpu.memory_space<vmem>>, vector<1x128xf32>
    %cst_77 = arith.constant 0.000000e+00 : f32
    %215 = vector.broadcast %cst_77 : f32 to vector<8x32xf32>
    %cst_78 = arith.constant 0.000000e+00 : f32
    %216 = vector.broadcast %cst_78 : f32 to vector<8x32xf32>
    %cst_79 = arith.constant 0.000000e+00 : f32
    %217 = vector.broadcast %cst_79 : f32 to vector<8x32xf32>
    %cst_80 = arith.constant 0.000000e+00 : f32
    %218 = vector.broadcast %cst_80 : f32 to vector<8x32xf32>
    %219 = vector.extract_strided_slice %210 {offsets = [0, 0], sizes = [8, 128], strides = [1, 1]} : vector<64x128xf32> to vector<8x128xf32>
    %cst_81 = arith.constant dense<0.000000e+00> : vector<8x128xf32>
    %220 = tpu.matmul %215, %211, %cst_81 {dimension_numbers = #tpu.dot_dimension_numbers<[1], [0], [0], [1], [0, 0, 1, 1], [], []>} : vector<8x32xf32>, vector<32x128xf32>, vector<8x128xf32> -> vector<8x128xf32>
    %221 = arith.addf %219, %220 : vector<8x128xf32>
    %222 = arith.mulf %221, %5 : vector<8x128xf32>
    %223 = math.tanh %222 : vector<8x128xf32>
    %224 = arith.mulf %223, %5 : vector<8x128xf32>
    %225 = arith.addf %224, %8 : vector<8x128xf32>
    %226 = vector.extract_strided_slice %225 {offsets = [0, 0], sizes = [8, 32], strides = [1, 1]} : vector<8x128xf32> to vector<8x32xf32>
    %c96_i32_82 = arith.constant 96 : i32
    %227 = tpu.dynamic_rotate %225 by %c96_i32_82 dim 1 : vector<8x128xf32>, i32 -> vector<8x128xf32>
    %228 = vector.extract_strided_slice %227 {offsets = [0, 0], sizes = [8, 32], strides = [1, 1]} : vector<8x128xf32> to vector<8x32xf32>
    %c64_i32_83 = arith.constant 64 : i32
    %229 = tpu.dynamic_rotate %225 by %c64_i32_83 dim 1 : vector<8x128xf32>, i32 -> vector<8x128xf32>
    %230 = vector.extract_strided_slice %229 {offsets = [0, 0], sizes = [8, 32], strides = [1, 1]} : vector<8x128xf32> to vector<8x32xf32>
    %c32_i32_84 = arith.constant 32 : i32
    %231 = tpu.dynamic_rotate %225 by %c32_i32_84 dim 1 : vector<8x128xf32>, i32 -> vector<8x128xf32>
    %232 = vector.extract_strided_slice %231 {offsets = [0, 0], sizes = [8, 32], strides = [1, 1]} : vector<8x128xf32> to vector<8x32xf32>
    %233 = arith.mulf %228, %216 : vector<8x32xf32>
    %234 = arith.mulf %226, %232 : vector<8x32xf32>
    %235 = arith.addf %233, %234 : vector<8x32xf32>
    %236 = math.tanh %235 : vector<8x32xf32>
    %237 = arith.mulf %230, %236 : vector<8x32xf32>
    %cst_85 = arith.constant dense<0.000000e+00> : vector<8x128xf32>
    %238 = tpu.matmul %237, %212, %cst_85 {dimension_numbers = #tpu.dot_dimension_numbers<[1], [0], [0], [1], [0, 0, 1, 1], [], []>} : vector<8x32xf32>, vector<32x128xf32>, vector<8x128xf32> -> vector<8x128xf32>
    %cst_86 = arith.constant dense<0.000000e+00> : vector<8x128xf32>
    %239 = tpu.matmul %217, %213, %cst_86 {dimension_numbers = #tpu.dot_dimension_numbers<[1], [0], [0], [1], [0, 0, 1, 1], [], []>} : vector<8x32xf32>, vector<32x128xf32>, vector<8x128xf32> -> vector<8x128xf32>
    %240 = arith.addf %238, %239 : vector<8x128xf32>
    %241 = vector.broadcast %214 : vector<1x128xf32> to vector<8x128xf32>
    %242 = arith.addf %240, %241 : vector<8x128xf32>
    %243 = arith.mulf %242, %5 : vector<8x128xf32>
    %244 = math.tanh %243 : vector<8x128xf32>
    %245 = arith.mulf %244, %5 : vector<8x128xf32>
    %246 = arith.addf %245, %8 : vector<8x128xf32>
    %247 = vector.extract_strided_slice %246 {offsets = [0, 0], sizes = [8, 32], strides = [1, 1]} : vector<8x128xf32> to vector<8x32xf32>
    %c96_i32_87 = arith.constant 96 : i32
    %248 = tpu.dynamic_rotate %246 by %c96_i32_87 dim 1 : vector<8x128xf32>, i32 -> vector<8x128xf32>
    %249 = vector.extract_strided_slice %248 {offsets = [0, 0], sizes = [8, 32], strides = [1, 1]} : vector<8x128xf32> to vector<8x32xf32>
    %c64_i32_88 = arith.constant 64 : i32
    %250 = tpu.dynamic_rotate %246 by %c64_i32_88 dim 1 : vector<8x128xf32>, i32 -> vector<8x128xf32>
    %251 = vector.extract_strided_slice %250 {offsets = [0, 0], sizes = [8, 32], strides = [1, 1]} : vector<8x128xf32> to vector<8x32xf32>
    %c32_i32_89 = arith.constant 32 : i32
    %252 = tpu.dynamic_rotate %246 by %c32_i32_89 dim 1 : vector<8x128xf32>, i32 -> vector<8x128xf32>
    %253 = vector.extract_strided_slice %252 {offsets = [0, 0], sizes = [8, 32], strides = [1, 1]} : vector<8x128xf32> to vector<8x32xf32>
    %254 = arith.mulf %249, %218 : vector<8x32xf32>
    %255 = arith.mulf %247, %253 : vector<8x32xf32>
    %256 = arith.addf %254, %255 : vector<8x32xf32>
    %257 = math.tanh %256 : vector<8x32xf32>
    %258 = arith.mulf %251, %257 : vector<8x32xf32>
    %259 = vector.extract_strided_slice %210 {offsets = [8, 0], sizes = [8, 128], strides = [1, 1]} : vector<64x128xf32> to vector<8x128xf32>
    %cst_90 = arith.constant dense<0.000000e+00> : vector<8x128xf32>
    %260 = tpu.matmul %237, %211, %cst_90 {dimension_numbers = #tpu.dot_dimension_numbers<[1], [0], [0], [1], [0, 0, 1, 1], [], []>} : vector<8x32xf32>, vector<32x128xf32>, vector<8x128xf32> -> vector<8x128xf32>
    %261 = arith.addf %259, %260 : vector<8x128xf32>
    %262 = arith.mulf %261, %5 : vector<8x128xf32>
    %263 = math.tanh %262 : vector<8x128xf32>
    %264 = arith.mulf %263, %5 : vector<8x128xf32>
    %265 = arith.addf %264, %8 : vector<8x128xf32>
    %266 = vector.extract_strided_slice %265 {offsets = [0, 0], sizes = [8, 32], strides = [1, 1]} : vector<8x128xf32> to vector<8x32xf32>
    %c96_i32_91 = arith.constant 96 : i32
    %267 = tpu.dynamic_rotate %265 by %c96_i32_91 dim 1 : vector<8x128xf32>, i32 -> vector<8x128xf32>
    %268 = vector.extract_strided_slice %267 {offsets = [0, 0], sizes = [8, 32], strides = [1, 1]} : vector<8x128xf32> to vector<8x32xf32>
    %c64_i32_92 = arith.constant 64 : i32
    %269 = tpu.dynamic_rotate %265 by %c64_i32_92 dim 1 : vector<8x128xf32>, i32 -> vector<8x128xf32>
    %270 = vector.extract_strided_slice %269 {offsets = [0, 0], sizes = [8, 32], strides = [1, 1]} : vector<8x128xf32> to vector<8x32xf32>
    %c32_i32_93 = arith.constant 32 : i32
    %271 = tpu.dynamic_rotate %265 by %c32_i32_93 dim 1 : vector<8x128xf32>, i32 -> vector<8x128xf32>
    %272 = vector.extract_strided_slice %271 {offsets = [0, 0], sizes = [8, 32], strides = [1, 1]} : vector<8x128xf32> to vector<8x32xf32>
    %273 = arith.mulf %268, %235 : vector<8x32xf32>
    %274 = arith.mulf %266, %272 : vector<8x32xf32>
    %275 = arith.addf %273, %274 : vector<8x32xf32>
    %276 = math.tanh %275 : vector<8x32xf32>
    %277 = arith.mulf %270, %276 : vector<8x32xf32>
    %cst_94 = arith.constant dense<0.000000e+00> : vector<8x128xf32>
    %278 = tpu.matmul %277, %212, %cst_94 {dimension_numbers = #tpu.dot_dimension_numbers<[1], [0], [0], [1], [0, 0, 1, 1], [], []>} : vector<8x32xf32>, vector<32x128xf32>, vector<8x128xf32> -> vector<8x128xf32>
    %cst_95 = arith.constant dense<0.000000e+00> : vector<8x128xf32>
    %279 = tpu.matmul %258, %213, %cst_95 {dimension_numbers = #tpu.dot_dimension_numbers<[1], [0], [0], [1], [0, 0, 1, 1], [], []>} : vector<8x32xf32>, vector<32x128xf32>, vector<8x128xf32> -> vector<8x128xf32>
    %280 = arith.addf %278, %279 : vector<8x128xf32>
    %281 = vector.broadcast %214 : vector<1x128xf32> to vector<8x128xf32>
    %282 = arith.addf %280, %281 : vector<8x128xf32>
    %283 = arith.mulf %282, %5 : vector<8x128xf32>
    %284 = math.tanh %283 : vector<8x128xf32>
    %285 = arith.mulf %284, %5 : vector<8x128xf32>
    %286 = arith.addf %285, %8 : vector<8x128xf32>
    %287 = vector.extract_strided_slice %286 {offsets = [0, 0], sizes = [8, 32], strides = [1, 1]} : vector<8x128xf32> to vector<8x32xf32>
    %c96_i32_96 = arith.constant 96 : i32
    %288 = tpu.dynamic_rotate %286 by %c96_i32_96 dim 1 : vector<8x128xf32>, i32 -> vector<8x128xf32>
    %289 = vector.extract_strided_slice %288 {offsets = [0, 0], sizes = [8, 32], strides = [1, 1]} : vector<8x128xf32> to vector<8x32xf32>
    %c64_i32_97 = arith.constant 64 : i32
    %290 = tpu.dynamic_rotate %286 by %c64_i32_97 dim 1 : vector<8x128xf32>, i32 -> vector<8x128xf32>
    %291 = vector.extract_strided_slice %290 {offsets = [0, 0], sizes = [8, 32], strides = [1, 1]} : vector<8x128xf32> to vector<8x32xf32>
    %c32_i32_98 = arith.constant 32 : i32
    %292 = tpu.dynamic_rotate %286 by %c32_i32_98 dim 1 : vector<8x128xf32>, i32 -> vector<8x128xf32>
    %293 = vector.extract_strided_slice %292 {offsets = [0, 0], sizes = [8, 32], strides = [1, 1]} : vector<8x128xf32> to vector<8x32xf32>
    %294 = arith.mulf %289, %256 : vector<8x32xf32>
    %295 = arith.mulf %287, %293 : vector<8x32xf32>
    %296 = arith.addf %294, %295 : vector<8x32xf32>
    %297 = math.tanh %296 : vector<8x32xf32>
    %298 = arith.mulf %291, %297 : vector<8x32xf32>
    %299 = vector.extract_strided_slice %210 {offsets = [16, 0], sizes = [8, 128], strides = [1, 1]} : vector<64x128xf32> to vector<8x128xf32>
    %cst_99 = arith.constant dense<0.000000e+00> : vector<8x128xf32>
    %300 = tpu.matmul %277, %211, %cst_99 {dimension_numbers = #tpu.dot_dimension_numbers<[1], [0], [0], [1], [0, 0, 1, 1], [], []>} : vector<8x32xf32>, vector<32x128xf32>, vector<8x128xf32> -> vector<8x128xf32>
    %301 = arith.addf %299, %300 : vector<8x128xf32>
    %302 = arith.mulf %301, %5 : vector<8x128xf32>
    %303 = math.tanh %302 : vector<8x128xf32>
    %304 = arith.mulf %303, %5 : vector<8x128xf32>
    %305 = arith.addf %304, %8 : vector<8x128xf32>
    %306 = vector.extract_strided_slice %305 {offsets = [0, 0], sizes = [8, 32], strides = [1, 1]} : vector<8x128xf32> to vector<8x32xf32>
    %c96_i32_100 = arith.constant 96 : i32
    %307 = tpu.dynamic_rotate %305 by %c96_i32_100 dim 1 : vector<8x128xf32>, i32 -> vector<8x128xf32>
    %308 = vector.extract_strided_slice %307 {offsets = [0, 0], sizes = [8, 32], strides = [1, 1]} : vector<8x128xf32> to vector<8x32xf32>
    %c64_i32_101 = arith.constant 64 : i32
    %309 = tpu.dynamic_rotate %305 by %c64_i32_101 dim 1 : vector<8x128xf32>, i32 -> vector<8x128xf32>
    %310 = vector.extract_strided_slice %309 {offsets = [0, 0], sizes = [8, 32], strides = [1, 1]} : vector<8x128xf32> to vector<8x32xf32>
    %c32_i32_102 = arith.constant 32 : i32
    %311 = tpu.dynamic_rotate %305 by %c32_i32_102 dim 1 : vector<8x128xf32>, i32 -> vector<8x128xf32>
    %312 = vector.extract_strided_slice %311 {offsets = [0, 0], sizes = [8, 32], strides = [1, 1]} : vector<8x128xf32> to vector<8x32xf32>
    %313 = arith.mulf %308, %275 : vector<8x32xf32>
    %314 = arith.mulf %306, %312 : vector<8x32xf32>
    %315 = arith.addf %313, %314 : vector<8x32xf32>
    %316 = math.tanh %315 : vector<8x32xf32>
    %317 = arith.mulf %310, %316 : vector<8x32xf32>
    %cst_103 = arith.constant dense<0.000000e+00> : vector<8x128xf32>
    %318 = tpu.matmul %317, %212, %cst_103 {dimension_numbers = #tpu.dot_dimension_numbers<[1], [0], [0], [1], [0, 0, 1, 1], [], []>} : vector<8x32xf32>, vector<32x128xf32>, vector<8x128xf32> -> vector<8x128xf32>
    %cst_104 = arith.constant dense<0.000000e+00> : vector<8x128xf32>
    %319 = tpu.matmul %298, %213, %cst_104 {dimension_numbers = #tpu.dot_dimension_numbers<[1], [0], [0], [1], [0, 0, 1, 1], [], []>} : vector<8x32xf32>, vector<32x128xf32>, vector<8x128xf32> -> vector<8x128xf32>
    %320 = arith.addf %318, %319 : vector<8x128xf32>
    %321 = vector.broadcast %214 : vector<1x128xf32> to vector<8x128xf32>
    %322 = arith.addf %320, %321 : vector<8x128xf32>
    %323 = arith.mulf %322, %5 : vector<8x128xf32>
    %324 = math.tanh %323 : vector<8x128xf32>
    %325 = arith.mulf %324, %5 : vector<8x128xf32>
    %326 = arith.addf %325, %8 : vector<8x128xf32>
    %327 = vector.extract_strided_slice %326 {offsets = [0, 0], sizes = [8, 32], strides = [1, 1]} : vector<8x128xf32> to vector<8x32xf32>
    %c96_i32_105 = arith.constant 96 : i32
    %328 = tpu.dynamic_rotate %326 by %c96_i32_105 dim 1 : vector<8x128xf32>, i32 -> vector<8x128xf32>
    %329 = vector.extract_strided_slice %328 {offsets = [0, 0], sizes = [8, 32], strides = [1, 1]} : vector<8x128xf32> to vector<8x32xf32>
    %c64_i32_106 = arith.constant 64 : i32
    %330 = tpu.dynamic_rotate %326 by %c64_i32_106 dim 1 : vector<8x128xf32>, i32 -> vector<8x128xf32>
    %331 = vector.extract_strided_slice %330 {offsets = [0, 0], sizes = [8, 32], strides = [1, 1]} : vector<8x128xf32> to vector<8x32xf32>
    %c32_i32_107 = arith.constant 32 : i32
    %332 = tpu.dynamic_rotate %326 by %c32_i32_107 dim 1 : vector<8x128xf32>, i32 -> vector<8x128xf32>
    %333 = vector.extract_strided_slice %332 {offsets = [0, 0], sizes = [8, 32], strides = [1, 1]} : vector<8x128xf32> to vector<8x32xf32>
    %334 = arith.mulf %329, %296 : vector<8x32xf32>
    %335 = arith.mulf %327, %333 : vector<8x32xf32>
    %336 = arith.addf %334, %335 : vector<8x32xf32>
    %337 = math.tanh %336 : vector<8x32xf32>
    %338 = arith.mulf %331, %337 : vector<8x32xf32>
    %339 = vector.extract_strided_slice %210 {offsets = [24, 0], sizes = [8, 128], strides = [1, 1]} : vector<64x128xf32> to vector<8x128xf32>
    %cst_108 = arith.constant dense<0.000000e+00> : vector<8x128xf32>
    %340 = tpu.matmul %317, %211, %cst_108 {dimension_numbers = #tpu.dot_dimension_numbers<[1], [0], [0], [1], [0, 0, 1, 1], [], []>} : vector<8x32xf32>, vector<32x128xf32>, vector<8x128xf32> -> vector<8x128xf32>
    %341 = arith.addf %339, %340 : vector<8x128xf32>
    %342 = arith.mulf %341, %5 : vector<8x128xf32>
    %343 = math.tanh %342 : vector<8x128xf32>
    %344 = arith.mulf %343, %5 : vector<8x128xf32>
    %345 = arith.addf %344, %8 : vector<8x128xf32>
    %346 = vector.extract_strided_slice %345 {offsets = [0, 0], sizes = [8, 32], strides = [1, 1]} : vector<8x128xf32> to vector<8x32xf32>
    %c96_i32_109 = arith.constant 96 : i32
    %347 = tpu.dynamic_rotate %345 by %c96_i32_109 dim 1 : vector<8x128xf32>, i32 -> vector<8x128xf32>
    %348 = vector.extract_strided_slice %347 {offsets = [0, 0], sizes = [8, 32], strides = [1, 1]} : vector<8x128xf32> to vector<8x32xf32>
    %c64_i32_110 = arith.constant 64 : i32
    %349 = tpu.dynamic_rotate %345 by %c64_i32_110 dim 1 : vector<8x128xf32>, i32 -> vector<8x128xf32>
    %350 = vector.extract_strided_slice %349 {offsets = [0, 0], sizes = [8, 32], strides = [1, 1]} : vector<8x128xf32> to vector<8x32xf32>
    %c32_i32_111 = arith.constant 32 : i32
    %351 = tpu.dynamic_rotate %345 by %c32_i32_111 dim 1 : vector<8x128xf32>, i32 -> vector<8x128xf32>
    %352 = vector.extract_strided_slice %351 {offsets = [0, 0], sizes = [8, 32], strides = [1, 1]} : vector<8x128xf32> to vector<8x32xf32>
    %353 = arith.mulf %348, %315 : vector<8x32xf32>
    %354 = arith.mulf %346, %352 : vector<8x32xf32>
    %355 = arith.addf %353, %354 : vector<8x32xf32>
    %356 = math.tanh %355 : vector<8x32xf32>
    %357 = arith.mulf %350, %356 : vector<8x32xf32>
    %cst_112 = arith.constant dense<0.000000e+00> : vector<8x128xf32>
    %358 = tpu.matmul %357, %212, %cst_112 {dimension_numbers = #tpu.dot_dimension_numbers<[1], [0], [0], [1], [0, 0, 1, 1], [], []>} : vector<8x32xf32>, vector<32x128xf32>, vector<8x128xf32> -> vector<8x128xf32>
    %cst_113 = arith.constant dense<0.000000e+00> : vector<8x128xf32>
    %359 = tpu.matmul %338, %213, %cst_113 {dimension_numbers = #tpu.dot_dimension_numbers<[1], [0], [0], [1], [0, 0, 1, 1], [], []>} : vector<8x32xf32>, vector<32x128xf32>, vector<8x128xf32> -> vector<8x128xf32>
    %360 = arith.addf %358, %359 : vector<8x128xf32>
    %361 = vector.broadcast %214 : vector<1x128xf32> to vector<8x128xf32>
    %362 = arith.addf %360, %361 : vector<8x128xf32>
    %363 = arith.mulf %362, %5 : vector<8x128xf32>
    %364 = math.tanh %363 : vector<8x128xf32>
    %365 = arith.mulf %364, %5 : vector<8x128xf32>
    %366 = arith.addf %365, %8 : vector<8x128xf32>
    %367 = vector.extract_strided_slice %366 {offsets = [0, 0], sizes = [8, 32], strides = [1, 1]} : vector<8x128xf32> to vector<8x32xf32>
    %c96_i32_114 = arith.constant 96 : i32
    %368 = tpu.dynamic_rotate %366 by %c96_i32_114 dim 1 : vector<8x128xf32>, i32 -> vector<8x128xf32>
    %369 = vector.extract_strided_slice %368 {offsets = [0, 0], sizes = [8, 32], strides = [1, 1]} : vector<8x128xf32> to vector<8x32xf32>
    %c64_i32_115 = arith.constant 64 : i32
    %370 = tpu.dynamic_rotate %366 by %c64_i32_115 dim 1 : vector<8x128xf32>, i32 -> vector<8x128xf32>
    %371 = vector.extract_strided_slice %370 {offsets = [0, 0], sizes = [8, 32], strides = [1, 1]} : vector<8x128xf32> to vector<8x32xf32>
    %c32_i32_116 = arith.constant 32 : i32
    %372 = tpu.dynamic_rotate %366 by %c32_i32_116 dim 1 : vector<8x128xf32>, i32 -> vector<8x128xf32>
    %373 = vector.extract_strided_slice %372 {offsets = [0, 0], sizes = [8, 32], strides = [1, 1]} : vector<8x128xf32> to vector<8x32xf32>
    %374 = arith.mulf %369, %336 : vector<8x32xf32>
    %375 = arith.mulf %367, %373 : vector<8x32xf32>
    %376 = arith.addf %374, %375 : vector<8x32xf32>
    %377 = math.tanh %376 : vector<8x32xf32>
    %378 = arith.mulf %371, %377 : vector<8x32xf32>
    %379 = vector.extract_strided_slice %210 {offsets = [32, 0], sizes = [8, 128], strides = [1, 1]} : vector<64x128xf32> to vector<8x128xf32>
    %cst_117 = arith.constant dense<0.000000e+00> : vector<8x128xf32>
    %380 = tpu.matmul %357, %211, %cst_117 {dimension_numbers = #tpu.dot_dimension_numbers<[1], [0], [0], [1], [0, 0, 1, 1], [], []>} : vector<8x32xf32>, vector<32x128xf32>, vector<8x128xf32> -> vector<8x128xf32>
    %381 = arith.addf %379, %380 : vector<8x128xf32>
    %382 = arith.mulf %381, %5 : vector<8x128xf32>
    %383 = math.tanh %382 : vector<8x128xf32>
    %384 = arith.mulf %383, %5 : vector<8x128xf32>
    %385 = arith.addf %384, %8 : vector<8x128xf32>
    %386 = vector.extract_strided_slice %385 {offsets = [0, 0], sizes = [8, 32], strides = [1, 1]} : vector<8x128xf32> to vector<8x32xf32>
    %c96_i32_118 = arith.constant 96 : i32
    %387 = tpu.dynamic_rotate %385 by %c96_i32_118 dim 1 : vector<8x128xf32>, i32 -> vector<8x128xf32>
    %388 = vector.extract_strided_slice %387 {offsets = [0, 0], sizes = [8, 32], strides = [1, 1]} : vector<8x128xf32> to vector<8x32xf32>
    %c64_i32_119 = arith.constant 64 : i32
    %389 = tpu.dynamic_rotate %385 by %c64_i32_119 dim 1 : vector<8x128xf32>, i32 -> vector<8x128xf32>
    %390 = vector.extract_strided_slice %389 {offsets = [0, 0], sizes = [8, 32], strides = [1, 1]} : vector<8x128xf32> to vector<8x32xf32>
    %c32_i32_120 = arith.constant 32 : i32
    %391 = tpu.dynamic_rotate %385 by %c32_i32_120 dim 1 : vector<8x128xf32>, i32 -> vector<8x128xf32>
    %392 = vector.extract_strided_slice %391 {offsets = [0, 0], sizes = [8, 32], strides = [1, 1]} : vector<8x128xf32> to vector<8x32xf32>
    %393 = arith.mulf %388, %355 : vector<8x32xf32>
    %394 = arith.mulf %386, %392 : vector<8x32xf32>
    %395 = arith.addf %393, %394 : vector<8x32xf32>
    %396 = math.tanh %395 : vector<8x32xf32>
    %397 = arith.mulf %390, %396 : vector<8x32xf32>
    %cst_121 = arith.constant dense<0.000000e+00> : vector<8x128xf32>
    %398 = tpu.matmul %397, %212, %cst_121 {dimension_numbers = #tpu.dot_dimension_numbers<[1], [0], [0], [1], [0, 0, 1, 1], [], []>} : vector<8x32xf32>, vector<32x128xf32>, vector<8x128xf32> -> vector<8x128xf32>
    %cst_122 = arith.constant dense<0.000000e+00> : vector<8x128xf32>
    %399 = tpu.matmul %378, %213, %cst_122 {dimension_numbers = #tpu.dot_dimension_numbers<[1], [0], [0], [1], [0, 0, 1, 1], [], []>} : vector<8x32xf32>, vector<32x128xf32>, vector<8x128xf32> -> vector<8x128xf32>
    %400 = arith.addf %398, %399 : vector<8x128xf32>
    %401 = vector.broadcast %214 : vector<1x128xf32> to vector<8x128xf32>
    %402 = arith.addf %400, %401 : vector<8x128xf32>
    %403 = arith.mulf %402, %5 : vector<8x128xf32>
    %404 = math.tanh %403 : vector<8x128xf32>
    %405 = arith.mulf %404, %5 : vector<8x128xf32>
    %406 = arith.addf %405, %8 : vector<8x128xf32>
    %407 = vector.extract_strided_slice %406 {offsets = [0, 0], sizes = [8, 32], strides = [1, 1]} : vector<8x128xf32> to vector<8x32xf32>
    %c96_i32_123 = arith.constant 96 : i32
    %408 = tpu.dynamic_rotate %406 by %c96_i32_123 dim 1 : vector<8x128xf32>, i32 -> vector<8x128xf32>
    %409 = vector.extract_strided_slice %408 {offsets = [0, 0], sizes = [8, 32], strides = [1, 1]} : vector<8x128xf32> to vector<8x32xf32>
    %c64_i32_124 = arith.constant 64 : i32
    %410 = tpu.dynamic_rotate %406 by %c64_i32_124 dim 1 : vector<8x128xf32>, i32 -> vector<8x128xf32>
    %411 = vector.extract_strided_slice %410 {offsets = [0, 0], sizes = [8, 32], strides = [1, 1]} : vector<8x128xf32> to vector<8x32xf32>
    %c32_i32_125 = arith.constant 32 : i32
    %412 = tpu.dynamic_rotate %406 by %c32_i32_125 dim 1 : vector<8x128xf32>, i32 -> vector<8x128xf32>
    %413 = vector.extract_strided_slice %412 {offsets = [0, 0], sizes = [8, 32], strides = [1, 1]} : vector<8x128xf32> to vector<8x32xf32>
    %414 = arith.mulf %409, %376 : vector<8x32xf32>
    %415 = arith.mulf %407, %413 : vector<8x32xf32>
    %416 = arith.addf %414, %415 : vector<8x32xf32>
    %417 = math.tanh %416 : vector<8x32xf32>
    %418 = arith.mulf %411, %417 : vector<8x32xf32>
    %419 = vector.extract_strided_slice %210 {offsets = [40, 0], sizes = [8, 128], strides = [1, 1]} : vector<64x128xf32> to vector<8x128xf32>
    %cst_126 = arith.constant dense<0.000000e+00> : vector<8x128xf32>
    %420 = tpu.matmul %397, %211, %cst_126 {dimension_numbers = #tpu.dot_dimension_numbers<[1], [0], [0], [1], [0, 0, 1, 1], [], []>} : vector<8x32xf32>, vector<32x128xf32>, vector<8x128xf32> -> vector<8x128xf32>
    %421 = arith.addf %419, %420 : vector<8x128xf32>
    %422 = arith.mulf %421, %5 : vector<8x128xf32>
    %423 = math.tanh %422 : vector<8x128xf32>
    %424 = arith.mulf %423, %5 : vector<8x128xf32>
    %425 = arith.addf %424, %8 : vector<8x128xf32>
    %426 = vector.extract_strided_slice %425 {offsets = [0, 0], sizes = [8, 32], strides = [1, 1]} : vector<8x128xf32> to vector<8x32xf32>
    %c96_i32_127 = arith.constant 96 : i32
    %427 = tpu.dynamic_rotate %425 by %c96_i32_127 dim 1 : vector<8x128xf32>, i32 -> vector<8x128xf32>
    %428 = vector.extract_strided_slice %427 {offsets = [0, 0], sizes = [8, 32], strides = [1, 1]} : vector<8x128xf32> to vector<8x32xf32>
    %c64_i32_128 = arith.constant 64 : i32
    %429 = tpu.dynamic_rotate %425 by %c64_i32_128 dim 1 : vector<8x128xf32>, i32 -> vector<8x128xf32>
    %430 = vector.extract_strided_slice %429 {offsets = [0, 0], sizes = [8, 32], strides = [1, 1]} : vector<8x128xf32> to vector<8x32xf32>
    %c32_i32_129 = arith.constant 32 : i32
    %431 = tpu.dynamic_rotate %425 by %c32_i32_129 dim 1 : vector<8x128xf32>, i32 -> vector<8x128xf32>
    %432 = vector.extract_strided_slice %431 {offsets = [0, 0], sizes = [8, 32], strides = [1, 1]} : vector<8x128xf32> to vector<8x32xf32>
    %433 = arith.mulf %428, %395 : vector<8x32xf32>
    %434 = arith.mulf %426, %432 : vector<8x32xf32>
    %435 = arith.addf %433, %434 : vector<8x32xf32>
    %436 = math.tanh %435 : vector<8x32xf32>
    %437 = arith.mulf %430, %436 : vector<8x32xf32>
    %cst_130 = arith.constant dense<0.000000e+00> : vector<8x128xf32>
    %438 = tpu.matmul %437, %212, %cst_130 {dimension_numbers = #tpu.dot_dimension_numbers<[1], [0], [0], [1], [0, 0, 1, 1], [], []>} : vector<8x32xf32>, vector<32x128xf32>, vector<8x128xf32> -> vector<8x128xf32>
    %cst_131 = arith.constant dense<0.000000e+00> : vector<8x128xf32>
    %439 = tpu.matmul %418, %213, %cst_131 {dimension_numbers = #tpu.dot_dimension_numbers<[1], [0], [0], [1], [0, 0, 1, 1], [], []>} : vector<8x32xf32>, vector<32x128xf32>, vector<8x128xf32> -> vector<8x128xf32>
    %440 = arith.addf %438, %439 : vector<8x128xf32>
    %441 = vector.broadcast %214 : vector<1x128xf32> to vector<8x128xf32>
    %442 = arith.addf %440, %441 : vector<8x128xf32>
    %443 = arith.mulf %442, %5 : vector<8x128xf32>
    %444 = math.tanh %443 : vector<8x128xf32>
    %445 = arith.mulf %444, %5 : vector<8x128xf32>
    %446 = arith.addf %445, %8 : vector<8x128xf32>
    %447 = vector.extract_strided_slice %446 {offsets = [0, 0], sizes = [8, 32], strides = [1, 1]} : vector<8x128xf32> to vector<8x32xf32>
    %c96_i32_132 = arith.constant 96 : i32
    %448 = tpu.dynamic_rotate %446 by %c96_i32_132 dim 1 : vector<8x128xf32>, i32 -> vector<8x128xf32>
    %449 = vector.extract_strided_slice %448 {offsets = [0, 0], sizes = [8, 32], strides = [1, 1]} : vector<8x128xf32> to vector<8x32xf32>
    %c64_i32_133 = arith.constant 64 : i32
    %450 = tpu.dynamic_rotate %446 by %c64_i32_133 dim 1 : vector<8x128xf32>, i32 -> vector<8x128xf32>
    %451 = vector.extract_strided_slice %450 {offsets = [0, 0], sizes = [8, 32], strides = [1, 1]} : vector<8x128xf32> to vector<8x32xf32>
    %c32_i32_134 = arith.constant 32 : i32
    %452 = tpu.dynamic_rotate %446 by %c32_i32_134 dim 1 : vector<8x128xf32>, i32 -> vector<8x128xf32>
    %453 = vector.extract_strided_slice %452 {offsets = [0, 0], sizes = [8, 32], strides = [1, 1]} : vector<8x128xf32> to vector<8x32xf32>
    %454 = arith.mulf %449, %416 : vector<8x32xf32>
    %455 = arith.mulf %447, %453 : vector<8x32xf32>
    %456 = arith.addf %454, %455 : vector<8x32xf32>
    %457 = math.tanh %456 : vector<8x32xf32>
    %458 = arith.mulf %451, %457 : vector<8x32xf32>
    %459 = vector.extract_strided_slice %210 {offsets = [48, 0], sizes = [8, 128], strides = [1, 1]} : vector<64x128xf32> to vector<8x128xf32>
    %cst_135 = arith.constant dense<0.000000e+00> : vector<8x128xf32>
    %460 = tpu.matmul %437, %211, %cst_135 {dimension_numbers = #tpu.dot_dimension_numbers<[1], [0], [0], [1], [0, 0, 1, 1], [], []>} : vector<8x32xf32>, vector<32x128xf32>, vector<8x128xf32> -> vector<8x128xf32>
    %461 = arith.addf %459, %460 : vector<8x128xf32>
    %462 = arith.mulf %461, %5 : vector<8x128xf32>
    %463 = math.tanh %462 : vector<8x128xf32>
    %464 = arith.mulf %463, %5 : vector<8x128xf32>
    %465 = arith.addf %464, %8 : vector<8x128xf32>
    %466 = vector.extract_strided_slice %465 {offsets = [0, 0], sizes = [8, 32], strides = [1, 1]} : vector<8x128xf32> to vector<8x32xf32>
    %c96_i32_136 = arith.constant 96 : i32
    %467 = tpu.dynamic_rotate %465 by %c96_i32_136 dim 1 : vector<8x128xf32>, i32 -> vector<8x128xf32>
    %468 = vector.extract_strided_slice %467 {offsets = [0, 0], sizes = [8, 32], strides = [1, 1]} : vector<8x128xf32> to vector<8x32xf32>
    %c64_i32_137 = arith.constant 64 : i32
    %469 = tpu.dynamic_rotate %465 by %c64_i32_137 dim 1 : vector<8x128xf32>, i32 -> vector<8x128xf32>
    %470 = vector.extract_strided_slice %469 {offsets = [0, 0], sizes = [8, 32], strides = [1, 1]} : vector<8x128xf32> to vector<8x32xf32>
    %c32_i32_138 = arith.constant 32 : i32
    %471 = tpu.dynamic_rotate %465 by %c32_i32_138 dim 1 : vector<8x128xf32>, i32 -> vector<8x128xf32>
    %472 = vector.extract_strided_slice %471 {offsets = [0, 0], sizes = [8, 32], strides = [1, 1]} : vector<8x128xf32> to vector<8x32xf32>
    %473 = arith.mulf %468, %435 : vector<8x32xf32>
    %474 = arith.mulf %466, %472 : vector<8x32xf32>
    %475 = arith.addf %473, %474 : vector<8x32xf32>
    %476 = math.tanh %475 : vector<8x32xf32>
    %477 = arith.mulf %470, %476 : vector<8x32xf32>
    %cst_139 = arith.constant dense<0.000000e+00> : vector<8x128xf32>
    %478 = tpu.matmul %477, %212, %cst_139 {dimension_numbers = #tpu.dot_dimension_numbers<[1], [0], [0], [1], [0, 0, 1, 1], [], []>} : vector<8x32xf32>, vector<32x128xf32>, vector<8x128xf32> -> vector<8x128xf32>
    %cst_140 = arith.constant dense<0.000000e+00> : vector<8x128xf32>
    %479 = tpu.matmul %458, %213, %cst_140 {dimension_numbers = #tpu.dot_dimension_numbers<[1], [0], [0], [1], [0, 0, 1, 1], [], []>} : vector<8x32xf32>, vector<32x128xf32>, vector<8x128xf32> -> vector<8x128xf32>
    %480 = arith.addf %478, %479 : vector<8x128xf32>
    %481 = vector.broadcast %214 : vector<1x128xf32> to vector<8x128xf32>
    %482 = arith.addf %480, %481 : vector<8x128xf32>
    %483 = arith.mulf %482, %5 : vector<8x128xf32>
    %484 = math.tanh %483 : vector<8x128xf32>
    %485 = arith.mulf %484, %5 : vector<8x128xf32>
    %486 = arith.addf %485, %8 : vector<8x128xf32>
    %487 = vector.extract_strided_slice %486 {offsets = [0, 0], sizes = [8, 32], strides = [1, 1]} : vector<8x128xf32> to vector<8x32xf32>
    %c96_i32_141 = arith.constant 96 : i32
    %488 = tpu.dynamic_rotate %486 by %c96_i32_141 dim 1 : vector<8x128xf32>, i32 -> vector<8x128xf32>
    %489 = vector.extract_strided_slice %488 {offsets = [0, 0], sizes = [8, 32], strides = [1, 1]} : vector<8x128xf32> to vector<8x32xf32>
    %c64_i32_142 = arith.constant 64 : i32
    %490 = tpu.dynamic_rotate %486 by %c64_i32_142 dim 1 : vector<8x128xf32>, i32 -> vector<8x128xf32>
    %491 = vector.extract_strided_slice %490 {offsets = [0, 0], sizes = [8, 32], strides = [1, 1]} : vector<8x128xf32> to vector<8x32xf32>
    %c32_i32_143 = arith.constant 32 : i32
    %492 = tpu.dynamic_rotate %486 by %c32_i32_143 dim 1 : vector<8x128xf32>, i32 -> vector<8x128xf32>
    %493 = vector.extract_strided_slice %492 {offsets = [0, 0], sizes = [8, 32], strides = [1, 1]} : vector<8x128xf32> to vector<8x32xf32>
    %494 = arith.mulf %489, %456 : vector<8x32xf32>
    %495 = arith.mulf %487, %493 : vector<8x32xf32>
    %496 = arith.addf %494, %495 : vector<8x32xf32>
    %497 = math.tanh %496 : vector<8x32xf32>
    %498 = arith.mulf %491, %497 : vector<8x32xf32>
    %499 = vector.extract_strided_slice %210 {offsets = [56, 0], sizes = [8, 128], strides = [1, 1]} : vector<64x128xf32> to vector<8x128xf32>
    %cst_144 = arith.constant dense<0.000000e+00> : vector<8x128xf32>
    %500 = tpu.matmul %477, %211, %cst_144 {dimension_numbers = #tpu.dot_dimension_numbers<[1], [0], [0], [1], [0, 0, 1, 1], [], []>} : vector<8x32xf32>, vector<32x128xf32>, vector<8x128xf32> -> vector<8x128xf32>
    %501 = arith.addf %499, %500 : vector<8x128xf32>
    %502 = arith.mulf %501, %5 : vector<8x128xf32>
    %503 = math.tanh %502 : vector<8x128xf32>
    %504 = arith.mulf %503, %5 : vector<8x128xf32>
    %505 = arith.addf %504, %8 : vector<8x128xf32>
    %506 = vector.extract_strided_slice %505 {offsets = [0, 0], sizes = [8, 32], strides = [1, 1]} : vector<8x128xf32> to vector<8x32xf32>
    %c96_i32_145 = arith.constant 96 : i32
    %507 = tpu.dynamic_rotate %505 by %c96_i32_145 dim 1 : vector<8x128xf32>, i32 -> vector<8x128xf32>
    %508 = vector.extract_strided_slice %507 {offsets = [0, 0], sizes = [8, 32], strides = [1, 1]} : vector<8x128xf32> to vector<8x32xf32>
    %c64_i32_146 = arith.constant 64 : i32
    %509 = tpu.dynamic_rotate %505 by %c64_i32_146 dim 1 : vector<8x128xf32>, i32 -> vector<8x128xf32>
    %510 = vector.extract_strided_slice %509 {offsets = [0, 0], sizes = [8, 32], strides = [1, 1]} : vector<8x128xf32> to vector<8x32xf32>
    %c32_i32_147 = arith.constant 32 : i32
    %511 = tpu.dynamic_rotate %505 by %c32_i32_147 dim 1 : vector<8x128xf32>, i32 -> vector<8x128xf32>
    %512 = vector.extract_strided_slice %511 {offsets = [0, 0], sizes = [8, 32], strides = [1, 1]} : vector<8x128xf32> to vector<8x32xf32>
    %513 = arith.mulf %508, %475 : vector<8x32xf32>
    %514 = arith.mulf %506, %512 : vector<8x32xf32>
    %515 = arith.addf %513, %514 : vector<8x32xf32>
    %516 = math.tanh %515 : vector<8x32xf32>
    %517 = arith.mulf %510, %516 : vector<8x32xf32>
    %cst_148 = arith.constant dense<0.000000e+00> : vector<8x128xf32>
    %518 = tpu.matmul %517, %212, %cst_148 {dimension_numbers = #tpu.dot_dimension_numbers<[1], [0], [0], [1], [0, 0, 1, 1], [], []>} : vector<8x32xf32>, vector<32x128xf32>, vector<8x128xf32> -> vector<8x128xf32>
    %cst_149 = arith.constant dense<0.000000e+00> : vector<8x128xf32>
    %519 = tpu.matmul %498, %213, %cst_149 {dimension_numbers = #tpu.dot_dimension_numbers<[1], [0], [0], [1], [0, 0, 1, 1], [], []>} : vector<8x32xf32>, vector<32x128xf32>, vector<8x128xf32> -> vector<8x128xf32>
    %520 = arith.addf %518, %519 : vector<8x128xf32>
    %521 = vector.broadcast %214 : vector<1x128xf32> to vector<8x128xf32>
    %522 = arith.addf %520, %521 : vector<8x128xf32>
    %523 = arith.mulf %522, %5 : vector<8x128xf32>
    %524 = math.tanh %523 : vector<8x128xf32>
    %525 = arith.mulf %524, %5 : vector<8x128xf32>
    %526 = arith.addf %525, %8 : vector<8x128xf32>
    %527 = vector.extract_strided_slice %526 {offsets = [0, 0], sizes = [8, 32], strides = [1, 1]} : vector<8x128xf32> to vector<8x32xf32>
    %c96_i32_150 = arith.constant 96 : i32
    %528 = tpu.dynamic_rotate %526 by %c96_i32_150 dim 1 : vector<8x128xf32>, i32 -> vector<8x128xf32>
    %529 = vector.extract_strided_slice %528 {offsets = [0, 0], sizes = [8, 32], strides = [1, 1]} : vector<8x128xf32> to vector<8x32xf32>
    %c64_i32_151 = arith.constant 64 : i32
    %530 = tpu.dynamic_rotate %526 by %c64_i32_151 dim 1 : vector<8x128xf32>, i32 -> vector<8x128xf32>
    %531 = vector.extract_strided_slice %530 {offsets = [0, 0], sizes = [8, 32], strides = [1, 1]} : vector<8x128xf32> to vector<8x32xf32>
    %c32_i32_152 = arith.constant 32 : i32
    %532 = tpu.dynamic_rotate %526 by %c32_i32_152 dim 1 : vector<8x128xf32>, i32 -> vector<8x128xf32>
    %533 = vector.extract_strided_slice %532 {offsets = [0, 0], sizes = [8, 32], strides = [1, 1]} : vector<8x128xf32> to vector<8x32xf32>
    %534 = arith.mulf %529, %496 : vector<8x32xf32>
    %535 = arith.mulf %527, %533 : vector<8x32xf32>
    %536 = arith.addf %534, %535 : vector<8x32xf32>
    %537 = math.tanh %536 : vector<8x32xf32>
    %538 = arith.mulf %531, %537 : vector<8x32xf32>
    %539 = tpu.concatenate %258, %298, %338, %378, %418, %458, %498, %538 in 0 : vector<8x32xf32>, vector<8x32xf32>, vector<8x32xf32>, vector<8x32xf32>, vector<8x32xf32>, vector<8x32xf32>, vector<8x32xf32>, vector<8x32xf32> -> vector<64x32xf32>
    %c0_153 = arith.constant 0 : index
    %c0_154 = arith.constant 0 : index
    %540 = vector.load %arg2[%c0_153, %c0_154] : memref<64x1xf32, #tpu.memory_space<vmem>>, vector<64x1xf32>
    %541 = vector.broadcast %540 : vector<64x1xf32> to vector<64x32xf32>
    %542 = arith.mulf %539, %541 : vector<64x32xf32>
    %c0_155 = arith.constant 0 : index
    %c0_156 = arith.constant 0 : index
    %543 = vector.load %arg18[%c0_155, %c0_156] : memref<32x8xf32, #tpu.memory_space<vmem>>, vector<32x8xf32>
    %cst_157 = arith.constant dense<0.000000e+00> : vector<64x8xf32>
    %544 = tpu.matmul %542, %543, %cst_157 {dimension_numbers = #tpu.dot_dimension_numbers<[1], [0], [0], [1], [0, 0, 1, 1], [], []>} : vector<64x32xf32>, vector<32x8xf32>, vector<64x8xf32> -> vector<64x8xf32>
    %c0_158 = arith.constant 0 : index
    %c0_159 = arith.constant 0 : index
    %545 = vector.load %arg19[%c0_158, %c0_159] : memref<1x8xf32, #tpu.memory_space<vmem>>, vector<1x8xf32>
    %546 = vector.broadcast %545 : vector<1x8xf32> to vector<64x8xf32>
    %547 = arith.addf %544, %546 : vector<64x8xf32>
    %c0_160 = arith.constant 0 : index
    %c0_161 = arith.constant 0 : index
    %548 = vector.load %arg20[%c0_160, %c0_161] : memref<64x8xf32, #tpu.memory_space<vmem>>, vector<64x8xf32>
    tpu.vector_store %arg20[%c0_160, %c0_161], %547 {strides = array<i32>} : memref<64x8xf32, #tpu.memory_space<vmem>>, vector<64x8xf32>,
    return
  }
  func.func @transform_0(%arg0: i32) -> (i32, i32) {
    %c0_i32 = arith.constant 0 : i32
    %c0_i32_0 = arith.constant 0 : i32
    %c0_i32_1 = arith.constant 0 : i32
    return %c0_i32, %c0_i32_0 : i32, i32
  }
  func.func @transform_1(%arg0: i32) -> (i32, i32) {
    %c0_i32 = arith.constant 0 : i32
    %c0_i32_0 = arith.constant 0 : i32
    %c0_i32_1 = arith.constant 0 : i32
    return %c0_i32, %c0_i32_0 : i32, i32
  }
  func.func @transform_2(%arg0: i32) -> (i32, i32) {
    %c0_i32 = arith.constant 0 : i32
    %c0_i32_0 = arith.constant 0 : i32
    %c0_i32_1 = arith.constant 0 : i32
    return %c0_i32, %c0_i32_0 : i32, i32
  }
  func.func @transform_3(%arg0: i32) -> (i32, i32) {
    %c0_i32 = arith.constant 0 : i32
    %c0_i32_0 = arith.constant 0 : i32
    %c0_i32_1 = arith.constant 0 : i32
    return %c0_i32, %c0_i32_0 : i32, i32
  }
  func.func @transform_4(%arg0: i32) -> (i32, i32) {
    %c0_i32 = arith.constant 0 : i32
    %c0_i32_0 = arith.constant 0 : i32
    %c0_i32_1 = arith.constant 0 : i32
    return %c0_i32, %c0_i32_0 : i32, i32
  }
  func.func @transform_5(%arg0: i32) -> (i32, i32) {
    %c0_i32 = arith.constant 0 : i32
    %c0_i32_0 = arith.constant 0 : i32
    %c0_i32_1 = arith.constant 0 : i32
    return %c0_i32, %c0_i32_0 : i32, i32
  }
  func.func @transform_6(%arg0: i32) -> (i32, i32) {
    %c0_i32 = arith.constant 0 : i32
    %c0_i32_0 = arith.constant 0 : i32
    %c0_i32_1 = arith.constant 0 : i32
    return %c0_i32, %c0_i32_0 : i32, i32
  }
  func.func @transform_7(%arg0: i32) -> (i32, i32) {
    %c0_i32 = arith.constant 0 : i32
    %c0_i32_0 = arith.constant 0 : i32
    %c0_i32_1 = arith.constant 0 : i32
    return %c0_i32, %c0_i32_0 : i32, i32
  }
  func.func @transform_8(%arg0: i32) -> (i32, i32) {
    %c0_i32 = arith.constant 0 : i32
    %c0_i32_0 = arith.constant 0 : i32
    %c0_i32_1 = arith.constant 0 : i32
    return %c0_i32, %c0_i32_0 : i32, i32
  }
  func.func @transform_9(%arg0: i32) -> (i32, i32) {
    %c0_i32 = arith.constant 0 : i32
    %c0_i32_0 = arith.constant 0 : i32
    %c0_i32_1 = arith.constant 0 : i32
    return %c0_i32, %c0_i32_0 : i32, i32
  }
  func.func @transform_10(%arg0: i32) -> (i32, i32) {
    %c0_i32 = arith.constant 0 : i32
    %c0_i32_0 = arith.constant 0 : i32
    %c0_i32_1 = arith.constant 0 : i32
    return %c0_i32, %c0_i32_0 : i32, i32
  }
  func.func @transform_11(%arg0: i32) -> (i32, i32) {
    %c0_i32 = arith.constant 0 : i32
    %c0_i32_0 = arith.constant 0 : i32
    %c0_i32_1 = arith.constant 0 : i32
    return %c0_i32, %c0_i32_0 : i32, i32
  }
  func.func @transform_12(%arg0: i32) -> (i32, i32) {
    %c0_i32 = arith.constant 0 : i32
    %c0_i32_0 = arith.constant 0 : i32
    %c0_i32_1 = arith.constant 0 : i32
    return %c0_i32, %c0_i32_0 : i32, i32
  }
  func.func @transform_13(%arg0: i32) -> (i32, i32) {
    %c0_i32 = arith.constant 0 : i32
    %c0_i32_0 = arith.constant 0 : i32
    %c0_i32_1 = arith.constant 0 : i32
    return %c0_i32, %c0_i32_0 : i32, i32
  }
  func.func @transform_14(%arg0: i32) -> (i32, i32) {
    %c0_i32 = arith.constant 0 : i32
    %c0_i32_0 = arith.constant 0 : i32
    %c0_i32_1 = arith.constant 0 : i32
    return %c0_i32, %c0_i32_0 : i32, i32
  }
  func.func @transform_15(%arg0: i32) -> (i32, i32) {
    %c0_i32 = arith.constant 0 : i32
    %c0_i32_0 = arith.constant 0 : i32
    %c0_i32_1 = arith.constant 0 : i32
    return %c0_i32, %c0_i32_0 : i32, i32
  }
  func.func @transform_16(%arg0: i32) -> (i32, i32) {
    %c0_i32 = arith.constant 0 : i32
    %c0_i32_0 = arith.constant 0 : i32
    %c0_i32_1 = arith.constant 0 : i32
    return %c0_i32, %c0_i32_0 : i32, i32
  }
  func.func @transform_17(%arg0: i32) -> (i32, i32) {
    %c0_i32 = arith.constant 0 : i32
    %c0_i32_0 = arith.constant 0 : i32
    %c0_i32_1 = arith.constant 0 : i32
    return %c0_i32, %c0_i32_0 : i32, i32
  }
  func.func @transform_18(%arg0: i32) -> (i32, i32) {
    %c0_i32 = arith.constant 0 : i32
    %c0_i32_0 = arith.constant 0 : i32
    %c0_i32_1 = arith.constant 0 : i32
    return %c0_i32, %c0_i32_0 : i32, i32
  }
  func.func @transform_19(%arg0: i32) -> (i32, i32) {
    %c0_i32 = arith.constant 0 : i32
    %c0_i32_0 = arith.constant 0 : i32
    %c0_i32_1 = arith.constant 0 : i32
    return %c0_i32, %c0_i32_0 : i32, i32
  }
}

</mosaic_0001>

<bundles_post_ra>
// kernel: model_forward.1
= control target key start
LH: loop header
LB: loop body
LE: loop exit
PB: predicated region body
PF: predicated region fallthrough
CT: control target
= control target key end

     0   :  { %s3372_s0 = inlined_call_operand.vmem [shape: f32[64,16], index: 0, kind: input, shape index: {}]   ;;  %s3373_s1 = inlined_call_operand.vmem [shape: f32[64,1], index: 1, kind: input, shape index: {}]   ;;  %s3374_s2 = inlined_call_operand.vmem [shape: f32[1,64], index: 2, kind: input, shape index: {}]   ;;  %s3375_s3 = inlined_call_operand.vmem [shape: f32[64,64], index: 3, kind: input, shape index: {}]   ;;  %s3376_s4 = inlined_call_operand.vmem [shape: f32[16,128], index: 4, kind: input, shape index: {}]   ;;  %s3377_s5 = inlined_call_operand.vmem [shape: f32[32,128], index: 5, kind: input, shape index: {}]   ;;  %s3378_s6 = inlined_call_operand.vmem [shape: f32[1,128], index: 6, kind: input, shape index: {}]   ;;  %s3379_s7 = inlined_call_operand.vmem [shape: f32[32,96], index: 7, kind: input, shape index: {}]   ;;  %s3380_s8 = inlined_call_operand.vmem [shape: f32[1,96], index: 8, kind: input, shape index: {}]   ;;  %s3381_s9 = inlined_call_operand.vmem [shape: f32[32,32], index: 9, kind: input, shape index: {}]   ;;  %s3382_s10 = inlined_call_operand.hbm [shape: f32[1,32], index: 10, kind: input, shape index: {}]   ;;  %s3383_s11 = inlined_call_operand.vmem [shape: f32[32,128], index: 11, kind: input, shape index: {}]   ;;  %s3384_s12 = inlined_call_operand.vmem [shape: f32[32,128], index: 12, kind: input, shape index: {}]   ;;  %s3385_s13 = inlined_call_operand.vmem [shape: f32[1,128], index: 13, kind: input, shape index: {}]   ;;  %s3386_s14 = inlined_call_operand.hbm [shape: f32[32,128], index: 14, kind: input, shape index: {}]   ;;  %s3387_s15 = inlined_call_operand.hbm [shape: f32[32,128], index: 15, kind: input, shape index: {}]   ;;  %s3388_s16 = inlined_call_operand.vmem [shape: f32[1,128], index: 16, kind: input, shape index: {}]   ;;  %s3389_s17 = inlined_call_operand.vmem [shape: f32[32,8], index: 17, kind: input, shape index: {}]   ;;  %s3390_s18 = inlined_call_operand.vmem [shape: f32[1,8], index: 18, kind: input, shape index: {}]   ;;  %s3391_s19 = inlined_call_operand.vmem [shape: f32[64,8], index: 19, kind: output, shape index: {}]  }
   0x1   :  { %3395 = sst [smem:[#allocation9_spill]] %s3372_s0 }
   0x2   :  { %3396 = sst [smem:[#allocation10_spill]] %s3373_s1 }
   0x3   :  { %3397 = sst [smem:[#allocation11_spill]] %s3374_s2 }
   0x4   :  { %3398 = sst [smem:[#allocation12_spill]] %s3375_s3 }
   0x5   :  { %24 = vsyncpa [#allocation3], 0 }
   0x6   :  { %25 = vsyncpa [#allocation5], 0  ;;  %s67_s20 = sshll.u32 %s3386_s14, 4  ;;  %s2407_s21 = smov [#allocation4]   ;;  %s68_s20 = int_to_ptr.hbm [resolvable:$true] %s67_s20 }
   0x7   :  { %s69_s1 = sshll.u32 %s2407_s21, 4  ;;  %s51_s23 = sshll.u32 %s3382_s10, 4  ;;  %s70_s1 = int_to_ptr.vmem [resolvable:$true] %s69_s1  ;;  %s52_s23 = int_to_ptr.hbm [resolvable:$true] %s51_s23 }
   0x8   :  { %s2408_s24 = smov 128   ;;  %s2409_s25 = smov 8  }
   0x9   :  { %75 = dma.hbm_to_vmem [thread:$0]  %s68_s20, 512, %s70_s1, [#allocation5], %s2408_s24, %s2408_s24, %s2409_s25  }
   0xa   :  { %s2410_s3 = smov [#allocation2]   ;;  %s80_s29 = sshll.u32 %s3387_s15, 4  ;;  %s81_s29 = int_to_ptr.hbm [resolvable:$true] %s80_s29 }
   0xb   :  { %s53_s26 = sshll.u32 %s2410_s3, 4  ;;  %s2411_s14 = smov [#allocation6]   ;;  %s54_s26 = int_to_ptr.vmem [resolvable:$true] %s53_s26 }
   0xc   :  { %56 = dma.hbm_to_vmem [thread:$0]  %s52_s23, 16, %s54_s26, [#allocation3]  }
   0xd   :  { %s82_s0 = sshll.u32 %s2411_s14, 4  ;;  %s83_s0 = int_to_ptr.vmem [resolvable:$true] %s82_s0 }
   0xe   :  { %88 = dma.hbm_to_vmem [thread:$0]  %s81_s29, 512, %s83_s0, [#allocation5], %s2408_s24, %s2408_s24, %s2409_s25  }
   0xf   :  { %2403 = dma.done.wait [#allocation3], 16  }
  0x10   :  { %2404 = vsyncadd [#allocation3], 4294967280 }
  0x11   :  { %2405 = dma.done.wait [#allocation5], 1024  }
  0x12   :  { %2406 = vsyncadd [#allocation5], 4294966272  ;;  %v121_v0 = vld [vmem:[%s3376_s4 + $0x8] sm:$0xff]  ;;  %v120_v1 = vld [vmem:[%s3376_s4] sm:$0xff]  ;;  %s3399_s22 = sld [smem:[#allocation9_spill]]  ;;  %vm126_vm0 = vcmask 130048   ;;  %v107_v11 = vlaneseq }
  0x13   :  { %2157 = vmatpush.msra.mxu1 %v121_v0  ;;  %165 = vmatpush.msra.mxu0 %v121_v0  ;;  %v2539_v3 = vld [vmem:[%s3377_s5 + $0x18] sm:$0xff]  ;;  %v2547_v5 = vld [vmem:[%s3377_s5 + $0x10] sm:$0xff]  ;;  %v2555_v6 = vld [vmem:[%s3377_s5 + $0x8] sm:$0xff]  ;;  %v2412_v9 = vmov 0.0   ;;  %v2413_v17 = vmov 1.0   ;;  %s2415_s30 = smov 96  }
  0x14   :  { %2158 = vmatpush.msra.mxu2 %v121_v0  ;;  %2159 = vmatpush.msra.mxu3 %v121_v0  ;;  %v2563_v7 = vld [vmem:[%s3377_s5] sm:$0xff]  ;;  %v108_v13 = vand.u32 127, %v107_v11  ;;  %s2416_s20 = smov 32   ;;  %vm196_vm2 = vcmask 261120   ;;  %s3400_s1 = sld [smem:[#allocation11_spill]]  ;;  %vm695_vm3 = vcmask 523264  }
  0x15   :  { %2160 = vmatpush.msra.mxu1 %v120_v1  ;;  %166 = vmatpush.msra.mxu0 %v120_v1  ;;  %v2593_v15 = vld [vmem:[%s3378_s6] ss:$0 sm:$0xff]  ;;  %s2414_s6 = smov 64   ;;  %s3401_s24 = sld [smem:[#allocation12_spill]] }
  0x16   :  { %2161 = vmatpush.msra.mxu2 %v120_v1  ;;  %2162 = vmatpush.msra.mxu3 %v120_v1  ;;  %vm109_vm1 = vcmp.lt.s32.totalorder %v108_v13, 96 }
  0x17   :  { %212 = vmatpush.msrb.mxu1 %v2539_v3  ;;  %v2596_v18 = vsel %vm109_vm1, 0.5, %v2413_v17  ;;  %v2600_v23 = vsel %vm109_vm1, 0.5, %v2412_v9 }
  0x18   :  { %v114_v2 = vld [vmem:[%s3399_s22 + $0x10] sm:$0xff]  ;;  %v112_v4 = vld [vmem:[%s3399_s22] sm:$0xff]  ;;  %251 = vmatpush.msrb.mxu2 %v2539_v3  ;;  %290 = vmatpush.msrb.mxu3 %v2539_v3  ;;  %v115_v8 = vld [vmem:[%s3399_s22 + $0x18] sm:$0xff] }
  0x19   :  { %2066 = vmatmul.msk.f32.vlgmr.msra.gmra.mxu1 %vm126_vm0, %v114_v2  ;;  %2064 = vmatmul.msk.f32.vlgmr.msra.gmra.mxu0 %vm126_vm0, %v112_v4  ;;  %v116_v26 = vld [vmem:[%s3399_s22 + $0x20] sm:$0xff]  ;;  %v117_v27 = vld [vmem:[%s3399_s22 + $0x28] sm:$0xff]  ;;  %v118_v47 = vld [vmem:[%s3399_s22 + $0x30] sm:$0xff] }
  0x1a   :  { %213 = vmatpush.msrb.mxu1 %v2547_v5  ;;  %252 = vmatpush.msrb.mxu2 %v2547_v5  ;;  %v113_v28 = vld [vmem:[%s3399_s22 + $0x8] sm:$0xff]  ;;  %v119_v48 = vld [vmem:[%s3399_s22 + $0x38] sm:$0xff] }
  0x1b   :  { %291 = vmatpush.msrb.mxu3 %v2547_v5  ;;  %2068 = vmatmul.msk.f32.vlgmr.msra.gmra.mxu2 %vm126_vm0, %v116_v26 }
  0x1c   :  { %214 = vmatpush.msrb.mxu1 %v2555_v6  ;;  %253 = vmatpush.msrb.mxu2 %v2555_v6 }
  0x1d   :  { %292 = vmatpush.msrb.mxu3 %v2555_v6 }
  0x1e   :  { %215 = vmatpush.msrb.mxu1 %v2563_v7  ;;  %254 = vmatpush.msrb.mxu2 %v2563_v7 }
  0x1f   :  { %293 = vmatpush.msrb.mxu3 %v2563_v7 }
  0x20   :  { %329 = vmatpush.msra.mxu1 %v2539_v3  ;;  %368 = vmatpush.msra.mxu2 %v2539_v3 }
  0x21   :  { %2067 = vmatmul.msk.f32.gmra.mxu1 %vm126_vm0, %v115_v8  ;;  %2065 = vmatmul.msk.f32.gmra.mxu0 %vm126_vm0, %v113_v28 }
  0x22   :  { %330 = vmatpush.msra.mxu1 %v2547_v5  ;;  %369 = vmatpush.msra.mxu2 %v2547_v5 }
  0x23   :  { %2069 = vmatmul.msk.f32.gmra.mxu2 %vm126_vm0, %v117_v27  ;;  %2070 = vmatmul.msk.f32.vlgmr.msra.gmra.mxu3 %vm126_vm0, %v118_v47 }
  0x24   :  { %331 = vmatpush.msra.mxu1 %v2555_v6  ;;  %370 = vmatpush.msra.mxu2 %v2555_v6 }
  0x25   :  { %407 = vmatpush.msra.mxu3 %v2539_v3 }
  0x26   :  { %332 = vmatpush.msra.mxu1 %v2563_v7  ;;  %371 = vmatpush.msra.mxu2 %v2563_v7 }
  0x27   :  { %408 = vmatpush.msra.mxu3 %v2547_v5 }
  0x29   :  { %216 = vmatmul.f32.vlgmr.msrb.gmra.mxu1 %v2412_v9  ;;  %409 = vmatpush.msra.mxu3 %v2555_v6 }
  0x2a   :  { %446 = vmatpush.msrb.mxu1 %v2539_v3 }
  0x2b   :  { %410 = vmatpush.msra.mxu3 %v2563_v7 }
  0x2c   :  { %447 = vmatpush.msrb.mxu1 %v2547_v5  ;;  %2071 = vmatmul.msk.f32.gmra.mxu3 %vm126_vm0, %v119_v48 }
  0x2e   :  { %448 = vmatpush.msrb.mxu1 %v2555_v6 }
  0x30   :  { %449 = vmatpush.msrb.mxu1 %v2563_v7 }
  0x96   :  { %v2586_v10 = vpop.f32.mrf.mxu1  ;;  %v168_v14 = vpop.f32.mrf.mxu0 }
  0x97   :  { %v169_v16 = vadd.f32 %v2593_v15, %v168_v14  ;;  %v175_v59 = vadd.f32 %v2593_v15, %v2586_v10 }
  0x9e   :  { %v2588_v12 = vpop.f32.mrf.mxu1  ;;  %v2631_v37 = vpop.f32.mrf.mxu2 }
  0x9f   :  { %v171_v39 = vpop.f32.mrf.mxu0  ;;  %v178_v11 = vadd.f32 %v2593_v15, %v2588_v12 }
  0xa0   :  { %v172_v40 = vadd.f32 %v2593_v15, %v171_v39  ;;  %v511_v39 = vld [vmem:[%s3379_s7 + $0x10] sm:$0xff] }
  0xa6   :  { %v217_v19 = vpop.f32.mrf.mxu1  ;;  %v2633_v38 = vpop.f32.mrf.mxu2 }
  0xa7   :  { %v220_v20 = vadd.f32 %v217_v19, %v169_v16  ;;  %v2658_v57 = vpop.f32.mrf.mxu3 }
  0xa9   :  { %v221_v21 = vmul.f32 %v220_v20, %v2596_v18 }
  0xab   :  { %2203 = vtanh.f32 %v221_v21 }
  0xaf   :  { %v2660_v58 = vpop.f32.mrf.mxu3 }
  0xb1   :  { %v2204_v22 = vpop.eup %2203 }
  0xb2   :  { %v223_v24 = vmul.f32 %v2204_v22, %v2596_v18 }
  0xb4   :  { %v224_v25 = vadd.f32 %v223_v24, %v2600_v23 }
  0xb6   :  { %227 = vrot.lane.b32.xlu1 %v224_v25, %s2414_s6  ;;  %225 = vrot.lane.b32.xlu0 %v224_v25, %s2415_s30 }
  0xbe   :  { %229 = vrot.lane.b32.xlu0 %v224_v25, %s2416_s20 }
 0x128   :  { %v226_v29 = vpop.permute.xlu0 %225  ;;  %v228_v35 = vpop.permute.xlu1 %227 }
 0x129   :  { %v231_v31 = vmul.f32 0.0, %v226_v29  ;;  %v181_v29 = vadd.f32 %v2593_v15, %v2631_v37  ;;  %v512_v37 = vld [vmem:[%s3379_s7 + $0x18] sm:$0xff] }
 0x130   :  { %v230_v30 = vpop.permute.xlu0 %229 }
 0x131   :  { %v232_v32 = vmul.f32 %v230_v30, %v224_v25 }
 0x133   :  { %v233_v33 = vadd.f32 %v232_v32, %v231_v31 }
 0x135   :  { %2205 = vtanh.f32 %v233_v33 }
 0x13b   :  { %v2206_v34 = vpop.eup %2205 }
 0x13c   :  { %v2623_v36 = vmul.f32 %v2206_v34, %v228_v35 }
 0x13e   :  { %2072 = vmatmul.msk.f32.vlgmr.msrb.gmra.mxu2 %vm196_vm2, %v2623_v36 }
 0x13f   :  { %485 = vmatpush.msrb.mxu2 %v2539_v3 }
 0x141   :  { %486 = vmatpush.msrb.mxu2 %v2547_v5 }
 0x143   :  { %487 = vmatpush.msrb.mxu2 %v2555_v6 }
 0x145   :  { %488 = vmatpush.msrb.mxu2 %v2563_v7 }
 0x1c1   :  { %v256_v41 = vpop.f32.mrf.mxu2 }
 0x1c2   :  { %v259_v42 = vadd.f32 %v256_v41, %v172_v40  ;;  %v510_v40 = vld [vmem:[%s3379_s7 + $0x8] sm:$0xff]  ;;  %v509_v41 = vld [vmem:[%s3379_s7] sm:$0xff] }
 0x1c4   :  { %v260_v43 = vmul.f32 %v259_v42, %v2596_v18 }
 0x1c6   :  { %2207 = vtanh.f32 %v260_v43 }
 0x1cc   :  { %v2208_v44 = vpop.eup %2207 }
 0x1cd   :  { %v262_v45 = vmul.f32 %v2208_v44, %v2596_v18 }
 0x1cf   :  { %v263_v46 = vadd.f32 %v262_v45, %v2600_v23 }
 0x1d1   :  { %268 = vrot.lane.b32.xlu2 %v263_v46, %s2416_s20  ;;  %264 = vrot.lane.b32.xlu1 %v263_v46, %s2415_s30 }
 0x1d9   :  { %266 = vrot.lane.b32.xlu2 %v263_v46, %s2414_s6 }
 0x22b   :  { %v269_v49 = vpop.permute.xlu2 %268 }
 0x22c   :  { %v271_v51 = vmul.f32 %v269_v49, %v263_v46 }
 0x233   :  { %v267_v55 = vpop.permute.xlu2 %266 }
 0x243   :  { %v265_v50 = vpop.permute.xlu1 %264 }
 0x244   :  { %v270_v52 = vmul.f32 %v265_v50, %v233_v33  ;;  %v184_v50 = vadd.f32 %v2593_v15, %v2633_v38 }
 0x246   :  { %v272_v53 = vadd.f32 %v271_v51, %v270_v52 }
 0x248   :  { %2209 = vtanh.f32 %v272_v53 }
 0x24e   :  { %v2210_v54 = vpop.eup %2209 }
 0x24f   :  { %v2654_v56 = vmul.f32 %v2210_v54, %v267_v55 }
 0x251   :  { %2073 = vmatmul.msk.f32.vlgmr.msrb.gmra.mxu3 %vm196_vm2, %v2654_v56 }
 0x252   :  { %532 = vmatpush.msrb.mxu3 %v512_v37 }
 0x254   :  { %533 = vmatpush.msrb.mxu3 %v511_v39 }
 0x256   :  { %534 = vmatpush.msrb.mxu3 %v510_v40 }
 0x258   :  { %535 = vmatpush.msrb.mxu3 %v509_v41 }
 0x2d4   :  { %v295_v60 = vpop.f32.mrf.mxu3 }
 0x2d5   :  { %v298_v61 = vadd.f32 %v295_v60, %v175_v59 }
 0x2d7   :  { %v299_v62 = vmul.f32 %v298_v61, %v2596_v18 }
 0x2d9   :  { %2211 = vtanh.f32 %v299_v62 }
 0x2df   :  { %v2212_v63 = vpop.eup %2211 }
 0x2e0   :  { %v301_v0 = vmul.f32 %v2212_v63, %v2596_v18 }
 0x2e2   :  { %v302_v1 = vadd.f32 %v301_v0, %v2600_v23 }
 0x2e4   :  { %305 = vrot.lane.b32.xlu2 %v302_v1, %s2414_s6  ;;  %307 = vrot.lane.b32.xlu1 %v302_v1, %s2416_s20 }
 0x2e5   :  { %303 = vrot.lane.b32.xlu0 %v302_v1, %s2415_s30 }
 0x33e   :  { %v306_v8 = vpop.permute.xlu2 %305 }
 0x356   :  { %v308_v2 = vpop.permute.xlu1 %307 }
 0x357   :  { %v310_v3 = vmul.f32 %v308_v2, %v302_v1  ;;  %v304_v4 = vpop.permute.xlu0 %303  ;;  %v187_v1 = vadd.f32 %v2593_v15, %v2658_v57 }
 0x358   :  { %v309_v5 = vmul.f32 %v304_v4, %v272_v53 }
 0x35a   :  { %v311_v6 = vadd.f32 %v310_v3, %v309_v5 }
 0x35c   :  { %2213 = vtanh.f32 %v311_v6 }
 0x362   :  { %v2214_v7 = vpop.eup %2213 }
 0x363   :  { %v313_v10 = vmul.f32 %v2214_v7, %v306_v8 }
 0x365   :  { %2074 = vmatmul.msk.f32.vlgmr.msra.gmra.mxu1 %vm196_vm2, %v313_v10 }
 0x3e2   :  { %v334_v13 = vpop.f32.mrf.mxu1 }
 0x3e3   :  { %v337_v14 = vadd.f32 %v334_v13, %v178_v11 }
 0x3e5   :  { %v338_v16 = vmul.f32 %v337_v14, %v2596_v18 }
 0x3e7   :  { %2215 = vtanh.f32 %v338_v16 }
 0x3ed   :  { %v2216_v17 = vpop.eup %2215 }
 0x3ee   :  { %v340_v19 = vmul.f32 %v2216_v17, %v2596_v18 }
 0x3f0   :  { %v341_v20 = vadd.f32 %v340_v19, %v2600_v23 }
 0x3f2   :  { %344 = vrot.lane.b32.xlu2 %v341_v20, %s2414_s6  ;;  %346 = vrot.lane.b32.xlu1 %v341_v20, %s2416_s20 }
 0x3f3   :  { %342 = vrot.lane.b32.xlu0 %v341_v20, %s2415_s30 }
 0x44c   :  { %v345_v27 = vpop.permute.xlu2 %344 }
 0x464   :  { %v347_v21 = vpop.permute.xlu1 %346 }
 0x465   :  { %v349_v22 = vmul.f32 %v347_v21, %v341_v20  ;;  %v343_v24 = vpop.permute.xlu0 %342 }
 0x466   :  { %v348_v12 = vmul.f32 %v343_v24, %v311_v6  ;;  %v190_v24 = vadd.f32 %v2593_v15, %v2660_v58  ;;  %v2198_v15 = vld [vmem:[%s3380_s8] ss:$0 sm:$0xff] }
 0x468   :  { %v350_v25 = vadd.f32 %v349_v22, %v348_v12 }
 0x46a   :  { %2217 = vtanh.f32 %v350_v25 }
 0x470   :  { %v2218_v26 = vpop.eup %2217 }
 0x471   :  { %v352_v28 = vmul.f32 %v2218_v26, %v345_v27 }
 0x473   :  { %2075 = vmatmul.msk.f32.vlgmr.msra.gmra.mxu2 %vm196_vm2, %v352_v28 }
 0x4f6   :  { %v373_v30 = vpop.f32.mrf.mxu2 }
 0x4f7   :  { %v376_v31 = vadd.f32 %v373_v30, %v181_v29 }
 0x4f9   :  { %v377_v32 = vmul.f32 %v376_v31, %v2596_v18 }
 0x4fb   :  { %2219 = vtanh.f32 %v377_v32 }
 0x501   :  { %v2220_v33 = vpop.eup %2219 }
 0x502   :  { %v379_v34 = vmul.f32 %v2220_v33, %v2596_v18 }
 0x504   :  { %v380_v35 = vadd.f32 %v379_v34, %v2600_v23 }
 0x506   :  { %383 = vrot.lane.b32.xlu2 %v380_v35, %s2414_s6  ;;  %385 = vrot.lane.b32.xlu1 %v380_v35, %s2416_s20 }
 0x507   :  { %381 = vrot.lane.b32.xlu0 %v380_v35, %s2415_s30 }
 0x560   :  { %v384_v48 = vpop.permute.xlu2 %383 }
 0x578   :  { %v386_v42 = vpop.permute.xlu1 %385 }
 0x579   :  { %v388_v43 = vmul.f32 %v386_v42, %v380_v35  ;;  %v382_v44 = vpop.permute.xlu0 %381 }
 0x57a   :  { %v387_v45 = vmul.f32 %v382_v44, %v350_v25 }
 0x57c   :  { %v389_v46 = vadd.f32 %v388_v43, %v387_v45 }
 0x57e   :  { %2221 = vtanh.f32 %v389_v46 }
 0x584   :  { %v2222_v47 = vpop.eup %2221 }
 0x585   :  { %v391_v49 = vmul.f32 %v2222_v47, %v384_v48 }
 0x587   :  { %2076 = vmatmul.msk.f32.vlgmr.msra.gmra.mxu3 %vm196_vm2, %v391_v49 }
 0x58f   :  { %2079 = vmatmul.msk.f32.vlgmr.msrb.gmra.mxu3 %vm196_vm2, %v2623_v36 }
 0x597   :  { %2080 = vmatmul.msk.f32.gmra.mxu3 %vm196_vm2, %v2654_v56 }
 0x59f   :  { %2081 = vmatmul.msk.f32.gmra.mxu3 %vm196_vm2, %v313_v10 }
 0x5a7   :  { %2082 = vmatmul.msk.f32.gmra.mxu3 %vm196_vm2, %v352_v28 }
 0x5af   :  { %2083 = vmatmul.msk.f32.gmra.mxu3 %vm196_vm2, %v391_v49 }
 0x60a   :  { %v412_v51 = vpop.f32.mrf.mxu3 }
 0x60b   :  { %v415_v52 = vadd.f32 %v412_v51, %v184_v50 }
 0x60d   :  { %v416_v53 = vmul.f32 %v415_v52, %v2596_v18 }
 0x60f   :  { %2223 = vtanh.f32 %v416_v53 }
 0x612   :  { %v537_v19 = vpop.f32.mrf.mxu3 }
 0x613   :  { %v2755_v37 = vadd.f32 %v2198_v15, %v537_v19 }
 0x615   :  { %v2224_v54 = vpop.eup %2223 }
 0x616   :  { %v418_v36 = vmul.f32 %v2224_v54, %v2596_v18 }
 0x618   :  { %v419_v55 = vadd.f32 %v418_v36, %v2600_v23 }
 0x61a   :  { %422 = vrot.lane.b32.xlu2 %v419_v55, %s2414_s6  ;;  %424 = vrot.lane.b32.xlu1 %v419_v55, %s2416_s20  ;;  %v540_v20 = vpop.f32.mrf.mxu3 }
 0x61b   :  { %420 = vrot.lane.b32.xlu0 %v419_v55, %s2415_s30  ;;  %v541_v52 = vadd.f32 %v2198_v15, %v540_v20 }
 0x61d   :  { %v2189_v54 = vpack.i.bf16 %v2755_v37, %v541_v52 }
 0x622   :  { %v543_v21 = vpop.f32.mrf.mxu3 }
 0x623   :  { %v2747_v34 = vadd.f32 %v2198_v15, %v543_v21 }
 0x62a   :  { %v546_v22 = vpop.f32.mrf.mxu3 }
 0x62b   :  { %v2749_v35 = vadd.f32 %v2198_v15, %v546_v22 }
 0x62d   :  { %v2184_v53 = vpack.i.bf16 %v2747_v34, %v2749_v35 }
 0x632   :  { %v549_v26 = vpop.f32.mrf.mxu3 }
 0x633   :  { %v550_v50 = vadd.f32 %v2198_v15, %v549_v26 }
 0x674   :  { %v423_v63 = vpop.permute.xlu2 %422 }
 0x68c   :  { %v425_v56 = vpop.permute.xlu1 %424 }
 0x68d   :  { %v427_v59 = vmul.f32 %v425_v56, %v419_v55  ;;  %v421_v60 = vpop.permute.xlu0 %420 }
 0x68e   :  { %v426_v38 = vmul.f32 %v421_v60, %v389_v46 }
 0x690   :  { %v428_v61 = vadd.f32 %v427_v59, %v426_v38 }
 0x692   :  { %2225 = vtanh.f32 %v428_v61 }
 0x698   :  { %v2226_v62 = vpop.eup %2225 }
 0x699   :  { %v430_v0 = vmul.f32 %v2226_v62, %v423_v63 }
 0x69b   :  { %2077 = vmatmul.msk.f32.vlgmr.msrb.gmra.mxu1 %vm196_vm2, %v430_v0  ;;  %2084 = vmatmul.msk.f32.gmra.mxu3 %vm196_vm2, %v430_v0 }
 0x718   :  { %v451_v2 = vpop.f32.mrf.mxu1 }
 0x719   :  { %v454_v3 = vadd.f32 %v451_v2, %v187_v1 }
 0x71b   :  { %v455_v4 = vmul.f32 %v454_v3, %v2596_v18 }
 0x71d   :  { %2227 = vtanh.f32 %v455_v4 }
 0x71e   :  { %v552_v29 = vpop.f32.mrf.mxu3 }
 0x71f   :  { %v2739_v58 = vadd.f32 %v2198_v15, %v552_v29 }
 0x721   :  { %v2179_v51 = vpack.i.bf16 %v550_v50, %v2739_v58 }
 0x723   :  { %v2228_v5 = vpop.eup %2227 }
 0x724   :  { %v457_v6 = vmul.f32 %v2228_v5, %v2596_v18 }
 0x726   :  { %v458_v7 = vadd.f32 %v457_v6, %v2600_v23 }
 0x728   :  { %461 = vrot.lane.b32.xlu2 %v458_v7, %s2414_s6  ;;  %463 = vrot.lane.b32.xlu1 %v458_v7, %s2416_s20 }
 0x729   :  { %459 = vrot.lane.b32.xlu0 %v458_v7, %s2415_s30 }
 0x782   :  { %v462_v16 = vpop.permute.xlu2 %461 }
 0x79a   :  { %v464_v8 = vpop.permute.xlu1 %463 }
 0x79b   :  { %v466_v10 = vmul.f32 %v464_v8, %v458_v7  ;;  %v460_v11 = vpop.permute.xlu0 %459 }
 0x79c   :  { %v465_v57 = vmul.f32 %v460_v11, %v428_v61 }
 0x79e   :  { %v467_v13 = vadd.f32 %v466_v10, %v465_v57  ;;  %v682_v57 = vld [vmem:[%s3400_s1] sm:$0x1] }
 0x7a0   :  { %2229 = vtanh.f32 %v467_v13 }
 0x7a6   :  { %v2230_v14 = vpop.eup %2229 }
 0x7a7   :  { %v469_v17 = vmul.f32 %v2230_v14, %v462_v16  ;;  %v666_v16 = vld [vmem:[%s3401_s24] sm:$0xff] }
 0x7a9   :  { %2078 = vmatmul.msk.f32.vlgmr.msrb.gmra.mxu2 %vm196_vm2, %v469_v17  ;;  %2085 = vmatmul.msk.f32.gmra.mxu3 %vm196_vm2, %v469_v17 }
 0x82c   :  { %v490_v12 = vpop.f32.mrf.mxu2  ;;  %v555_v32 = vpop.f32.mrf.mxu3 }
 0x82d   :  { %v493_v25 = vadd.f32 %v490_v12, %v190_v24  ;;  %v2741_v33 = vadd.f32 %v2198_v15, %v555_v32  ;;  %v667_v12 = vld [vmem:[%s3401_s24 + $0x8] sm:$0xff] }
 0x82f   :  { %v494_v27 = vmul.f32 %v493_v25, %v2596_v18 }
 0x831   :  { %2231 = vtanh.f32 %v494_v27 }
 0x837   :  { %v2232_v28 = vpop.eup %2231 }
 0x838   :  { %v496_v30 = vmul.f32 %v2232_v28, %v2596_v18 }
 0x83a   :  { %v497_v31 = vadd.f32 %v496_v30, %v2600_v23  ;;  %v668_v30 = vld [vmem:[%s3401_s24 + $0x10] sm:$0xff] }
 0x83c   :  { %500 = vrot.lane.b32.xlu2 %v497_v31, %s2414_s6  ;;  %502 = vrot.lane.b32.xlu1 %v497_v31, %s2416_s20 }
 0x83d   :  { %498 = vrot.lane.b32.xlu0 %v497_v31, %s2415_s30 }
 0x844   :  { %579 = vrot.lane.b32.xlu2 %v2739_v58, %s2415_s30  ;;  %581 = vrot.lane.b32.xlu1 %v2741_v33, %s2415_s30 }
 0x84c   :  { %573 = vrot.lane.b32.xlu2 %v2747_v34, %s2415_s30  ;;  %575 = vrot.lane.b32.xlu1 %v2749_v35, %s2415_s30 }
 0x854   :  { %569 = vrot.lane.b32.xlu1 %v2755_v37, %s2415_s30 }
 0x896   :  { %v501_v45 = vpop.permute.xlu2 %500 }
 0x89e   :  { %v580_v62 = vpop.permute.xlu2 %579 }
 0x8a6   :  { %v574_v5 = vpop.permute.xlu2 %573 }
 0x8ae   :  { %v503_v39 = vpop.permute.xlu1 %502 }
 0x8af   :  { %v505_v40 = vmul.f32 %v503_v39, %v497_v31  ;;  %v499_v41 = vpop.permute.xlu0 %498 }
 0x8b0   :  { %v504_v42 = vmul.f32 %v499_v41, %v467_v13  ;;  %v683_v13 = vmul.f32 1e+24, %v682_v57 }
 0x8b2   :  { %v506_v43 = vadd.f32 %v505_v40, %v504_v42  ;;  %v2799_v19 = vperm.slane %v683_v13, 0  ;;  %v670_v42 = vld [vmem:[%s3401_s24 + $0x20] sm:$0xff] }
 0x8b4   :  { %2233 = vtanh.f32 %v506_v43 }
 0x8b6   :  { %v582_v36 = vpop.permute.xlu1 %581 }
 0x8ba   :  { %v2234_v44 = vpop.eup %2233 }
 0x8bb   :  { %v508_v46 = vmul.f32 %v2234_v44, %v501_v45 }
 0x8bd   :  { %2086 = vmatmul.msk.f32.gmra.mxu3 %vm196_vm2, %v508_v46 }
 0x8be   :  { %v576_v55 = vpop.permute.xlu1 %575 }
 0x8c6   :  { %v570_v56 = vpop.permute.xlu1 %569 }
 0x940   :  { %v558_v47 = vpop.f32.mrf.mxu3 }
 0x941   :  { %v559_v48 = vadd.f32 %v2198_v15, %v558_v47  ;;  %v671_v47 = vld [vmem:[%s3401_s24 + $0x28] sm:$0xff] }
 0x943   :  { %583 = vrot.lane.b32.xlu0 %v559_v48, %s2415_s30  ;;  %v2174_v49 = vpack.i.bf16 %v2741_v33, %v559_v48 }
 0x945   :  { %2175 = vrot.lane.b32.xlu1 %v2174_v49, %s2414_s6 }
 0x94b   :  { %577 = vrot.lane.b32.xlu0 %v550_v50, %s2415_s30 }
 0x94d   :  { %2180 = vrot.lane.b32.xlu1 %v2179_v51, %s2414_s6 }
 0x953   :  { %571 = vrot.lane.b32.xlu0 %v541_v52, %s2415_s30 }
 0x955   :  { %2185 = vrot.lane.b32.xlu1 %v2184_v53, %s2414_s6 }
 0x95d   :  { %2190 = vrot.lane.b32.xlu1 %v2189_v54, %s2414_s6 }
 0x9b5   :  { %v584_v59 = vpop.permute.xlu0 %583 }
 0x9b6   :  { %2087 = vmatpush.xpose.msk.msra.mxu1 %vm196_vm2, %v584_v59 }
 0x9b7   :  { %v2176_v60 = vpop.permute.xlu1 %2175 }
 0x9b8   :  { %v2177_v38 = vunpack.i.l.bf16 %v2176_v60  ;;  %v2178_v61 = vunpack.i.h.bf16 %v2176_v60 }
 0x9ba   :  { %2088 = vmatpush.xpose.msk.msra.mxu1 %vm196_vm2, %v582_v36  ;;  %944 = vmatpush.msra.mxu2 %v2177_v38 }
 0x9bc   :  { %945 = vmatpush.msra.mxu2 %v2178_v61 }
 0x9bd   :  { %v578_v1 = vpop.permute.xlu0 %577 }
 0x9be   :  { %2089 = vmatpush.xpose.msk.msra.mxu1 %vm196_vm2, %v580_v62 }
 0x9bf   :  { %v2181_v63 = vpop.permute.xlu1 %2180 }
 0x9c0   :  { %v2182_v0 = vunpack.i.l.bf16 %v2181_v63  ;;  %v2183_v2 = vunpack.i.h.bf16 %v2181_v63  ;;  %v672_v63 = vld [vmem:[%s3401_s24 + $0x30] sm:$0xff] }
 0x9c2   :  { %2090 = vmatpush.xpose.msk.msra.mxu1 %vm196_vm2, %v578_v1  ;;  %946 = vmatpush.msra.mxu2 %v2182_v0 }
 0x9c4   :  { %947 = vmatpush.msra.mxu2 %v2183_v2 }
 0x9c5   :  { %v572_v7 = vpop.permute.xlu0 %571 }
 0x9c6   :  { %2091 = vmatpush.xpose.msk.msra.mxu1 %vm196_vm2, %v576_v55 }
 0x9c7   :  { %v2186_v3 = vpop.permute.xlu1 %2185 }
 0x9c8   :  { %v2187_v4 = vunpack.i.l.bf16 %v2186_v3  ;;  %v2188_v6 = vunpack.i.h.bf16 %v2186_v3 }
 0x9ca   :  { %2092 = vmatpush.xpose.msk.msra.mxu1 %vm196_vm2, %v574_v5  ;;  %948 = vmatpush.msra.mxu2 %v2187_v4 }
 0x9cc   :  { %949 = vmatpush.msra.mxu2 %v2188_v6 }
 0x9ce   :  { %2093 = vmatpush.xpose.msk.msra.mxu1 %vm196_vm2, %v572_v7 }
 0x9cf   :  { %v2191_v8 = vpop.permute.xlu1 %2190 }
 0x9d0   :  { %v2192_v10 = vunpack.i.l.bf16 %v2191_v8  ;;  %v2193_v11 = vunpack.i.h.bf16 %v2191_v8 }
 0x9d2   :  { %2094 = vmatpush.xpose.msk.msra.mxu1 %vm196_vm2, %v570_v56  ;;  %950 = vmatpush.msra.mxu2 %v2192_v10 }
 0x9d4   :  { %951 = vmatpush.msra.mxu2 %v2193_v11  ;;  %v673_v11 = vld [vmem:[%s3401_s24 + $0x38] sm:$0xff] }
 0x9d5   :  { %2095 = vmatmul.msk.f32.vlgmr.msra.gmra.mxu1 %vm196_vm2, %v2755_v37 }
 0x9dd   :  { %2096 = vmatmul.msk.f32.gmra.mxu1 %vm196_vm2, %v541_v52 }
 0x9e5   :  { %2097 = vmatmul.msk.f32.gmra.mxu1 %vm196_vm2, %v2747_v34  ;;  %v669_v34 = vld [vmem:[%s3401_s24 + $0x18] sm:$0xff]  ;;  %s3406_s24 = sld [smem:[#allocation10_spill]] }
 0x9ed   :  { %2098 = vmatmul.msk.f32.gmra.mxu1 %vm196_vm2, %v2749_v35 }
 0x9f5   :  { %2099 = vmatmul.msk.f32.gmra.mxu1 %vm196_vm2, %v550_v50 }
 0x9fd   :  { %2100 = vmatmul.msk.f32.gmra.mxu1 %vm196_vm2, %v2739_v58 }
 0xa05   :  { %2101 = vmatmul.msk.f32.gmra.mxu1 %vm196_vm2, %v2741_v33 }
 0xa0d   :  { %2102 = vmatmul.msk.f32.gmra.mxu1 %vm196_vm2, %v559_v48 }
 0xa52   :  { %v634_v14 = vpop.f32.mrf.mxu1 }
 0xa53   :  { %v658_v17 = vmul.f32 0.17677669, %v634_v14 }
 0xa55   :  { %v674_v20 = vadd.f32 %v666_v16, %v658_v17 }
 0xa57   :  { %v687_v21 = vsub.f32 %v674_v20, %v2799_v19 }
 0xa59   :  { %v696_v22 = vsel %vm695_vm3, %v687_v21, -inf }
 0xa5a   :  { %697 = vmax.xlane.f32.xlu2 %v696_v22  ;;  %v637_v24 = vpop.f32.mrf.mxu1 }
 0xa5b   :  { %v659_v25 = vmul.f32 0.17677669, %v637_v24 }
 0xa5d   :  { %v675_v26 = vadd.f32 %v667_v12, %v659_v25 }
 0xa5f   :  { %v688_v27 = vsub.f32 %v675_v26, %v2799_v19 }
 0xa61   :  { %v699_v28 = vsel %vm695_vm3, %v688_v27, -inf }
 0xa62   :  { %700 = vmax.xlane.f32.xlu1 %v699_v28  ;;  %v640_v29 = vpop.f32.mrf.mxu1 }
 0xa63   :  { %v660_v31 = vmul.f32 0.17677669, %v640_v29 }
 0xa65   :  { %v676_v32 = vadd.f32 %v668_v30, %v660_v31 }
 0xa67   :  { %v689_v15 = vsub.f32 %v676_v32, %v2799_v19 }
 0xa69   :  { %v702_v58 = vsel %vm695_vm3, %v689_v15, -inf }
 0xa6a   :  { %703 = vmax.xlane.f32.xlu2 %v702_v58  ;;  %v643_v33 = vpop.f32.mrf.mxu1 }
 0xa6b   :  { %v661_v35 = vmul.f32 0.17677669, %v643_v33 }
 0xa6d   :  { %v677_v37 = vadd.f32 %v669_v34, %v661_v35 }
 0xa6f   :  { %v690_v39 = vsub.f32 %v677_v37, %v2799_v19 }
 0xa71   :  { %v705_v40 = vsel %vm695_vm3, %v690_v39, -inf }
 0xa72   :  { %706 = vmax.xlane.f32.xlu2 %v705_v40  ;;  %v646_v41 = vpop.f32.mrf.mxu1 }
 0xa73   :  { %v662_v43 = vmul.f32 0.17677669, %v646_v41 }
 0xa75   :  { %v678_v44 = vadd.f32 %v670_v42, %v662_v43 }
 0xa77   :  { %v2822_v45 = vsub.f32 %v678_v44, %v2799_v19 }
 0xa79   :  { %v708_v4 = vsel %vm695_vm3, %v2822_v45, -inf }
 0xa7a   :  { %v649_v46 = vpop.f32.mrf.mxu1 }
 0xa7b   :  { %v663_v48 = vmul.f32 0.17677669, %v649_v46 }
 0xa7d   :  { %v679_v49 = vadd.f32 %v671_v47, %v663_v48 }
 0xa7f   :  { %v692_v50 = vsub.f32 %v679_v49, %v2799_v19 }
 0xa81   :  { %v711_v51 = vsel %vm695_vm3, %v692_v50, -inf }
 0xa82   :  { %712 = vmax.xlane.f32.xlu2 %v711_v51  ;;  %v652_v59 = vpop.f32.mrf.mxu1 }
 0xa83   :  { %v664_v61 = vmul.f32 0.17677669, %v652_v59  ;;  %v980_v59 = vld [vmem:[%s3381_s9 + $0x18] sm:$0xff] }
 0xa84   :  { %1021 = vmatpush.msrb.mxu0 %v980_v59  ;;  %v1053_v59 = vld [vmem:[%s3383_s11 + $0x18] sm:$0xff] }
 0xa85   :  { %v680_v3 = vadd.f32 %v672_v63, %v664_v61  ;;  %1094 = vmatpush.msra.mxu3 %v1053_v59 }
 0xa87   :  { %v693_v10 = vsub.f32 %v680_v3, %v2799_v19 }
 0xa89   :  { %v714_v17 = vsel %vm695_vm3, %v693_v10, -inf }
 0xa8a   :  { %v655_v6 = vpop.f32.mrf.mxu1 }
 0xa8b   :  { %v665_v7 = vmul.f32 0.17677669, %v655_v6 }
 0xa8d   :  { %v681_v14 = vadd.f32 %v673_v11, %v665_v7 }
 0xacd   :  { %v698_v52 = vpop.xlane.xlu2 %697 }
 0xace   :  { %v720_v53 = vsub.f32 %v687_v21, %v698_v52  ;;  %v2852_v21 = vsub.f32 %v681_v14, %v2799_v19 }
 0xad0   :  { %v728_v54 = vmul.f32 1.442695, %v720_v53  ;;  %v717_v22 = vsel %vm695_vm3, %v2852_v21, -inf }
 0xad2   :  { %2235 = vpow2.f32 %v728_v54 }
 0xad5   :  { %v701_v36 = vpop.xlane.xlu1 %700 }
 0xad6   :  { %v721_v55 = vsub.f32 %v688_v27, %v701_v36 }
 0xad8   :  { %v2829_v56 = vpop.eup %2235  ;;  %v730_v60 = vmul.f32 1.442695, %v721_v55 }
 0xad9   :  { %v744_v38 = vsel %vm695_vm3, %v2829_v56, 0.0 }
 0xada   :  { %2237 = vpow2.f32 %v730_v60  ;;  %745 = vadd.xlane.f32.xlu0 %v744_v38 }
 0xadd   :  { %v704_v62 = vpop.xlane.xlu2 %703 }
 0xade   :  { %v722_v0 = vsub.f32 %v689_v15, %v704_v62 }
 0xae0   :  { %v2836_v1 = vpop.eup %2237  ;;  %v732_v2 = vmul.f32 1.442695, %v722_v0 }
 0xae1   :  { %v747_v5 = vsel %vm695_vm3, %v2836_v1, 0.0 }
 0xae2   :  { %2239 = vpow2.f32 %v732_v2  ;;  %709 = vmax.xlane.f32.xlu0 %v708_v4  ;;  %748 = vadd.xlane.f32.xlu2 %v747_v5 }
 0xae5   :  { %v707_v8 = vpop.xlane.xlu2 %706 }
 0xae6   :  { %v723_v13 = vsub.f32 %v690_v39, %v707_v8 }
 0xae8   :  { %v2846_v57 = vpop.eup %2239  ;;  %v734_v20 = vmul.f32 1.442695, %v723_v13 }
 0xae9   :  { %v750_v16 = vsel %vm695_vm3, %v2846_v57, 0.0 }
 0xaea   :  { %751 = vadd.xlane.f32.xlu2 %v750_v16  ;;  %715 = vmax.xlane.f32.xlu0 %v714_v17  ;;  %2241 = vpow2.f32 %v734_v20 }
 0xaf0   :  { %v2856_v12 = vpop.eup %2241 }
 0xaf1   :  { %v753_v27 = vsel %vm695_vm3, %v2856_v12, 0.0 }
 0xaf2   :  { %718 = vmax.xlane.f32.xlu0 %v717_v22 }
 0xaf5   :  { %v713_v24 = vpop.xlane.xlu2 %712 }
 0xaf6   :  { %v725_v25 = vsub.f32 %v692_v50, %v713_v24 }
 0xaf8   :  { %v738_v26 = vmul.f32 1.442695, %v725_v25 }
 0xafa   :  { %2243 = vpow2.f32 %v738_v26  ;;  %754 = vadd.xlane.f32.xlu0 %v753_v27 }
 0xb00   :  { %v2860_v28 = vpop.eup %2243 }
 0xb01   :  { %v759_v19 = vsel %vm695_vm3, %v2860_v28, 0.0 }
 0xb02   :  { %760 = vadd.xlane.f32.xlu0 %v759_v19 }
 0xb4d   :  { %v746_v29 = vpop.xlane.xlu0 %745 }
 0xb4e   :  { %2245 = vrcp.f32 %v746_v29  ;;  %v779_v34 = vand.u32 2147483648, %v746_v29  ;;  %v777_v39 = vand.u32 2147483647, %v746_v29  ;;  %vm773_vm5 = vweird.f32 %v746_v29 }
 0xb50   :  { %v780_v42 = vor.u32 1.1754944e-38, %v779_v34  ;;  %vm778_vm7 = vcmp.eq.f32.partialorder %v777_v39, 8.507059e+37  ;;  %v977_v34 = vld [vmem:[%s3381_s9] sm:$0xff] }
 0xb54   :  { %v2246_v30 = vpop.eup %2245 }
 0xb55   :  { %v769_v31 = vmul.f32 %v2246_v30, %v746_v29  ;;  %v710_v32 = vpop.xlane.xlu0 %709  ;;  %v749_v15 = vpop.xlane.xlu2 %748  ;;  %vm774_vm4 = vweird.f32 %v2246_v30 }
 0xb56   :  { %v724_v58 = vsub.f32 %v2822_v45, %v710_v32  ;;  %2247 = vrcp.f32 %v749_v15  ;;  %vm775_vm6 = vmor %vm773_vm5, %vm774_vm4  ;;  %v794_v52 = vand.u32 2147483648, %v749_v15  ;;  %v792_v53 = vand.u32 2147483647, %v749_v15 }
 0xb57   :  { %v770_v33 = vsub.f32 1.0, %v769_v31  ;;  %vm788_vm9 = vweird.f32 %v749_v15 }
 0xb58   :  { %v736_v35 = vmul.f32 1.442695, %v724_v58  ;;  %v795_v38 = vor.u32 1.1754944e-38, %v794_v52  ;;  %vm793_vm11 = vcmp.eq.f32.partialorder %v792_v53, 8.507059e+37  ;;  %v979_v58 = vld [vmem:[%s3381_s9 + $0x10] sm:$0xff] }
 0xb59   :  { %v771_v37 = vmul.f32 %v2246_v30, %v770_v33  ;;  %1022 = vmatpush.msrb.mxu0 %v979_v58  ;;  %v978_v33 = vld [vmem:[%s3381_s9 + $0x8] sm:$0xff] }
 0xb5a   :  { %2249 = vpow2.f32 %v736_v35 }
 0xb5b   :  { %v772_v40 = vadd.f32 %v2246_v30, %v771_v37  ;;  %1023 = vmatpush.msrb.mxu0 %v978_v33 }
 0xb5c   :  { %v2248_v41 = vpop.eup %2247 }
 0xb5d   :  { %v776_v43 = vsel %vm775_vm6, %v2246_v30, %v772_v40  ;;  %v784_v44 = vmul.f32 %v2248_v41, %v749_v15  ;;  %v752_v46 = vpop.xlane.xlu2 %751  ;;  %v716_v47 = vpop.xlane.xlu0 %715  ;;  %vm789_vm8 = vweird.f32 %v2248_v41  ;;  %1024 = vmatpush.msrb.mxu0 %v977_v34 }
 0xb5e   :  { %v781_v48 = vsel %vm778_vm7, %v780_v42, %v776_v43  ;;  %2251 = vrcp.f32 %v752_v46  ;;  %v726_v49 = vsub.f32 %v693_v10, %v716_v47  ;;  %vm790_vm10 = vmor %vm788_vm9, %vm789_vm8  ;;  %v809_v5 = vand.u32 2147483648, %v752_v46 }
 0xb5f   :  { %v785_v45 = vsub.f32 1.0, %v784_v44  ;;  %v782_v50 = vmul.f32 %v2829_v56, %v781_v48  ;;  %v807_v10 = vand.u32 2147483647, %v752_v46  ;;  %vm803_vm13 = vweird.f32 %v752_v46 }
 0xb60   :  { %v2866_v51 = vpop.eup %2249  ;;  %v740_v36 = vmul.f32 1.442695, %v726_v49  ;;  %v810_v14 = vor.u32 1.1754944e-38, %v809_v5 }
 0xb61   :  { %v786_v54 = vmul.f32 %v2248_v41, %v785_v45  ;;  %2103 = vmatmul.msk.f32.vlgmr.msra.gmra.mxu2 %vm695_vm3, %v782_v50  ;;  %v756_v55 = vsel %vm695_vm3, %v2866_v51, 0.0  ;;  %vm808_vm15 = vcmp.eq.f32.partialorder %v807_v10, 8.507059e+37  ;;  %v1050_v10 = vld [vmem:[%s3383_s11] sm:$0xff] }
 0xb62   :  { %757 = vadd.xlane.f32.xlu2 %v756_v55  ;;  %2253 = vpow2.f32 %v740_v36 }
 0xb63   :  { %v787_v56 = vadd.f32 %v2248_v41, %v786_v54 }
 0xb64   :  { %v2252_v60 = vpop.eup %2251 }
 0xb65   :  { %v799_v61 = vmul.f32 %v2252_v60, %v752_v46  ;;  %v719_v62 = vpop.xlane.xlu0 %718  ;;  %v791_v63 = vsel %vm790_vm10, %v2248_v41, %v787_v56  ;;  %vm804_vm12 = vweird.f32 %v2252_v60  ;;  %v2923_v56 = vld [vmem:[%s3384_s12 + $0x18] sm:$0xff] }
 0xb66   :  { %v727_v0 = vsub.f32 %v2852_v21, %v719_v62  ;;  %v796_v2 = vsel %vm793_vm11, %v795_v38, %v791_v63  ;;  %vm805_vm14 = vmor %vm803_vm13, %vm804_vm12  ;;  %1148 = vmatpush.msrb.mxu2 %v2923_v56  ;;  %v2936_v62 = vld [vmem:[%s3384_s12 + $0x10] sm:$0xff]  ;;  %1344 = vmatpush.msra.mxu0 %v2923_v56 }
 0xb67   :  { %v800_v3 = vsub.f32 1.0, %v799_v61  ;;  %v797_v4 = vmul.f32 %v2836_v1, %v796_v2  ;;  %v1051_v2 = vld [vmem:[%s3383_s11 + $0x8] sm:$0xff] }
 0xb68   :  { %v742_v6 = vmul.f32 1.442695, %v727_v0  ;;  %v2876_v7 = vpop.eup %2253  ;;  %1149 = vmatpush.msrb.mxu2 %v2936_v62  ;;  %1345 = vmatpush.msra.mxu0 %v2936_v62 }
 0xb69   :  { %v801_v8 = vmul.f32 %v2252_v60, %v800_v3  ;;  %2104 = vmatmul.msk.f32.gmra.mxu2 %vm695_vm3, %v797_v4  ;;  %v762_v11 = vsel %vm695_vm3, %v2876_v7, 0.0 }
 0xb6a   :  { %2255 = vpow2.f32 %v742_v6  ;;  %763 = vadd.xlane.f32.xlu1 %v762_v11  ;;  %v2947_v6 = vld [vmem:[%s3384_s12 + $0x8] sm:$0xff] }
 0xb6b   :  { %v802_v13 = vadd.f32 %v2252_v60, %v801_v8  ;;  %1150 = vmatpush.msrb.mxu2 %v2947_v6  ;;  %1346 = vmatpush.msra.mxu0 %v2947_v6 }
 0xb6d   :  { %v755_v16 = vpop.xlane.xlu0 %754  ;;  %v806_v1 = vsel %vm805_vm14, %v2252_v60, %v802_v13  ;;  %v1052_v60 = vld [vmem:[%s3383_s11 + $0x10] sm:$0xff]  ;;  %v2967_v13 = vld [vmem:[%s3384_s12] sm:$0xff] }
 0xb6e   :  { %2257 = vrcp.f32 %v755_v16  ;;  %v811_v17 = vsel %vm808_vm15, %v810_v14, %v806_v1  ;;  %v824_v27 = vand.u32 2147483648, %v755_v16  ;;  %v822_v29 = vand.u32 2147483647, %v755_v16  ;;  %1095 = vmatpush.msra.mxu3 %v1052_v60  ;;  %1151 = vmatpush.msrb.mxu2 %v2967_v13 }
 0xb6f   :  { %v812_v20 = vmul.f32 %v2846_v57, %v811_v17  ;;  %vm818_vm1 = vweird.f32 %v755_v16  ;;  %1347 = vmatpush.msra.mxu0 %v2967_v13 }
 0xb70   :  { %v2882_v21 = vpop.eup %2255  ;;  %v825_v31 = vor.u32 1.1754944e-38, %v824_v27  ;;  %vm823_vm5 = vcmp.eq.f32.partialorder %v822_v29, 8.507059e+37  ;;  %1096 = vmatpush.msra.mxu3 %v1051_v2 }
 0xb71   :  { %2105 = vmatmul.msk.f32.gmra.mxu2 %vm695_vm3, %v812_v20  ;;  %v765_v22 = vsel %vm695_vm3, %v2882_v21, 0.0 }
 0xb72   :  { %766 = vadd.xlane.f32.xlu2 %v765_v22  ;;  %1097 = vmatpush.msra.mxu3 %v1050_v10 }
 0xb74   :  { %v2258_v24 = vpop.eup %2257  ;;  %1638 = vmatpush.msrb.mxu3 %v2923_v56 }
 0xb75   :  { %v814_v25 = vmul.f32 %v2258_v24, %v755_v16  ;;  %vm819_vm0 = vweird.f32 %v2258_v24  ;;  %v761_v35 = vpop.xlane.xlu0 %760 }
 0xb76   :  { %vm820_vm4 = vmor %vm818_vm1, %vm819_vm0  ;;  %2259 = vrcp.f32 %v761_v35  ;;  %v854_v63 = vand.u32 2147483648, %v761_v35  ;;  %vm848_vm11 = vweird.f32 %v761_v35  ;;  %v852_v5 = vand.u32 2147483647, %v761_v35  ;;  %1639 = vmatpush.msrb.mxu3 %v2936_v62 }
 0xb77   :  { %v815_v26 = vsub.f32 1.0, %v814_v25 }
 0xb78   :  { %v855_v14 = vor.u32 1.1754944e-38, %v854_v63  ;;  %vm853_vm13 = vcmp.eq.f32.partialorder %v852_v5, 8.507059e+37  ;;  %1640 = vmatpush.msrb.mxu3 %v2947_v6 }
 0xb79   :  { %v816_v19 = vmul.f32 %v2258_v24, %v815_v26 }
 0xb7a   :  { %1641 = vmatpush.msrb.mxu3 %v2967_v13 }
 0xb7b   :  { %v817_v30 = vadd.f32 %v2258_v24, %v816_v19 }
 0xb7c   :  { %v2898_v37 = vpop.eup %2259 }
 0xb7d   :  { %v821_v57 = vsel %vm820_vm4, %v2258_v24, %v817_v30  ;;  %v844_v39 = vmul.f32 %v2898_v37, %v761_v35  ;;  %vm849_vm9 = vweird.f32 %v2898_v37 }
 0xb7e   :  { %v826_v32 = vsel %vm823_vm5, %v825_v31, %v821_v57  ;;  %vm2951_vm12 = vmor %vm848_vm11, %vm849_vm9 }
 0xb7f   :  { %v827_v15 = vmul.f32 %v2856_v12, %v826_v32  ;;  %v845_v42 = vsub.f32 1.0, %v844_v39  ;;  %v2199_v39 = vld [vmem:[#allocation2] ss:$0 sm:$0xff] }
 0xb81   :  { %2106 = vmatmul.msk.f32.gmra.mxu2 %vm695_vm3, %v827_v15  ;;  %v846_v48 = vmul.f32 %v2898_v37, %v845_v42 }
 0xb83   :  { %v847_v61 = vadd.f32 %v2898_v37, %v846_v48 }
 0xb85   :  { %v851_v11 = vsel %vm2951_vm12, %v2898_v37, %v847_v61 }
 0xb86   :  { %v856_v20 = vsel %vm853_vm13, %v855_v14, %v851_v11  ;;  %v3030_v11 = vld [vmem:[#allocation4 + $0x8] sm:$0xff]  ;;  %v3032_v14 = vld [vmem:[#allocation6 + $0x18] sm:$0xff] }
 0xb87   :  { %v857_v26 = vmul.f32 %v2860_v28, %v856_v20  ;;  %1184 = vmatpush.msra.mxu2 %v3032_v14  ;;  %v3053_v20 = vld [vmem:[#allocation4] sm:$0xff] }
 0xbd5   :  { %v758_v12 = vpop.xlane.xlu2 %757 }
 0xbd6   :  { %2261 = vrcp.f32 %v758_v12  ;;  %v839_v47 = vand.u32 2147483648, %v758_v12  ;;  %v837_v45 = vand.u32 2147483647, %v758_v12  ;;  %vm833_vm7 = vweird.f32 %v758_v12 }
 0xbd8   :  { %v840_v54 = vor.u32 1.1754944e-38, %v839_v47  ;;  %vm838_vm10 = vcmp.eq.f32.partialorder %v837_v45, 8.507059e+37 }
 0xbdc   :  { %v2262_v40 = vpop.eup %2261 }
 0xbdd   :  { %v829_v41 = vmul.f32 %v2262_v40, %v758_v12  ;;  %v2901_v43 = vpop.xlane.xlu1 %763  ;;  %vm834_vm6 = vweird.f32 %v2262_v40 }
 0xbde   :  { %2263 = vrcp.f32 %v2901_v43  ;;  %vm2905_vm8 = vmor %vm833_vm7, %vm834_vm6  ;;  %v869_v24 = vand.u32 2147483648, %v2901_v43  ;;  %vm863_vm15 = vweird.f32 %v2901_v43  ;;  %v867_v27 = vand.u32 2147483647, %v2901_v43 }
 0xbdf   :  { %v830_v44 = vsub.f32 1.0, %v829_v41 }
 0xbe0   :  { %v870_v30 = vor.u32 1.1754944e-38, %v869_v24  ;;  %vm868_vm1 = vcmp.eq.f32.partialorder %v867_v27, 8.507059e+37 }
 0xbe1   :  { %v831_v46 = vmul.f32 %v2262_v40, %v830_v44 }
 0xbe3   :  { %v832_v49 = vadd.f32 %v2262_v40, %v831_v46 }
 0xbe4   :  { %v953_v50 = vpop.f32.mrf.mxu2  ;;  %v2909_v53 = vpop.eup %2263 }
 0xbe5   :  { %2111 = vmatmul.msk.f32.vlgmr.msrb.gmra.mxu0 %vm196_vm2, %v953_v50  ;;  %v2912_v36 = vpop.xlane.xlu2 %766  ;;  %v836_v55 = vsel %vm2905_vm8, %v2262_v40, %v832_v49  ;;  %v859_v38 = vmul.f32 %v2909_v53, %v2901_v43  ;;  %vm864_vm14 = vweird.f32 %v2909_v53  ;;  %v3012_v50 = vld [vmem:[%s3385_s13] ss:$0 sm:$0xff] }
 0xbe6   :  { %2265 = vrcp.f32 %v2912_v36  ;;  %v841_v0 = vsel %vm838_vm10, %v840_v54, %v836_v55  ;;  %1442 = vmatpush.msrb.mxu0 %v2923_v56  ;;  %vm865_vm0 = vmor %vm863_vm15, %vm864_vm14  ;;  %v884_v32 = vand.u32 2147483648, %v2912_v36  ;;  %vm878_vm5 = vweird.f32 %v2912_v36 }
 0xbe7   :  { %v860_v3 = vsub.f32 1.0, %v859_v38  ;;  %v842_v4 = vmul.f32 %v2866_v51, %v841_v0  ;;  %v882_v58 = vand.u32 2147483647, %v2912_v36 }
 0xbe8   :  { %1443 = vmatpush.msrb.mxu0 %v2936_v62  ;;  %v885_v34 = vor.u32 1.1754944e-38, %v884_v32 }
 0xbe9   :  { %v861_v51 = vmul.f32 %v2909_v53, %v860_v3  ;;  %2107 = vmatmul.msk.f32.gmra.mxu2 %vm695_vm3, %v842_v4  ;;  %vm883_vm7 = vcmp.eq.f32.partialorder %v882_v58, 8.507059e+37 }
 0xbea   :  { %1444 = vmatpush.msrb.mxu0 %v2947_v6 }
 0xbeb   :  { %v862_v22 = vadd.f32 %v2909_v53, %v861_v51  ;;  %v3028_v51 = vld [vmem:[#allocation4 + $0x10] sm:$0xff] }
 0xbec   :  { %v2266_v16 = vpop.eup %2265  ;;  %v956_v1 = vpop.f32.mrf.mxu2  ;;  %1445 = vmatpush.msrb.mxu0 %v2967_v13 }
 0xbed   :  { %v874_v17 = vmul.f32 %v2266_v16, %v2912_v36  ;;  %2112 = vmatmul.msk.f32.gmra.mxu0 %vm196_vm2, %v956_v1  ;;  %v866_v29 = vsel %vm865_vm0, %v2909_v53, %v862_v22  ;;  %vm879_vm4 = vweird.f32 %v2266_v16  ;;  %v3015_v36 = vld [vmem:[#allocation4 + $0x18] sm:$0xff]  ;;  %v3042_v1 = vld [vmem:[#allocation6 + $0x8] sm:$0xff] }
 0xbee   :  { %v871_v28 = vsel %vm868_vm1, %v870_v30, %v866_v29  ;;  %vm880_vm6 = vmor %vm878_vm5, %vm879_vm4  ;;  %1207 = vmatpush.msrb.mxu1 %v3015_v36 }
 0xbef   :  { %v875_v25 = vsub.f32 1.0, %v874_v17  ;;  %v872_v15 = vmul.f32 %v2876_v7, %v871_v28  ;;  %v3046_v17 = vld [vmem:[#allocation6] sm:$0xff] }
 0xbf0   :  { %1208 = vmatpush.msrb.mxu1 %v3028_v51 }
 0xbf1   :  { %v876_v19 = vmul.f32 %v2266_v16, %v875_v25  ;;  %2108 = vmatmul.msk.f32.gmra.mxu2 %vm695_vm3, %v857_v26 }
 0xbf2   :  { %1209 = vmatpush.msrb.mxu1 %v3030_v11 }
 0xbf3   :  { %v877_v57 = vadd.f32 %v2266_v16, %v876_v19 }
 0xbf4   :  { %v959_v31 = vpop.f32.mrf.mxu2  ;;  %1210 = vmatpush.msrb.mxu1 %v3053_v20 }
 0xbf5   :  { %2113 = vmatmul.msk.f32.gmra.mxu0 %vm196_vm2, %v959_v31  ;;  %v881_v33 = vsel %vm880_vm6, %v2266_v16, %v877_v57  ;;  %v3036_v16 = vld [vmem:[#allocation6 + $0x10] sm:$0xff]  ;;  %v3079_v31 = vld [vmem:[%s3388_s16] ss:$0 sm:$0xff] }
 0xbf6   :  { %v886_v35 = vsel %vm883_vm7, %v885_v34, %v881_v33  ;;  %1185 = vmatpush.msra.mxu2 %v3036_v16  ;;  %1285 = vmatpush.msra.mxu1 %v3032_v14 }
 0xbf7   :  { %v887_v12 = vmul.f32 %v2882_v21, %v886_v35 }
 0xbf8   :  { %1186 = vmatpush.msra.mxu2 %v3042_v1  ;;  %1286 = vmatpush.msra.mxu1 %v3036_v16 }
 0xbf9   :  { %2109 = vmatmul.msk.f32.gmra.mxu2 %vm695_vm3, %v872_v15 }
 0xbfa   :  { %1187 = vmatpush.msra.mxu2 %v3046_v17  ;;  %1287 = vmatpush.msra.mxu1 %v3042_v1 }
 0xbfc   :  { %1288 = vmatpush.msra.mxu1 %v3046_v17 }
 0xc01   :  { %2110 = vmatmul.msk.f32.gmra.mxu2 %vm695_vm3, %v887_v12  ;;  %vm2049_vm3 = vcmask 64512  }
 0xc04   :  { %v962_v37 = vpop.f32.mrf.mxu2 }
 0xc05   :  { %2114 = vmatmul.msk.f32.gmra.mxu0 %vm196_vm2, %v962_v37 }
 0xc09   :  { %1152 = vmatmul.f32.vlgmr.msrb.gmra.mxu2 %v2412_v9 }
 0xc0a   :  { %1246 = vmatpush.msrb.mxu2 %v2923_v56 }
 0xc0c   :  { %1247 = vmatpush.msrb.mxu2 %v2936_v62 }
 0xc0e   :  { %1248 = vmatpush.msrb.mxu2 %v2947_v6 }
 0xc10   :  { %1249 = vmatpush.msrb.mxu2 %v2967_v13 }
 0xc11   :  { %1188 = vmatmul.f32.vlgmr.msra.gmra.mxu2 %v2412_v9 }
 0xc12   :  { %1308 = vmatpush.msra.mxu2 %v3015_v36 }
 0xc14   :  { %1309 = vmatpush.msra.mxu2 %v3028_v51 }
 0xc16   :  { %1310 = vmatpush.msra.mxu2 %v3030_v11 }
 0xc18   :  { %1311 = vmatpush.msra.mxu2 %v3053_v20 }
 0xc62   :  { %v1026_v7 = vpop.f32.mrf.mxu0 }
 0xc63   :  { %v1027_v40 = vadd.f32 %v2199_v39, %v1026_v7 }
 0xc65   :  { %2119 = vmatmul.msk.f32.vlgmr.msra.gmra.mxu3 %vm196_vm2, %v1027_v40 }
 0xc66   :  { %1775 = vmatpush.msra.mxu3 %v3032_v14 }
 0xc68   :  { %1776 = vmatpush.msra.mxu3 %v3036_v16 }
 0xc6a   :  { %v1029_v41 = vpop.f32.mrf.mxu0  ;;  %1777 = vmatpush.msra.mxu3 %v3042_v1 }
 0xc6b   :  { %v1030_v42 = vadd.f32 %v2199_v39, %v1029_v41 }
 0xc6c   :  { %v965_v43 = vpop.f32.mrf.mxu2  ;;  %1778 = vmatpush.msra.mxu3 %v3046_v17 }
 0xc6d   :  { %2120 = vmatmul.msk.f32.gmra.mxu3 %vm196_vm2, %v1030_v42  ;;  %2115 = vmatmul.msk.f32.gmra.mxu0 %vm196_vm2, %v965_v43 }
 0xc72   :  { %v1032_v21 = vpop.f32.mrf.mxu0 }
 0xc73   :  { %v1033_v44 = vadd.f32 %v2199_v39, %v1032_v21 }
 0xc74   :  { %v968_v46 = vpop.f32.mrf.mxu2 }
 0xc75   :  { %2121 = vmatmul.msk.f32.gmra.mxu3 %vm196_vm2, %v1033_v44  ;;  %2116 = vmatmul.msk.f32.gmra.mxu0 %vm196_vm2, %v968_v46 }
 0xc7c   :  { %v971_v47 = vpop.f32.mrf.mxu2 }
 0xc7d   :  { %2117 = vmatmul.msk.f32.gmra.mxu0 %vm196_vm2, %v971_v47 }
 0xc82   :  { %v1035_v48 = vpop.f32.mrf.mxu0 }
 0xc83   :  { %v1036_v45 = vadd.f32 %v2199_v39, %v1035_v48 }
 0xc84   :  { %v974_v49 = vpop.f32.mrf.mxu2 }
 0xc85   :  { %2122 = vmatmul.msk.f32.gmra.mxu3 %vm196_vm2, %v1036_v45  ;;  %2118 = vmatmul.msk.f32.gmra.mxu0 %vm196_vm2, %v974_v49 }
 0xc8c   :  { %v1153_v53 = vpop.f32.mrf.mxu2 }
 0xc94   :  { %v1189_v30 = vpop.f32.mrf.mxu2 }
 0xce8   :  { %v1099_v52 = vpop.f32.mrf.mxu3 }
 0xce9   :  { %v1100_v54 = vadd.f32 %v3012_v50, %v1099_v52 }
 0xcea   :  { %v1038_v55 = vpop.f32.mrf.mxu0 }
 0xceb   :  { %v1156_v59 = vadd.f32 %v1153_v53, %v1100_v54  ;;  %v1039_v60 = vadd.f32 %v2199_v39, %v1038_v55 }
 0xced   :  { %v1157_v38 = vmul.f32 %v1156_v59, %v2596_v18  ;;  %2123 = vmatmul.msk.f32.gmra.mxu3 %vm196_vm2, %v1039_v60 }
 0xcef   :  { %2267 = vtanh.f32 %v1157_v38 }
 0xcf0   :  { %v1102_v32 = vpop.f32.mrf.mxu3 }
 0xcf1   :  { %v1103_v58 = vadd.f32 %v3012_v50, %v1102_v32 }
 0xcf2   :  { %v1041_v61 = vpop.f32.mrf.mxu0 }
 0xcf3   :  { %v1042_v63 = vadd.f32 %v2199_v39, %v1041_v61 }
 0xcf5   :  { %v2268_v0 = vpop.eup %2267  ;;  %2124 = vmatmul.msk.f32.gmra.mxu3 %vm196_vm2, %v1042_v63 }
 0xcf6   :  { %v1159_v2 = vmul.f32 %v2268_v0, %v2596_v18 }
 0xcf8   :  { %v1160_v3 = vadd.f32 %v1159_v2, %v2600_v23  ;;  %v1105_v63 = vpop.f32.mrf.mxu3 }
 0xcf9   :  { %v1106_v0 = vadd.f32 %v3012_v50, %v1105_v63 }
 0xcfa   :  { %1163 = vrot.lane.b32.xlu2 %v1160_v3, %s2414_s6  ;;  %1165 = vrot.lane.b32.xlu1 %v1160_v3, %s2416_s20  ;;  %v1044_v4 = vpop.f32.mrf.mxu0 }
 0xcfb   :  { %1161 = vrot.lane.b32.xlu0 %v1160_v3, %s2415_s30  ;;  %v1045_v5 = vadd.f32 %v2199_v39, %v1044_v4 }
 0xcfd   :  { %2125 = vmatmul.msk.f32.gmra.mxu3 %vm196_vm2, %v1045_v5 }
 0xd02   :  { %v1047_v8 = vpop.f32.mrf.mxu0 }
 0xd03   :  { %v1048_v10 = vadd.f32 %v2199_v39, %v1047_v8 }
 0xd05   :  { %2126 = vmatmul.msk.f32.gmra.mxu3 %vm196_vm2, %v1048_v10 }
 0xd54   :  { %v1164_v19 = vpop.permute.xlu2 %1163 }
 0xd6c   :  { %v1166_v9 = vpop.permute.xlu1 %1165 }
 0xd6d   :  { %v1168_v22 = vmul.f32 %v1166_v9, %v1160_v3  ;;  %v1162_v24 = vpop.permute.xlu0 %1161 }
 0xd6e   :  { %v1167_v25 = vmul.f32 0.0, %v1162_v24 }
 0xd70   :  { %v1169_v26 = vadd.f32 %v1168_v22, %v1167_v25 }
 0xd72   :  { %2269 = vtanh.f32 %v1169_v26 }
 0xd78   :  { %v2270_v27 = vpop.eup %2269 }
 0xd79   :  { %v1171_v29 = vmul.f32 %v2270_v27, %v1164_v19 }
 0xd7b   :  { %2127 = vmatmul.msk.f32.vlgmr.msrb.gmra.mxu1 %vm196_vm2, %v1171_v29  ;;  %2128 = vmatmul.msk.f32.vlgmr.msrb.gmra.mxu2 %vm196_vm2, %v1171_v29 }
 0xd7c   :  { %1406 = vmatpush.msrb.mxu2 %v3015_v36  ;;  %1383 = vmatpush.msrb.mxu1 %v3032_v14 }
 0xd7e   :  { %1407 = vmatpush.msrb.mxu2 %v3028_v51  ;;  %1384 = vmatpush.msrb.mxu1 %v3036_v16 }
 0xd80   :  { %1408 = vmatpush.msrb.mxu2 %v3030_v11  ;;  %1385 = vmatpush.msrb.mxu1 %v3042_v1 }
 0xd82   :  { %1409 = vmatpush.msrb.mxu2 %v3053_v20  ;;  %1386 = vmatpush.msrb.mxu1 %v3046_v17 }
 0xdf8   :  { %v1212_v28 = vpop.f32.mrf.mxu1 }
 0xdf9   :  { %v1213_v57 = vadd.f32 %v1212_v28, %v1189_v30 }
 0xdfb   :  { %v1218_v15 = vadd.f32 %v3079_v31, %v1213_v57 }
 0xdfd   :  { %v1219_v33 = vmul.f32 %v1218_v15, %v2596_v18 }
 0xdfe   :  { %v1251_v34 = vpop.f32.mrf.mxu2 }
 0xdff   :  { %2271 = vtanh.f32 %v1219_v33  ;;  %v1254_v35 = vadd.f32 %v1251_v34, %v1103_v58 }
 0xe01   :  { %v1255_v12 = vmul.f32 %v1254_v35, %v2596_v18 }
 0xe03   :  { %2273 = vtanh.f32 %v1255_v12 }
 0xe05   :  { %v2272_v37 = vpop.eup %2271 }
 0xe06   :  { %v1221_v39 = vmul.f32 %v2272_v37, %v2596_v18 }
 0xe08   :  { %v1222_v7 = vadd.f32 %v1221_v39, %v2600_v23 }
 0xe09   :  { %v2274_v40 = vpop.eup %2273 }
 0xe0a   :  { %1227 = vrot.lane.b32.xlu2 %v1222_v7, %s2416_s20  ;;  %v1257_v41 = vmul.f32 %v2274_v40, %v2596_v18 }
 0xe0c   :  { %v1258_v42 = vadd.f32 %v1257_v41, %v2600_v23 }
 0xe0e   :  { %1263 = vrot.lane.b32.xlu1 %v1258_v42, %s2416_s20  ;;  %1259 = vrot.lane.b32.xlu0 %v1258_v42, %s2415_s30 }
 0xe16   :  { %1261 = vrot.lane.b32.xlu1 %v1258_v42, %s2414_s6  ;;  %1223 = vrot.lane.b32.xlu0 %v1222_v7, %s2415_s30 }
 0xe1e   :  { %1225 = vrot.lane.b32.xlu0 %v1222_v7, %s2414_s6 }
 0xe64   :  { %v1228_v48 = vpop.permute.xlu2 %1227 }
 0xe65   :  { %v1230_v49 = vmul.f32 %v1228_v48, %v1222_v7 }
 0xe80   :  { %v1264_v43 = vpop.permute.xlu1 %1263  ;;  %v1260_v21 = vpop.permute.xlu0 %1259 }
 0xe81   :  { %v1266_v44 = vmul.f32 %v1264_v43, %v1258_v42  ;;  %v1265_v46 = vmul.f32 %v1260_v21, %v1169_v26  ;;  %v1108_v43 = vpop.f32.mrf.mxu3 }
 0xe82   :  { %v1109_v21 = vadd.f32 %v3012_v50, %v1108_v43 }
 0xe83   :  { %v1267_v47 = vadd.f32 %v1266_v44, %v1265_v46 }
 0xe85   :  { %2275 = vtanh.f32 %v1267_v47 }
 0xe88   :  { %v1224_v45 = vpop.permute.xlu0 %1223  ;;  %v1262_v54 = vpop.permute.xlu1 %1261 }
 0xe89   :  { %v1229_v52 = vmul.f32 0.0, %v1224_v45 }
 0xe8b   :  { %v2276_v53 = vpop.eup %2275  ;;  %v1231_v55 = vadd.f32 %v1230_v49, %v1229_v52 }
 0xe8c   :  { %v1269_v59 = vmul.f32 %v2276_v53, %v1262_v54 }
 0xe8d   :  { %2277 = vtanh.f32 %v1231_v55 }
 0xe8e   :  { %2130 = vmatmul.msk.f32.vlgmr.msra.gmra.mxu2 %vm196_vm2, %v1269_v59  ;;  %2131 = vmatmul.msk.f32.vlgmr.msra.gmra.mxu0 %vm196_vm2, %v1269_v59 }
 0xe8f   :  { %1504 = vmatpush.msra.mxu2 %v3015_v36  ;;  %1540 = vmatpush.msra.mxu0 %v2923_v56 }
 0xe90   :  { %v1226_v38 = vpop.permute.xlu0 %1225 }
 0xe91   :  { %1505 = vmatpush.msra.mxu2 %v3028_v51  ;;  %1541 = vmatpush.msra.mxu0 %v2936_v62 }
 0xe93   :  { %v2278_v60 = vpop.eup %2277  ;;  %1506 = vmatpush.msra.mxu2 %v3030_v11  ;;  %1542 = vmatpush.msra.mxu0 %v2947_v6 }
 0xe94   :  { %v3103_v61 = vmul.f32 %v2278_v60, %v1226_v38 }
 0xe95   :  { %1507 = vmatpush.msra.mxu2 %v3053_v20  ;;  %1543 = vmatpush.msra.mxu0 %v2967_v13 }
 0xe96   :  { %2129 = vmatmul.msk.f32.vlgmr.msra.gmra.mxu1 %vm196_vm2, %v3103_v61 }
 0xe97   :  { %1481 = vmatpush.msra.mxu1 %v3032_v14 }
 0xe99   :  { %1482 = vmatpush.msra.mxu1 %v3036_v16 }
 0xe9b   :  { %1483 = vmatpush.msra.mxu1 %v3042_v1 }
 0xe9d   :  { %1484 = vmatpush.msra.mxu1 %v3046_v17 }
 0xf0b   :  { %v1349_v2 = vpop.f32.mrf.mxu0 }
 0xf0c   :  { %v1352_v3 = vadd.f32 %v1349_v2, %v1106_v0 }
 0xf0e   :  { %v1353_v4 = vmul.f32 %v1352_v3, %v2596_v18 }
 0xf10   :  { %2279 = vtanh.f32 %v1353_v4 }
 0xf11   :  { %v1313_v5 = vpop.f32.mrf.mxu2 }
 0xf13   :  { %v1290_v8 = vpop.f32.mrf.mxu1 }
 0xf14   :  { %v1314_v10 = vadd.f32 %v1313_v5, %v1290_v8 }
 0xf16   :  { %v2280_v9 = vpop.eup %2279  ;;  %v1316_v22 = vadd.f32 %v3079_v31, %v1314_v10 }
 0xf17   :  { %v1355_v24 = vmul.f32 %v2280_v9, %v2596_v18 }
 0xf18   :  { %v1317_v25 = vmul.f32 %v1316_v22, %v2596_v18 }
 0xf19   :  { %v1356_v26 = vadd.f32 %v1355_v24, %v2600_v23 }
 0xf1a   :  { %2281 = vtanh.f32 %v1317_v25 }
 0xf1b   :  { %1361 = vrot.lane.b32.xlu1 %v1356_v26, %s2416_s20  ;;  %1357 = vrot.lane.b32.xlu2 %v1356_v26, %s2415_s30 }
 0xf20   :  { %v2282_v27 = vpop.eup %2281 }
 0xf21   :  { %v1319_v19 = vmul.f32 %v2282_v27, %v2596_v18 }
 0xf23   :  { %1359 = vrot.lane.b32.xlu1 %v1356_v26, %s2414_s6  ;;  %v1320_v29 = vadd.f32 %v1319_v19, %v2600_v23 }
 0xf25   :  { %1321 = vrot.lane.b32.xlu0 %v1320_v29, %s2415_s30  ;;  %1325 = vrot.lane.b32.xlu2 %v1320_v29, %s2416_s20 }
 0xf2d   :  { %1323 = vrot.lane.b32.xlu0 %v1320_v29, %s2414_s6 }
 0xf75   :  { %v1358_v30 = vpop.permute.xlu2 %1357 }
 0xf76   :  { %v1363_v57 = vmul.f32 %v1358_v30, %v1267_v47 }
 0xf7f   :  { %v1326_v58 = vpop.permute.xlu2 %1325 }
 0xf80   :  { %v1328_v35 = vmul.f32 %v1326_v58, %v1320_v29 }
 0xf8d   :  { %v1362_v28 = vpop.permute.xlu1 %1361 }
 0xf8e   :  { %v1364_v32 = vmul.f32 %v1362_v28, %v1356_v26  ;;  %v1111_v28 = vpop.f32.mrf.mxu3 }
 0xf90   :  { %v1365_v15 = vadd.f32 %v1364_v32, %v1363_v57  ;;  %v1112_v57 = vadd.f32 %v3012_v50, %v1111_v28 }
 0xf92   :  { %2283 = vtanh.f32 %v1365_v15 }
 0xf95   :  { %v1360_v12 = vpop.permute.xlu1 %1359 }
 0xf97   :  { %v1322_v33 = vpop.permute.xlu0 %1321 }
 0xf98   :  { %v2284_v34 = vpop.eup %2283  ;;  %v1327_v37 = vmul.f32 %v1322_v33, %v1231_v55 }
 0xf99   :  { %v1367_v39 = vmul.f32 %v2284_v34, %v1360_v12 }
 0xf9a   :  { %v1329_v7 = vadd.f32 %v1328_v35, %v1327_v37 }
 0xf9b   :  { %2133 = vmatmul.msk.f32.vlgmr.msrb.gmra.mxu2 %vm196_vm2, %v1367_v39  ;;  %2134 = vmatmul.msk.f32.vlgmr.msrb.gmra.mxu0 %vm196_vm2, %v1367_v39 }
 0xf9c   :  { %2285 = vtanh.f32 %v1329_v7  ;;  %1602 = vmatpush.msrb.mxu2 %v3015_v36  ;;  %1677 = vmatpush.msrb.mxu0 %v3032_v14 }
 0xf9e   :  { %1603 = vmatpush.msrb.mxu2 %v3028_v51  ;;  %1678 = vmatpush.msrb.mxu0 %v3036_v16 }
 0xf9f   :  { %v1324_v41 = vpop.permute.xlu0 %1323 }
 0xfa0   :  { %1604 = vmatpush.msrb.mxu2 %v3030_v11  ;;  %1679 = vmatpush.msrb.mxu0 %v3042_v1 }
 0xfa2   :  { %v2286_v40 = vpop.eup %2285  ;;  %1605 = vmatpush.msrb.mxu2 %v3053_v20  ;;  %1680 = vmatpush.msrb.mxu0 %v3046_v17 }
 0xfa3   :  { %v3137_v42 = vmul.f32 %v2286_v40, %v1324_v41 }
 0xfa5   :  { %2132 = vmatmul.msk.f32.vlgmr.msrb.gmra.mxu1 %vm196_vm2, %v3137_v42 }
 0xfa6   :  { %1579 = vmatpush.msrb.mxu1 %v3032_v14 }
 0xfa8   :  { %1580 = vmatpush.msrb.mxu1 %v3036_v16 }
 0xfaa   :  { %1581 = vmatpush.msrb.mxu1 %v3042_v1 }
 0xfac   :  { %1582 = vmatpush.msrb.mxu1 %v3046_v17 }
0x1018   :  { %v1447_v44 = vpop.f32.mrf.mxu0 }
0x1019   :  { %v1450_v46 = vadd.f32 %v1447_v44, %v1109_v21 }
0x101b   :  { %v1451_v47 = vmul.f32 %v1450_v46, %v2596_v18 }
0x101d   :  { %2287 = vtanh.f32 %v1451_v47 }
0x101e   :  { %v1411_v48 = vpop.f32.mrf.mxu2 }
0x1022   :  { %v1388_v45 = vpop.f32.mrf.mxu1 }
0x1023   :  { %v2288_v49 = vpop.eup %2287  ;;  %v1412_v52 = vadd.f32 %v1411_v48, %v1388_v45 }
0x1024   :  { %v1453_v53 = vmul.f32 %v2288_v49, %v2596_v18 }
0x1025   :  { %v1414_v54 = vadd.f32 %v3079_v31, %v1412_v52 }
0x1026   :  { %v1454_v55 = vadd.f32 %v1453_v53, %v2600_v23 }
0x1027   :  { %v1415_v59 = vmul.f32 %v1414_v54, %v2596_v18 }
0x1028   :  { %1459 = vrot.lane.b32.xlu1 %v1454_v55, %s2416_s20  ;;  %1455 = vrot.lane.b32.xlu2 %v1454_v55, %s2415_s30 }
0x1029   :  { %2289 = vtanh.f32 %v1415_v59 }
0x102f   :  { %v2290_v60 = vpop.eup %2289 }
0x1030   :  { %1457 = vrot.lane.b32.xlu1 %v1454_v55, %s2414_s6  ;;  %v1417_v38 = vmul.f32 %v2290_v60, %v2596_v18 }
0x1032   :  { %v1418_v63 = vadd.f32 %v1417_v38, %v2600_v23 }
0x1034   :  { %1423 = vrot.lane.b32.xlu2 %v1418_v63, %s2416_s20  ;;  %1419 = vrot.lane.b32.xlu0 %v1418_v63, %s2415_s30 }
0x103c   :  { %1421 = vrot.lane.b32.xlu0 %v1418_v63, %s2414_s6 }
0x1082   :  { %v1456_v0 = vpop.permute.xlu2 %1455 }
0x1083   :  { %v1461_v3 = vmul.f32 %v1456_v0, %v1365_v15 }
0x108e   :  { %v1424_v8 = vpop.permute.xlu2 %1423 }
0x108f   :  { %v1426_v25 = vmul.f32 %v1424_v8, %v1418_v63 }
0x109a   :  { %v1460_v2 = vpop.permute.xlu1 %1459 }
0x109b   :  { %v1462_v4 = vmul.f32 %v1460_v2, %v1454_v55 }
0x109d   :  { %v1463_v5 = vadd.f32 %v1462_v4, %v1461_v3 }
0x109f   :  { %2291 = vtanh.f32 %v1463_v5 }
0x10a2   :  { %v1458_v9 = vpop.permute.xlu1 %1457 }
0x10a5   :  { %v2292_v10 = vpop.eup %2291 }
0x10a6   :  { %v1465_v22 = vmul.f32 %v2292_v10, %v1458_v9  ;;  %v1420_v24 = vpop.permute.xlu0 %1419 }
0x10a7   :  { %v1425_v26 = vmul.f32 %v1420_v24, %v1329_v7 }
0x10a8   :  { %2136 = vmatmul.msk.f32.vlgmr.msra.gmra.mxu2 %vm196_vm2, %v1465_v22  ;;  %2137 = vmatmul.msk.f32.vlgmr.msra.gmra.mxu0 %vm196_vm2, %v1465_v22 }
0x10a9   :  { %v1427_v27 = vadd.f32 %v1426_v25, %v1425_v26  ;;  %1736 = vmatpush.msra.mxu2 %v2923_v56  ;;  %1798 = vmatpush.msra.mxu0 %v3015_v36 }
0x10ab   :  { %2293 = vtanh.f32 %v1427_v27  ;;  %1737 = vmatpush.msra.mxu2 %v2936_v62  ;;  %1799 = vmatpush.msra.mxu0 %v3028_v51 }
0x10ad   :  { %1738 = vmatpush.msra.mxu2 %v2947_v6  ;;  %1800 = vmatpush.msra.mxu0 %v3030_v11 }
0x10ae   :  { %v1422_v29 = vpop.permute.xlu0 %1421 }
0x10af   :  { %1739 = vmatpush.msra.mxu2 %v2967_v13  ;;  %1801 = vmatpush.msra.mxu0 %v3053_v20 }
0x10b1   :  { %v2294_v19 = vpop.eup %2293 }
0x10b2   :  { %v3169_v30 = vmul.f32 %v2294_v19, %v1422_v29 }
0x10b4   :  { %2135 = vmatmul.msk.f32.vlgmr.msra.gmra.mxu1 %vm196_vm2, %v3169_v30 }
0x10b5   :  { %1700 = vmatpush.msra.mxu1 %v3015_v36 }
0x10b7   :  { %1701 = vmatpush.msra.mxu1 %v3028_v51 }
0x10b9   :  { %1702 = vmatpush.msra.mxu1 %v3030_v11 }
0x10bb   :  { %1703 = vmatpush.msra.mxu1 %v3053_v20 }
0x1125   :  { %v1545_v32 = vpop.f32.mrf.mxu0 }
0x1126   :  { %v1548_v15 = vadd.f32 %v1545_v32, %v1112_v57 }
0x1128   :  { %v1549_v58 = vmul.f32 %v1548_v15, %v2596_v18 }
0x112a   :  { %2295 = vtanh.f32 %v1549_v58 }
0x112b   :  { %v1509_v34 = vpop.f32.mrf.mxu2 }
0x1130   :  { %v2296_v33 = vpop.eup %2295 }
0x1131   :  { %v1486_v35 = vpop.f32.mrf.mxu1  ;;  %v1551_v12 = vmul.f32 %v2296_v33, %v2596_v18 }
0x1132   :  { %v1510_v37 = vadd.f32 %v1509_v34, %v1486_v35 }
0x1133   :  { %v1552_v39 = vadd.f32 %v1551_v12, %v2600_v23 }
0x1134   :  { %v1512_v7 = vadd.f32 %v3079_v31, %v1510_v37 }
0x1135   :  { %1557 = vrot.lane.b32.xlu1 %v1552_v39, %s2416_s20  ;;  %1553 = vrot.lane.b32.xlu2 %v1552_v39, %s2415_s30 }
0x1136   :  { %v1513_v40 = vmul.f32 %v1512_v7, %v2596_v18 }
0x1138   :  { %2297 = vtanh.f32 %v1513_v40 }
0x113d   :  { %1555 = vrot.lane.b32.xlu1 %v1552_v39, %s2414_s6 }
0x113e   :  { %v2298_v41 = vpop.eup %2297 }
0x113f   :  { %v1515_v43 = vmul.f32 %v2298_v41, %v2596_v18 }
0x1141   :  { %v1516_v21 = vadd.f32 %v1515_v43, %v2600_v23 }
0x1143   :  { %1521 = vrot.lane.b32.xlu2 %v1516_v21, %s2416_s20  ;;  %1517 = vrot.lane.b32.xlu0 %v1516_v21, %s2415_s30 }
0x114b   :  { %1519 = vrot.lane.b32.xlu0 %v1516_v21, %s2414_s6 }
0x118f   :  { %v1554_v44 = vpop.permute.xlu2 %1553 }
0x1190   :  { %v1559_v47 = vmul.f32 %v1554_v44, %v1463_v5 }
0x119d   :  { %v1522_v53 = vpop.permute.xlu2 %1521 }
0x119e   :  { %v1524_v59 = vmul.f32 %v1522_v53, %v1516_v21 }
0x11a7   :  { %v1558_v46 = vpop.permute.xlu1 %1557 }
0x11a8   :  { %v1560_v48 = vmul.f32 %v1558_v46, %v1552_v39 }
0x11aa   :  { %v1561_v45 = vadd.f32 %v1560_v48, %v1559_v47 }
0x11ac   :  { %2299 = vtanh.f32 %v1561_v45 }
0x11af   :  { %v1556_v52 = vpop.permute.xlu1 %1555 }
0x11b2   :  { %v2300_v49 = vpop.eup %2299 }
0x11b3   :  { %v1563_v54 = vmul.f32 %v2300_v49, %v1556_v52 }
0x11b5   :  { %v1518_v55 = vpop.permute.xlu0 %1517  ;;  %2139 = vmatmul.msk.f32.vlgmr.msrb.gmra.mxu2 %vm196_vm2, %v1563_v54  ;;  %2140 = vmatmul.msk.f32.vlgmr.msrb.gmra.mxu3 %vm196_vm2, %v1563_v54 }
0x11b6   :  { %v1523_v60 = vmul.f32 %v1518_v55, %v1427_v27  ;;  %1896 = vmatpush.msrb.mxu3 %v3015_v36  ;;  %1873 = vmatpush.msrb.mxu2 %v3032_v14  ;;  %v1114_v36 = vpop.f32.mrf.mxu3 }
0x11b7   :  { %v1115_v14 = vadd.f32 %v3012_v50, %v1114_v36 }
0x11b8   :  { %v1525_v38 = vadd.f32 %v1524_v59, %v1523_v60  ;;  %1897 = vmatpush.msrb.mxu3 %v3028_v51  ;;  %1874 = vmatpush.msrb.mxu2 %v3036_v16 }
0x11ba   :  { %2301 = vtanh.f32 %v1525_v38  ;;  %1898 = vmatpush.msrb.mxu3 %v3030_v11  ;;  %1875 = vmatpush.msrb.mxu2 %v3042_v1 }
0x11bc   :  { %1899 = vmatpush.msrb.mxu3 %v3053_v20  ;;  %1876 = vmatpush.msrb.mxu2 %v3046_v17 }
0x11bd   :  { %v1520_v0 = vpop.permute.xlu0 %1519 }
0x11be   :  { %v1117_v51 = vpop.f32.mrf.mxu3 }
0x11bf   :  { %v1118_v37 = vadd.f32 %v3012_v50, %v1117_v51 }
0x11c0   :  { %v2302_v63 = vpop.eup %2301 }
0x11c1   :  { %v3201_v2 = vmul.f32 %v2302_v63, %v1520_v0 }
0x11c3   :  { %2138 = vmatmul.msk.f32.vlgmr.msrb.gmra.mxu1 %vm196_vm2, %v3201_v2 }
0x11c4   :  { %1834 = vmatpush.msrb.mxu1 %v2923_v56 }
0x11c6   :  { %1835 = vmatpush.msrb.mxu1 %v2936_v62  ;;  %v3209_v11 = vpop.f32.mrf.mxu3 }
0x11c8   :  { %1836 = vmatpush.msrb.mxu1 %v2947_v6 }
0x11ca   :  { %1837 = vmatpush.msrb.mxu1 %v2967_v13 }
0x1238   :  { %v1643_v16 = vpop.f32.mrf.mxu3  ;;  %v1607_v20 = vpop.f32.mrf.mxu2 }
0x1239   :  { %v1646_v1 = vadd.f32 %v1643_v16, %v1115_v14 }
0x123b   :  { %v1647_v17 = vmul.f32 %v1646_v1, %v2596_v18 }
0x123d   :  { %2303 = vtanh.f32 %v1647_v17 }
0x1240   :  { %v1584_v3 = vpop.f32.mrf.mxu1 }
0x1241   :  { %v1608_v56 = vadd.f32 %v1607_v20, %v1584_v3 }
0x1243   :  { %v2304_v4 = vpop.eup %2303  ;;  %v1610_v62 = vadd.f32 %v3079_v31, %v1608_v56 }
0x1244   :  { %v1649_v6 = vmul.f32 %v2304_v4, %v2596_v18  ;;  %v1121_v4 = vadd.f32 %v3012_v50, %v3209_v11 }
0x1245   :  { %v1611_v13 = vmul.f32 %v1610_v62, %v2596_v18  ;;  %v2417_v62 = vmov 0  }
0x1246   :  { %v1650_v5 = vadd.f32 %v1649_v6, %v2600_v23  ;;  %2196 = vset.pattern.permute.xlu0 %v2417_v62  ;;  %2195 = vset.pattern.permute.xlu1 %v2417_v62 }
0x1247   :  { %2305 = vtanh.f32 %v1611_v13  ;;  %2194 = vset.pattern.permute.xlu2 %v2417_v62 }
0x1248   :  { %1651 = vrot.lane.b32.xlu0 %v1650_v5, %s2415_s30 }
0x124d   :  { %v2306_v8 = vpop.eup %2305 }
0x124e   :  { %v1613_v10 = vmul.f32 %v2306_v8, %v2596_v18 }
0x1250   :  { %1653 = vrot.lane.b32.xlu0 %v1650_v5, %s2414_s6  ;;  %v1614_v9 = vadd.f32 %v1613_v10, %v2600_v23 }
0x1252   :  { %1619 = vrot.lane.b32.xlu1 %v1614_v9, %s2416_s20  ;;  %1615 = vrot.lane.b32.xlu2 %v1614_v9, %s2415_s30 }
0x125a   :  { %1617 = vrot.lane.b32.xlu1 %v1614_v9, %s2414_s6  ;;  %1655 = vrot.lane.b32.xlu2 %v1650_v5, %s2416_s20 }
0x12ac   :  { %v1616_v22 = vpop.permute.xlu2 %1615 }
0x12ad   :  { %v1621_v57 = vmul.f32 %v1616_v22, %v1525_v38 }
0x12b4   :  { %v1656_v24 = vpop.permute.xlu2 %1655 }
0x12b5   :  { %v1658_v26 = vmul.f32 %v1656_v24, %v1650_v5 }
0x12ba   :  { %v1652_v25 = vpop.permute.xlu0 %1651 }
0x12bb   :  { %v1657_v27 = vmul.f32 %v1652_v25, %v1561_v45 }
0x12bd   :  { %v1659_v19 = vadd.f32 %v1658_v26, %v1657_v27 }
0x12bf   :  { %2307 = vtanh.f32 %v1659_v19 }
0x12c2   :  { %v1654_v32 = vpop.permute.xlu0 %1653 }
0x12c4   :  { %v1620_v29 = vpop.permute.xlu1 %1619 }
0x12c5   :  { %v2308_v28 = vpop.eup %2307  ;;  %v1622_v15 = vmul.f32 %v1620_v29, %v1614_v9  ;;  %v1922_v29 = vld [vmem:[%s3406_s24 + $0x10] sm:$0xff] }
0x12c6   :  { %v1661_v58 = vmul.f32 %v2308_v28, %v1654_v32  ;;  %v1921_v28 = vld [vmem:[%s3406_s24 + $0x8] sm:$0xff]  ;;  %v1924_v32 = vld [vmem:[%s3406_s24 + $0x20] sm:$0xff] }
0x12c7   :  { %v1623_v33 = vadd.f32 %v1622_v15, %v1621_v57  ;;  %v1920_v57 = vld [vmem:[%s3406_s24] sm:$0xff]  ;;  %v1923_v15 = vld [vmem:[%s3406_s24 + $0x18] sm:$0xff] }
0x12c8   :  { %2142 = vmatmul.msk.f32.vlgmr.msra.gmra.mxu1 %vm196_vm2, %v1661_v58  ;;  %2143 = vmatmul.msk.f32.vlgmr.msra.gmra.mxu2 %vm196_vm2, %v1661_v58  ;;  %v1925_v58 = vld [vmem:[%s3406_s24 + $0x28] sm:$0xff] }
0x12c9   :  { %2309 = vtanh.f32 %v1623_v33 }
0x12cc   :  { %v1618_v35 = vpop.permute.xlu1 %1617 }
0x12cf   :  { %v2310_v34 = vpop.eup %2309 }
0x12d0   :  { %v3227_v12 = vmul.f32 %v2310_v34, %v1618_v35  ;;  %v1979_v34 = vld [vmem:[%s3389_s17 + $0x18] sm:$0xff]  ;;  %v1978_v35 = vld [vmem:[%s3389_s17 + $0x10] sm:$0xff] }
0x12d2   :  { %2141 = vmatmul.msk.f32.vlgmr.msrb.gmra.mxu0 %vm196_vm2, %v3227_v12 }
0x12d3   :  { %2020 = vmatpush.msrb.mxu0 %v1979_v34 }
0x12d5   :  { %2021 = vmatpush.msrb.mxu0 %v1978_v35 }
0x1345   :  { %v1705_v41 = vpop.f32.mrf.mxu1 }
0x134b   :  { %v1741_v39 = vpop.f32.mrf.mxu2 }
0x134c   :  { %v1744_v7 = vadd.f32 %v1741_v39, %v1118_v37  ;;  %v1977_v37 = vld [vmem:[%s3389_s17 + $0x8] sm:$0xff]  ;;  %v1976_v39 = vld [vmem:[%s3389_s17] sm:$0xff] }
0x134d   :  { %2022 = vmatpush.msrb.mxu0 %v1977_v37 }
0x134e   :  { %v1745_v40 = vmul.f32 %v1744_v7, %v2596_v18 }
0x134f   :  { %v1682_v43 = vpop.f32.mrf.mxu0  ;;  %2023 = vmatpush.msrb.mxu0 %v1976_v39 }
0x1350   :  { %2311 = vtanh.f32 %v1745_v40  ;;  %v1706_v21 = vadd.f32 %v1705_v41, %v1682_v43 }
0x1352   :  { %v1708_v44 = vadd.f32 %v3079_v31, %v1706_v21 }
0x1354   :  { %v1709_v46 = vmul.f32 %v1708_v44, %v2596_v18 }
0x1356   :  { %v2312_v47 = vpop.eup %2311  ;;  %2313 = vtanh.f32 %v1709_v46 }
0x1357   :  { %v1747_v48 = vmul.f32 %v2312_v47, %v2596_v18 }
0x1359   :  { %v1748_v45 = vadd.f32 %v1747_v48, %v2600_v23 }
0x135b   :  { %1749 = vrot.lane.b32.xlu0 %v1748_v45, %s2415_s30 }
0x135c   :  { %v2314_v49 = vpop.eup %2313 }
0x135d   :  { %v1711_v52 = vmul.f32 %v2314_v49, %v2596_v18 }
0x135f   :  { %v1712_v53 = vadd.f32 %v1711_v52, %v2600_v23 }
0x1361   :  { %1717 = vrot.lane.b32.xlu1 %v1712_v53, %s2416_s20  ;;  %1713 = vrot.lane.b32.xlu2 %v1712_v53, %s2415_s30 }
0x1363   :  { %1751 = vrot.lane.b32.xlu0 %v1748_v45, %s2414_s6 }
0x1369   :  { %1715 = vrot.lane.b32.xlu1 %v1712_v53, %s2414_s6  ;;  %1753 = vrot.lane.b32.xlu2 %v1748_v45, %s2416_s20 }
0x13bb   :  { %v1714_v54 = vpop.permute.xlu2 %1713 }
0x13bc   :  { %v1719_v36 = vmul.f32 %v1714_v54, %v1623_v33  ;;  %v1926_v33 = vld [vmem:[%s3406_s24 + $0x30] sm:$0xff] }
0x13c3   :  { %v1754_v55 = vpop.permute.xlu2 %1753 }
0x13c4   :  { %v1756_v60 = vmul.f32 %v1754_v55, %v1748_v45 }
0x13cd   :  { %v1750_v59 = vpop.permute.xlu0 %1749 }
0x13ce   :  { %v1755_v38 = vmul.f32 %v1750_v59, %v1659_v19 }
0x13d0   :  { %v3245_v63 = vadd.f32 %v1756_v60, %v1755_v38 }
0x13d2   :  { %2315 = vtanh.f32 %v3245_v63 }
0x13d3   :  { %v1718_v0 = vpop.permute.xlu1 %1717 }
0x13d4   :  { %v1720_v51 = vmul.f32 %v1718_v0, %v1712_v53 }
0x13d5   :  { %v1752_v1 = vpop.permute.xlu0 %1751 }
0x13d6   :  { %v3248_v14 = vadd.f32 %v1720_v51, %v1719_v36 }
0x13d8   :  { %v2316_v16 = vpop.eup %2315  ;;  %2317 = vtanh.f32 %v3248_v14 }
0x13d9   :  { %v1759_v17 = vmul.f32 %v2316_v16, %v1752_v1 }
0x13db   :  { %2145 = vmatmul.msk.f32.vlgmr.msra.gmra.mxu0 %vm196_vm2, %v1759_v17  ;;  %2146 = vmatmul.msk.f32.vlgmr.msrb.gmra.mxu1 %vm196_vm2, %v1759_v17  ;;  %v1716_v3 = vpop.permute.xlu1 %1715 }
0x13de   :  { %v2318_v20 = vpop.eup %2317 }
0x13df   :  { %v3253_v56 = vmul.f32 %v2318_v20, %v1716_v3 }
0x13e1   :  { %2144 = vmatmul.msk.f32.vlgmr.msra.gmra.mxu3 %vm196_vm2, %v3253_v56 }
0x1458   :  { %v1839_v6 = vpop.f32.mrf.mxu1  ;;  %v1803_v10 = vpop.f32.mrf.mxu0 }
0x1459   :  { %v1842_v13 = vadd.f32 %v1839_v6, %v1121_v4 }
0x145b   :  { %v1843_v5 = vmul.f32 %v1842_v13, %v2596_v18 }
0x145d   :  { %2319 = vtanh.f32 %v1843_v5 }
0x1463   :  { %v2320_v8 = vpop.eup %2319 }
0x1464   :  { %v1780_v9 = vpop.f32.mrf.mxu3  ;;  %v1845_v22 = vmul.f32 %v2320_v8, %v2596_v18 }
0x1465   :  { %v1804_v24 = vadd.f32 %v1803_v10, %v1780_v9 }
0x1466   :  { %v1846_v25 = vadd.f32 %v1845_v22, %v2600_v23 }
0x1467   :  { %v1806_v26 = vadd.f32 %v3079_v31, %v1804_v24 }
0x1468   :  { %1847 = vrot.lane.b32.xlu0 %v1846_v25, %s2415_s30 }
0x1469   :  { %v1807_v50 = vmul.f32 %v1806_v26, %v2596_v18 }
0x146b   :  { %2321 = vtanh.f32 %v1807_v50 }
0x1470   :  { %1849 = vrot.lane.b32.xlu0 %v1846_v25, %s2414_s6 }
0x1471   :  { %v2322_v11 = vpop.eup %2321 }
0x1472   :  { %v1809_v27 = vmul.f32 %v2322_v11, %v2596_v18  ;;  %v1927_v11 = vld [vmem:[%s3406_s24 + $0x38] sm:$0xff] }
0x1474   :  { %v1810_v19 = vadd.f32 %v1809_v27, %v2600_v23 }
0x1476   :  { %1815 = vrot.lane.b32.xlu1 %v1810_v19, %s2416_s20  ;;  %1811 = vrot.lane.b32.xlu2 %v1810_v19, %s2415_s30 }
0x1478   :  { %1940 = vperm.xlu0 %2196, %v1922_v29  }
0x147e   :  { %1813 = vrot.lane.b32.xlu1 %v1810_v19, %s2414_s6  ;;  %1851 = vrot.lane.b32.xlu2 %v1846_v25, %s2416_s20 }
0x1486   :  { %1935 = vperm.xlu1 %2195, %v1921_v28   ;;  %1930 = vperm.xlu2 %2194, %v1920_v57  }
0x148e   :  { %1950 = vperm.xlu1 %2195, %v1924_v32   ;;  %1945 = vperm.xlu2 %2194, %v1923_v15  }
0x1496   :  { %1955 = vperm.xlu2 %2194, %v1925_v58  }
0x149e   :  { %1960 = vperm.xlu2 %2194, %v1926_v33  }
0x14d0   :  { %v1812_v7 = vpop.permute.xlu2 %1811 }
0x14d1   :  { %v1817_v53 = vmul.f32 %v1812_v7, %v3248_v14 }
0x14d8   :  { %v1852_v40 = vpop.permute.xlu2 %1851 }
0x14d9   :  { %v1854_v43 = vmul.f32 %v1852_v40, %v1846_v25 }
0x14da   :  { %v1848_v41 = vpop.permute.xlu0 %1847 }
0x14db   :  { %v1853_v21 = vmul.f32 %v1848_v41, %v3245_v63 }
0x14dd   :  { %v1855_v44 = vadd.f32 %v1854_v43, %v1853_v21 }
0x14df   :  { %2323 = vtanh.f32 %v1855_v44 }
0x14e0   :  { %v1931_v46 = vpop.permute.xlu2 %1930 }
0x14e1   :  { %v1968_v47 = vmul.f32 %v1931_v46, %v3103_v61 }
0x14e2   :  { %v1850_v45 = vpop.permute.xlu0 %1849 }
0x14e3   :  { %2149 = vmatmul.msk.f32.vlgmr.msrb.gmra.mxu0 %vm196_vm2, %v1968_v47 }
0x14e5   :  { %v2324_v48 = vpop.eup %2323 }
0x14e6   :  { %v1857_v49 = vmul.f32 %v2324_v48, %v1850_v45 }
0x14e8   :  { %v1816_v52 = vpop.permute.xlu1 %1815  ;;  %2148 = vmatmul.msk.f32.vlgmr.msrb.gmra.mxu3 %vm196_vm2, %v1857_v49  ;;  %v1946_v51 = vpop.permute.xlu2 %1945 }
0x14e9   :  { %v1818_v54 = vmul.f32 %v1816_v52, %v1810_v19  ;;  %v1971_v14 = vmul.f32 %v1946_v51, %v3201_v2 }
0x14ea   :  { %v1941_v0 = vpop.permute.xlu0 %1940 }
0x14eb   :  { %v3310_v55 = vadd.f32 %v1818_v54, %v1817_v53  ;;  %v1970_v36 = vmul.f32 %v1941_v0, %v3169_v30  ;;  %v2202_v30 = vld [vmem:[%s3390_s18] ss:$0 sm:$0xff] }
0x14ed   :  { %2325 = vtanh.f32 %v3310_v55 }
0x14f0   :  { %v1814_v59 = vpop.permute.xlu1 %1813  ;;  %v1956_v17 = vpop.permute.xlu2 %1955 }
0x14f3   :  { %v2326_v60 = vpop.eup %2325 }
0x14f4   :  { %v1821_v38 = vmul.f32 %v2326_v60, %v1814_v59 }
0x14f6   :  { %2147 = vmatmul.msk.f32.vlgmr.msrb.gmra.mxu2 %vm196_vm2, %v1821_v38 }
0x14f8   :  { %v1936_v61 = vpop.permute.xlu1 %1935  ;;  %v1961_v20 = vpop.permute.xlu2 %1960 }
0x14f9   :  { %v1969_v63 = vmul.f32 %v1936_v61, %v3137_v42  ;;  %v1973_v42 = vmul.f32 %v1956_v17, %v3253_v56  ;;  %v1974_v3 = vmul.f32 %v1961_v20, %v1821_v38 }
0x14fb   :  { %2150 = vmatmul.msk.f32.gmra.mxu0 %vm196_vm2, %v1969_v63 }
0x1500   :  { %v1951_v16 = vpop.permute.xlu1 %1950 }
0x1501   :  { %v1972_v1 = vmul.f32 %v1951_v16, %v3227_v12 }
0x1503   :  { %2151 = vmatmul.msk.f32.gmra.mxu0 %vm196_vm2, %v1970_v36 }
0x150b   :  { %2152 = vmatmul.msk.f32.gmra.mxu0 %vm196_vm2, %v1971_v14 }
0x1513   :  { %2153 = vmatmul.msk.f32.gmra.mxu0 %vm196_vm2, %v1972_v1 }
0x151b   :  { %2154 = vmatmul.msk.f32.gmra.mxu0 %vm196_vm2, %v1973_v42 }
0x1523   :  { %2155 = vmatmul.msk.f32.gmra.mxu0 %vm196_vm2, %v1974_v3 }
0x1560   :  { %v2025_v2 = vpop.f32.mrf.mxu0 }
0x1561   :  { %v2026_v4 = vadd.f32 %v2202_v30, %v2025_v2 }
0x1563   :  { %2050 = vst.msk [vmem:[%s3391_s19] sm:$0xff] %vm2049_vm3, %v2026_v4 }
0x156b   :  { %v1901_v56 = vpop.f32.mrf.mxu3 }
0x1578   :  { %v2028_v12 = vpop.f32.mrf.mxu0 }
0x1579   :  { %v2029_v62 = vadd.f32 %v2202_v30, %v2028_v12  ;;  %v1878_v6 = vpop.f32.mrf.mxu2 }
0x157a   :  { %v1902_v13 = vadd.f32 %v1901_v56, %v1878_v6 }
0x157b   :  { %2051 = vst.msk [vmem:[%s3391_s19 + $0x8] sm:$0xff] %vm2049_vm3, %v2029_v62 }
0x157c   :  { %v1904_v5 = vadd.f32 %v3079_v31, %v1902_v13 }
0x157e   :  { %v1905_v8 = vmul.f32 %v1904_v5, %v2596_v18 }
0x1580   :  { %2327 = vtanh.f32 %v1905_v8  ;;  %v2031_v10 = vpop.f32.mrf.mxu0 }
0x1581   :  { %v2032_v9 = vadd.f32 %v2202_v30, %v2031_v10 }
0x1583   :  { %2052 = vst.msk [vmem:[%s3391_s19 + $0x10] sm:$0xff] %vm2049_vm3, %v2032_v9 }
0x1586   :  { %v2328_v22 = vpop.eup %2327 }
0x1587   :  { %v1907_v24 = vmul.f32 %v2328_v22, %v2596_v18 }
0x1588   :  { %v2034_v25 = vpop.f32.mrf.mxu0 }
0x1589   :  { %v2035_v26 = vadd.f32 %v2202_v30, %v2034_v25  ;;  %v1908_v50 = vadd.f32 %v1907_v24, %v2600_v23 }
0x158b   :  { %2053 = vst.msk [vmem:[%s3391_s19 + $0x18] sm:$0xff] %vm2049_vm3, %v2035_v26  ;;  %1913 = vrot.lane.b32.xlu0 %v1908_v50, %s2416_s20  ;;  %1909 = vrot.lane.b32.xlu1 %v1908_v50, %s2415_s30 }
0x1590   :  { %v2037_v31 = vpop.f32.mrf.mxu0 }
0x1591   :  { %v2038_v27 = vadd.f32 %v2202_v30, %v2037_v31 }
0x1593   :  { %2054 = vst.msk [vmem:[%s3391_s19 + $0x20] sm:$0xff] %vm2049_vm3, %v2038_v27  ;;  %1965 = vperm.xlu0 %2196, %v1927_v11   ;;  %1911 = vrot.lane.b32.xlu1 %v1908_v50, %s2414_s6 }
0x1598   :  { %v2040_v18 = vpop.f32.mrf.mxu0 }
0x1599   :  { %v2041_v23 = vadd.f32 %v2202_v30, %v2040_v18 }
0x159b   :  { %2055 = vst.msk [vmem:[%s3391_s19 + $0x28] sm:$0xff] %vm2049_vm3, %v2041_v23 }
0x15a0   :  { %v2043_v19 = vpop.f32.mrf.mxu0 }
0x15a1   :  { %v2044_v29 = vadd.f32 %v2202_v30, %v2043_v19 }
0x15a3   :  { %2056 = vst.msk [vmem:[%s3391_s19 + $0x30] sm:$0xff] %vm2049_vm3, %v2044_v29 }
0x15fd   :  { %v1910_v28 = vpop.permute.xlu1 %1909  ;;  %v1914_v57 = vpop.permute.xlu0 %1913 }
0x15fe   :  { %v1915_v32 = vmul.f32 %v1910_v28, %v3310_v55  ;;  %v1916_v15 = vmul.f32 %v1914_v57, %v1908_v50 }
0x1600   :  { %v1917_v58 = vadd.f32 %v1916_v15, %v1915_v32 }
0x1602   :  { %2329 = vtanh.f32 %v1917_v58 }
0x1605   :  { %v1912_v34 = vpop.permute.xlu1 %1911  ;;  %v1966_v37 = vpop.permute.xlu0 %1965 }
0x1608   :  { %v2330_v33 = vpop.eup %2329 }
0x1609   :  { %v1919_v35 = vmul.f32 %v2330_v33, %v1912_v34 }
0x160b   :  { %v1975_v39 = vmul.f32 %v1966_v37, %v1919_v35 }
0x160d   :  { %2156 = vmatmul.msk.f32.gmra.mxu0 %vm196_vm2, %v1975_v39 }
0x168a   :  { %v2046_v7 = vpop.f32.mrf.mxu0 }
0x168b   :  { %v2047_v40 = vadd.f32 %v2202_v30, %v2046_v7 }
0x168d   :  { %2057 = vst.msk [vmem:[%s3391_s19 + $0x38] sm:$0xff] %vm2049_vm3, %v2047_v40 }
0x168e   :  { %2062 = vsyncpa [#allocation3], 1 }
0x168f   :  { %2063 = vsyncpa [#allocation5], 1 }

</bundles_post_ra>
